<compile_context>
chip_gen: v5e
topology: v5e:2x2
jax: 0.10.0
libtpu: 0.0.40
codegen_flags: <defaults>
</compile_context>

<pallas_src>
import jax
import jax.numpy as jnp
from jax.experimental import pallas as pl
from jax.experimental.pallas import tpu as pltpu

BN_EPS = 1e-5


def _vmem_limit_bytes():
    """Per-chip VMEM budget: ~3/4 of physical, capped (v5e/v6e: 96 MiB, v7x: 48 MiB)."""
    default_cap = 64 * 1024 * 1024
    try:
        info = pltpu.get_tpu_info()
        cap = int(getattr(info, "vmem_capacity_bytes", default_cap))
    except Exception:
        cap = default_cap
    return int(min(cap * 3 // 4, 112 * 1024 * 1024))


# ---------------------------------------------------------------------------
# In-kernel helpers
# ---------------------------------------------------------------------------
def _reflect_conv3x3(p, xp_ref, w_ref, b_ref):
    """conv3x3(ReflectionPad2d(1)(p)) + bias.

    p:      (H2, W2, Ci) bf16   one image, channels-last
    xp_ref: (H2+2, Wp, Ci) bf16 VMEM scratch, Wp >= W2+2 (sublane-padded)
    w_ref:  (9, Ci, Co) bf16    tap index k = dh*3+dw
    b_ref:  (1, Co) f32
    returns (H2*W2, Co) f32 accumulator
    """
    H2, W2, Ci = p.shape
    Co = w_ref.shape[2]
    rows = H2 * W2

    # Reflection pad written straight into the scratch (no concatenates).
    xp_ref[1:H2 + 1, 1:W2 + 1, :] = p
    xp_ref[0:1, 1:W2 + 1, :] = p[1:2, :, :]                       # top
    xp_ref[H2 + 1:H2 + 2, 1:W2 + 1, :] = p[H2 - 2:H2 - 1, :, :]   # bottom
    # Left/right read back from the scratch so corners match PyTorch exactly.
    xp_ref[0:H2 + 2, 0:1, :] = xp_ref[0:H2 + 2, 2:3, :]
    xp_ref[0:H2 + 2, W2 + 1:W2 + 2, :] = xp_ref[0:H2 + 2, W2 - 1:W2, :]

    # 9 accumulating MXU matmuls (f32 accumulation), no im2col concat buffer.
    acc = jnp.zeros((rows, Co), jnp.float32) + b_ref[...]
    for k in range(9):
        dh, dw = divmod(k, 3)
        tap = xp_ref[dh:dh + H2, dw:dw + W2, :].reshape(rows, Ci)   # bf16
        acc = acc + jnp.dot(tap, w_ref[k],
                            preferred_element_type=jnp.float32)
    return acc


def _store_z_stats(acc, z_ref, st_ref):
    """Store channels-first bf16 activations + centered BN partials.

    acc:    (rows, Co) f32
    z_ref:  (Co, rows) bf16  (lane-dense store)
    st_ref: (2, Co)   f32    row0 = per-channel sum, row1 = per-channel M2
    """
    rows = acc.shape[0]
    s = jnp.sum(acc, axis=0, keepdims=True)              # (1, Co)
    mu = s * (1.0 / rows)
    d = acc - mu
    st_ref[0:1, :] = s
    st_ref[1:2, :] = jnp.sum(d * d, axis=0, keepdims=True)
    z_ref[...] = acc.T.astype(jnp.bfloat16)              # channels-first


def _bn_affine(st, gamma, beta, rows):
    """Welford-style merge of per-block (sum, M2) -> BN scale/shift, shape (C, 1).

    Training-mode BatchNorm: biased variance over (N, H, W) per channel.
    """
    sums = st[:, 0, :]                                   # (Nblk, C)
    m2s = st[:, 1, :]                                    # (Nblk, C)
    nblk = st.shape[0]
    cnt = float(nblk * rows)
    mean = jnp.sum(sums, axis=0) / cnt                   # (C,)
    mean_b = sums / float(rows)
    var = (jnp.sum(m2s, axis=0)
           + float(rows) * jnp.sum((mean_b - mean[None, :]) ** 2, axis=0)) / cnt
    scale = gamma.astype(jnp.float32) * jax.lax.rsqrt(var + BN_EPS)
    shift = beta.astype(jnp.float32) - mean * scale
    return scale.reshape(-1, 1), shift.reshape(-1, 1)


# ---------------------------------------------------------------------------
# Wrapper
# ---------------------------------------------------------------------------
def down_forward(x_nchw, params):
    w1, b1, g1, bt1, w2, b2, g2, bt2 = params
    N, Cin, H, W = x_nchw.shape
    Cout = w1.shape[-1]
    assert H % 2 == 0 and W % 2 == 0 and H >= 4 and W >= 4, \
        "Down requires even H, W with H, W >= 4 (MaxPool2d(2) + ReflectionPad2d(1))"
    H2, W2 = H // 2, W // 2
    rows = H2 * W2
    Wp = -(-(W2 + 2) // 8) * 8          # pad scratch sublane dim to multiple of 8

    # Free relabels / tiny parameter reshapes only -- no XLA transpose passes.
    x_flat = x_nchw.reshape(N, Cin, H * W)
    w1_k = w1.reshape(9, Cin, Cout).astype(jnp.bfloat16)
    w2_k = w2.reshape(9, Cout, Cout).astype(jnp.bfloat16)
    b1_k = b1.reshape(1, Cout).astype(jnp.float32)
    b2_k = b2.reshape(1, Cout).astype(jnp.float32)

    cparams = pltpu.CompilerParams(
        dimension_semantics=("parallel",),
        vmem_limit_bytes=_vmem_limit_bytes(),
    )

    # ----------------------- kernel bodies (closures) ------------------------
    def pool_conv1_kernel(x_ref, w_ref, b_ref, z_ref, st_ref, xp_ref):
        # x_ref: (Cin, H*W) f32 -- one NCHW image.  Relayout to channels-last
        # happens in VMEM (overlapped with the pipeline), not as an XLA pass.
        xT = x_ref[...].T                                 # (H*W, Cin) f32
        v = xT.reshape(H2, 2 * W, Cin)                    # rows split by H-parity
        r = jnp.maximum(v[:, :W, :], v[:, W:, :])         # MaxPool over H pairs
        q = r.reshape(H2 * W2, 2, Cin)
        p = jnp.maximum(q[:, 0:1, :], q[:, 1:2, :])       # MaxPool over W pairs
        p = p.astype(jnp.bfloat16).reshape(H2, W2, Cin)   # pooled, channels-last
        acc = _reflect_conv3x3(p, xp_ref, w_ref, b_ref)   # (rows, Cout) f32
        _store_z_stats(acc, z_ref, st_ref)

    def bn_conv2_kernel(z1_ref, sc_ref, sh_ref, w_ref, b_ref,
                        z2_ref, st_ref, xp_ref):
        # z1_ref: (Cout, rows) bf16; BN1 (exact global stats) + ReLU in f32.
        y = jnp.maximum(
            z1_ref[...].astype(jnp.float32) * sc_ref[...] + sh_ref[...], 0.0)
        p = y.T.astype(jnp.bfloat16).reshape(H2, W2, Cout)
        acc = _reflect_conv3x3(p, xp_ref, w_ref, b_ref)   # (rows, Cout) f32
        _store_z_stats(acc, z2_ref, st_ref)

    def bn_relu_out_kernel(z_ref, sc_ref, sh_ref, o_ref):
        # lane-dense elementwise epilogue; output is already channels-first,
        # so the final NCHW reshape outside is a free relabel.
        o_ref[...] = jnp.maximum(
            z_ref[...].astype(jnp.float32) * sc_ref[...] + sh_ref[...], 0.0)

    rep2 = lambda n: (0, 0)
    rep3 = lambda n: (0, 0, 0)

    # ---- K1: maxpool + conv1 (+ BN1 centered partials) ----------------------
    z1, st1 = pl.pallas_call(
        pool_conv1_kernel,
        out_shape=(jax.ShapeDtypeStruct((N, Cout, rows), jnp.bfloat16),
                   jax.ShapeDtypeStruct((N, 2, Cout), jnp.float32)),
        grid=(N,),
        in_specs=[
            pl.BlockSpec((None, Cin, H * W), lambda n: (n, 0, 0)),
            pl.BlockSpec((9, Cin, Cout), rep3),
            pl.BlockSpec((1, Cout), rep2),
        ],
        out_specs=(
            pl.BlockSpec((None, Cout, rows), lambda n: (n, 0, 0)),
            pl.BlockSpec((None, 2, Cout), lambda n: (n, 0, 0)),
        ),
        scratch_shapes=[pltpu.VMEM((H2 + 2, Wp, Cin), jnp.bfloat16)],
        compiler_params=cparams,
    )(x_flat, w1_k, b1_k)

    sc1, sh1 = _bn_affine(st1, g1, bt1, rows)

    # ---- K2: BN1 + ReLU + conv2 (+ BN2 centered partials) --------------------
    z2, st2 = pl.pallas_call(
        bn_conv2_kernel,
        out_shape=(jax.ShapeDtypeStruct((N, Cout, rows), jnp.bfloat16),
                   jax.ShapeDtypeStruct((N, 2, Cout), jnp.float32)),
        grid=(N,),
        in_specs=[
            pl.BlockSpec((None, Cout, rows), lambda n: (n, 0, 0)),
            pl.BlockSpec((Cout, 1), rep2),
            pl.BlockSpec((Cout, 1), rep2),
            pl.BlockSpec((9, Cout, Cout), rep3),
            pl.BlockSpec((1, Cout), rep2),
        ],
        out_specs=(
            pl.BlockSpec((None, Cout, rows), lambda n: (n, 0, 0)),
            pl.BlockSpec((None, 2, Cout), lambda n: (n, 0, 0)),
        ),
        scratch_shapes=[pltpu.VMEM((H2 + 2, Wp, Cout), jnp.bfloat16)],
        compiler_params=cparams,
    )(z1, sc1, sh1, w2_k, b2_k)

    sc2, sh2 = _bn_affine(st2, g2, bt2, rows)

    # ---- K3: BN2 + ReLU, lane-dense store, channels-first ---------------------
    out_flat = pl.pallas_call(
        bn_relu_out_kernel,
        out_shape=jax.ShapeDtypeStruct((N, Cout, rows), jnp.float32),
        grid=(N,),
        in_specs=[
            pl.BlockSpec((None, Cout, rows), lambda n: (n, 0, 0)),
            pl.BlockSpec((Cout, 1), rep2),
            pl.BlockSpec((Cout, 1), rep2),
        ],
        out_specs=pl.BlockSpec((None, Cout, rows), lambda n: (n, 0, 0)),
        compiler_params=cparams,
    )(z2, sc2, sh2)

    return out_flat.reshape(N, Cout, H2, W2)      # free relabel -> NCHW


# ---------------------------------------------------------------------------
# Pure-JAX reference (training-mode BatchNorm, matches the PyTorch module)
# ---------------------------------------------------------------------------
def down_reference(x_nchw, params):
    w1, b1, g1, bt1, w2, b2, g2, bt2 = params
    x = jnp.transpose(x_nchw, (0, 2, 3, 1)).astype(jnp.float32)
    p = jax.lax.reduce_window(x, -jnp.inf, jax.lax.max,
                              (1, 2, 2, 1), (1, 2, 2, 1), 'VALID')

    def block(z, w, b, g, bt):
        zp = jnp.pad(z, ((0, 0), (1, 1), (1, 1), (0, 0)), mode='reflect')
        y = jax.lax.conv_general_dilated(
            zp, w, (1, 1), 'VALID',
            dimension_numbers=('NHWC', 'HWIO', 'NHWC')) + b
        mean = jnp.mean(y, axis=(0, 1, 2), keepdims=True)
        var = jnp.mean((y - mean) ** 2, axis=(0, 1, 2), keepdims=True)
        y = (y - mean) * jax.lax.rsqrt(var + BN_EPS) * g + bt
        return jnp.maximum(y, 0.0)

    y = block(p, w1, b1, g1, bt1)
    y = block(y, w2, b2, g2, bt2)
    return jnp.transpose(y, (0, 3, 1, 2))


if __name__ == "__main__":
    N, Cin, H, W = 2, 4, 16, 16
    Cout = 8

    key = jax.random.PRNGKey(0)
    ks = jax.random.split(key, 9)
    x = jax.random.normal(ks[0], (N, Cin, H, W), jnp.float32)

    # Deterministic synthetic parameters (conv weights in HWIO, BN affine).
    w1 = 0.10 * jax.random.normal(ks[1], (3, 3, Cin, Cout), jnp.float32)
    b1 = 0.05 * jax.random.normal(ks[2], (Cout,), jnp.float32)
    g1 = 1.0 + 0.10 * jax.random.normal(ks[3], (Cout,), jnp.float32)
    bt1 = 0.05 * jax.random.normal(ks[4], (Cout,), jnp.float32)
    w2 = 0.10 * jax.random.normal(ks[5], (3, 3, Cout, Cout), jnp.float32)
    b2 = 0.05 * jax.random.normal(ks[6], (Cout,), jnp.float32)
    g2 = 1.0 + 0.10 * jax.random.normal(ks[7], (Cout,), jnp.float32)
    bt2 = 0.05 * jax.random.normal(ks[8], (Cout,), jnp.float32)
    params = (w1, b1, g1, bt1, w2, b2, g2, bt2)

    out = jax.block_until_ready(jax.jit(down_forward)(x, params))
    ref = jax.block_until_ready(down_reference(x, params))

    assert out.shape == (N, Cout, H // 2, W // 2), out.shape
    assert bool(jnp.all(jnp.isfinite(out)))
    # tolerance: conv matmuls use bf16 operands (f32 acc) and z1/z2 are stored
    # in bf16; BatchNorm rescales the rounding noise to O(1) units.
    err = float(jnp.max(jnp.abs(out - ref)))
    assert bool(jnp.allclose(out, ref, atol=5e-2, rtol=5e-2)), err

    print("KERNEL_OK")
</pallas_src>

<mosaic_0001>
module attributes {stable_mosaic.version = 11 : i64} {
  func.func @pool_conv1_kernel(%arg0: i32, %arg1: memref<1x4x256xf32, #tpu.memory_space<vmem>>, %arg2: memref<9x4x8xbf16, #tpu.memory_space<vmem>>, %arg3: memref<1x8xf32, #tpu.memory_space<vmem>>, %arg4: memref<1x8x64xbf16, #tpu.memory_space<vmem>>, %arg5: memref<1x2x8xf32, #tpu.memory_space<vmem>>, %arg6: memref<10x16x4xbf16, #tpu.memory_space<vmem>>) attributes {dimension_semantics = [#tpu.dimension_semantics<parallel>], iteration_bounds = array<i64: 2>, scalar_prefetch = 0 : i64, scratch_operands = 1 : i64, tpu.core_type = #tpu.core_type<tc>, window_params = [{transform_indices = @transform_0, window_bounds = array<i64: 1, 4, 256>}, {pipeline_mode = #tpu.pipeline_mode<synchronous>, transform_indices = @transform_1, window_bounds = array<i64: 9, 4, 8>}, {pipeline_mode = #tpu.pipeline_mode<synchronous>, transform_indices = @transform_2, window_bounds = array<i64: 1, 8>}, {transform_indices = @transform_3, window_bounds = array<i64: 1, 8, 64>}, {transform_indices = @transform_4, window_bounds = array<i64: 1, 2, 8>}]} {
    %c0 = arith.constant 0 : index
    %c0_0 = arith.constant 0 : index
    %c0_1 = arith.constant 0 : index
    %0 = vector.load %arg1[%c0, %c0_0, %c0_1] : memref<1x4x256xf32, #tpu.memory_space<vmem>>, vector<1x4x256xf32>
    %1 = vector.shape_cast %0 : vector<1x4x256xf32> to vector<4x256xf32>
    %2 = tpu.transpose %1, [1, 0] : vector<4x256xf32> -> vector<256x4xf32>
    %3 = vector.shape_cast %2 : vector<256x4xf32> to vector<8x32x4xf32>
    %4 = vector.extract_strided_slice %3 {offsets = [0, 0, 0], sizes = [8, 16, 4], strides = [1, 1, 1]} : vector<8x32x4xf32> to vector<8x16x4xf32>
    %5 = vector.extract_strided_slice %3 {offsets = [0, 16, 0], sizes = [8, 16, 4], strides = [1, 1, 1]} : vector<8x32x4xf32> to vector<8x16x4xf32>
    %6 = arith.maximumf %4, %5 : vector<8x16x4xf32>
    %7 = vector.shape_cast %6 : vector<8x16x4xf32> to vector<64x2x4xf32>
    %8 = vector.extract_strided_slice %7 {offsets = [0, 0, 0], sizes = [64, 1, 4], strides = [1, 1, 1]} : vector<64x2x4xf32> to vector<64x1x4xf32>
    %9 = vector.extract_strided_slice %7 {offsets = [0, 1, 0], sizes = [64, 1, 4], strides = [1, 1, 1]} : vector<64x2x4xf32> to vector<64x1x4xf32>
    %10 = arith.maximumf %8, %9 : vector<64x1x4xf32>
    %11 = arith.truncf %10 : vector<64x1x4xf32> to vector<64x1x4xbf16>
    %12 = vector.shape_cast %11 : vector<64x1x4xbf16> to vector<8x8x4xbf16>
    %c1 = arith.constant 1 : index
    %c1_2 = arith.constant 1 : index
    %c0_3 = arith.constant 0 : index
    %13 = vector.load %arg6[%c1, %c1_2, %c0_3] : memref<10x16x4xbf16, #tpu.memory_space<vmem>>, vector<8x8x4xbf16>
    tpu.vector_store %arg6[%c1, %c1_2, %c0_3], %12 {strides = array<i32>} : memref<10x16x4xbf16, #tpu.memory_space<vmem>>, vector<8x8x4xbf16>,
    %14 = vector.extract_strided_slice %12 {offsets = [1, 0, 0], sizes = [1, 8, 4], strides = [1, 1, 1]} : vector<8x8x4xbf16> to vector<1x8x4xbf16>
    %c0_4 = arith.constant 0 : index
    %c1_5 = arith.constant 1 : index
    %c0_6 = arith.constant 0 : index
    %15 = vector.load %arg6[%c0_4, %c1_5, %c0_6] : memref<10x16x4xbf16, #tpu.memory_space<vmem>>, vector<1x8x4xbf16>
    tpu.vector_store %arg6[%c0_4, %c1_5, %c0_6], %14 {strides = array<i32>} : memref<10x16x4xbf16, #tpu.memory_space<vmem>>, vector<1x8x4xbf16>,
    %16 = vector.extract_strided_slice %12 {offsets = [6, 0, 0], sizes = [1, 8, 4], strides = [1, 1, 1]} : vector<8x8x4xbf16> to vector<1x8x4xbf16>
    %c9 = arith.constant 9 : index
    %c1_7 = arith.constant 1 : index
    %c0_8 = arith.constant 0 : index
    %17 = vector.load %arg6[%c9, %c1_7, %c0_8] : memref<10x16x4xbf16, #tpu.memory_space<vmem>>, vector<1x8x4xbf16>
    tpu.vector_store %arg6[%c9, %c1_7, %c0_8], %16 {strides = array<i32>} : memref<10x16x4xbf16, #tpu.memory_space<vmem>>, vector<1x8x4xbf16>,
    %c0_9 = arith.constant 0 : index
    %c2 = arith.constant 2 : index
    %c0_10 = arith.constant 0 : index
    %18 = vector.load %arg6[%c0_9, %c2, %c0_10] : memref<10x16x4xbf16, #tpu.memory_space<vmem>>, vector<10x1x4xbf16>
    %c0_11 = arith.constant 0 : index
    %c0_12 = arith.constant 0 : index
    %c0_13 = arith.constant 0 : index
    %19 = vector.load %arg6[%c0_11, %c0_12, %c0_13] : memref<10x16x4xbf16, #tpu.memory_space<vmem>>, vector<10x1x4xbf16>
    tpu.vector_store %arg6[%c0_11, %c0_12, %c0_13], %18 {strides = array<i32>} : memref<10x16x4xbf16, #tpu.memory_space<vmem>>, vector<10x1x4xbf16>,
    %c0_14 = arith.constant 0 : index
    %c7 = arith.constant 7 : index
    %c0_15 = arith.constant 0 : index
    %20 = vector.load %arg6[%c0_14, %c7, %c0_15] : memref<10x16x4xbf16, #tpu.memory_space<vmem>>, vector<10x1x4xbf16>
    %c0_16 = arith.constant 0 : index
    %c9_17 = arith.constant 9 : index
    %c0_18 = arith.constant 0 : index
    %21 = vector.load %arg6[%c0_16, %c9_17, %c0_18] : memref<10x16x4xbf16, #tpu.memory_space<vmem>>, vector<10x1x4xbf16>
    tpu.vector_store %arg6[%c0_16, %c9_17, %c0_18], %20 {strides = array<i32>} : memref<10x16x4xbf16, #tpu.memory_space<vmem>>, vector<10x1x4xbf16>,
    %cst = arith.constant 0.000000e+00 : f32
    %22 = vector.broadcast %cst : f32 to vector<64x8xf32>
    %c0_19 = arith.constant 0 : index
    %c0_20 = arith.constant 0 : index
    %23 = vector.load %arg3[%c0_19, %c0_20] : memref<1x8xf32, #tpu.memory_space<vmem>>, vector<1x8xf32>
    %24 = vector.broadcast %23 : vector<1x8xf32> to vector<64x8xf32>
    %25 = arith.addf %22, %24 : vector<64x8xf32>
    %c0_21 = arith.constant 0 : index
    %c0_22 = arith.constant 0 : index
    %c0_23 = arith.constant 0 : index
    %26 = vector.load %arg6[%c0_21, %c0_22, %c0_23] : memref<10x16x4xbf16, #tpu.memory_space<vmem>>, vector<8x8x4xbf16>
    %27 = vector.shape_cast %26 : vector<8x8x4xbf16> to vector<64x4xbf16>
    %c0_24 = arith.constant 0 : index
    %c0_25 = arith.constant 0 : index
    %c0_26 = arith.constant 0 : index
    %28 = vector.load %arg2[%c0_24, %c0_25, %c0_26] : memref<9x4x8xbf16, #tpu.memory_space<vmem>>, vector<1x4x8xbf16>
    %29 = vector.shape_cast %28 : vector<1x4x8xbf16> to vector<4x8xbf16>
    %cst_27 = arith.constant dense<0.000000e+00> : vector<64x8xf32>
    %30 = tpu.matmul %27, %29, %cst_27 {dimension_numbers = #tpu.dot_dimension_numbers<[1], [0], [0], [1], [0, 0, 1, 1], [], []>} : vector<64x4xbf16>, vector<4x8xbf16>, vector<64x8xf32> -> vector<64x8xf32>
    %31 = arith.addf %25, %30 : vector<64x8xf32>
    %c0_28 = arith.constant 0 : index
    %c1_29 = arith.constant 1 : index
    %c0_30 = arith.constant 0 : index
    %32 = vector.load %arg6[%c0_28, %c1_29, %c0_30] : memref<10x16x4xbf16, #tpu.memory_space<vmem>>, vector<8x8x4xbf16>
    %33 = vector.shape_cast %32 : vector<8x8x4xbf16> to vector<64x4xbf16>
    %c1_31 = arith.constant 1 : index
    %c0_32 = arith.constant 0 : index
    %c0_33 = arith.constant 0 : index
    %34 = vector.load %arg2[%c1_31, %c0_32, %c0_33] : memref<9x4x8xbf16, #tpu.memory_space<vmem>>, vector<1x4x8xbf16>
    %35 = vector.shape_cast %34 : vector<1x4x8xbf16> to vector<4x8xbf16>
    %cst_34 = arith.constant dense<0.000000e+00> : vector<64x8xf32>
    %36 = tpu.matmul %33, %35, %cst_34 {dimension_numbers = #tpu.dot_dimension_numbers<[1], [0], [0], [1], [0, 0, 1, 1], [], []>} : vector<64x4xbf16>, vector<4x8xbf16>, vector<64x8xf32> -> vector<64x8xf32>
    %37 = arith.addf %31, %36 : vector<64x8xf32>
    %c0_35 = arith.constant 0 : index
    %c2_36 = arith.constant 2 : index
    %c0_37 = arith.constant 0 : index
    %38 = vector.load %arg6[%c0_35, %c2_36, %c0_37] : memref<10x16x4xbf16, #tpu.memory_space<vmem>>, vector<8x8x4xbf16>
    %39 = vector.shape_cast %38 : vector<8x8x4xbf16> to vector<64x4xbf16>
    %c2_38 = arith.constant 2 : index
    %c0_39 = arith.constant 0 : index
    %c0_40 = arith.constant 0 : index
    %40 = vector.load %arg2[%c2_38, %c0_39, %c0_40] : memref<9x4x8xbf16, #tpu.memory_space<vmem>>, vector<1x4x8xbf16>
    %41 = vector.shape_cast %40 : vector<1x4x8xbf16> to vector<4x8xbf16>
    %cst_41 = arith.constant dense<0.000000e+00> : vector<64x8xf32>
    %42 = tpu.matmul %39, %41, %cst_41 {dimension_numbers = #tpu.dot_dimension_numbers<[1], [0], [0], [1], [0, 0, 1, 1], [], []>} : vector<64x4xbf16>, vector<4x8xbf16>, vector<64x8xf32> -> vector<64x8xf32>
    %43 = arith.addf %37, %42 : vector<64x8xf32>
    %c1_42 = arith.constant 1 : index
    %c0_43 = arith.constant 0 : index
    %c0_44 = arith.constant 0 : index
    %44 = vector.load %arg6[%c1_42, %c0_43, %c0_44] : memref<10x16x4xbf16, #tpu.memory_space<vmem>>, vector<8x8x4xbf16>
    %45 = vector.shape_cast %44 : vector<8x8x4xbf16> to vector<64x4xbf16>
    %c3 = arith.constant 3 : index
    %c0_45 = arith.constant 0 : index
    %c0_46 = arith.constant 0 : index
    %46 = vector.load %arg2[%c3, %c0_45, %c0_46] : memref<9x4x8xbf16, #tpu.memory_space<vmem>>, vector<1x4x8xbf16>
    %47 = vector.shape_cast %46 : vector<1x4x8xbf16> to vector<4x8xbf16>
    %cst_47 = arith.constant dense<0.000000e+00> : vector<64x8xf32>
    %48 = tpu.matmul %45, %47, %cst_47 {dimension_numbers = #tpu.dot_dimension_numbers<[1], [0], [0], [1], [0, 0, 1, 1], [], []>} : vector<64x4xbf16>, vector<4x8xbf16>, vector<64x8xf32> -> vector<64x8xf32>
    %49 = arith.addf %43, %48 : vector<64x8xf32>
    %c1_48 = arith.constant 1 : index
    %c1_49 = arith.constant 1 : index
    %c0_50 = arith.constant 0 : index
    %50 = vector.load %arg6[%c1_48, %c1_49, %c0_50] : memref<10x16x4xbf16, #tpu.memory_space<vmem>>, vector<8x8x4xbf16>
    %51 = vector.shape_cast %50 : vector<8x8x4xbf16> to vector<64x4xbf16>
    %c4 = arith.constant 4 : index
    %c0_51 = arith.constant 0 : index
    %c0_52 = arith.constant 0 : index
    %52 = vector.load %arg2[%c4, %c0_51, %c0_52] : memref<9x4x8xbf16, #tpu.memory_space<vmem>>, vector<1x4x8xbf16>
    %53 = vector.shape_cast %52 : vector<1x4x8xbf16> to vector<4x8xbf16>
    %cst_53 = arith.constant dense<0.000000e+00> : vector<64x8xf32>
    %54 = tpu.matmul %51, %53, %cst_53 {dimension_numbers = #tpu.dot_dimension_numbers<[1], [0], [0], [1], [0, 0, 1, 1], [], []>} : vector<64x4xbf16>, vector<4x8xbf16>, vector<64x8xf32> -> vector<64x8xf32>
    %55 = arith.addf %49, %54 : vector<64x8xf32>
    %c1_54 = arith.constant 1 : index
    %c2_55 = arith.constant 2 : index
    %c0_56 = arith.constant 0 : index
    %56 = vector.load %arg6[%c1_54, %c2_55, %c0_56] : memref<10x16x4xbf16, #tpu.memory_space<vmem>>, vector<8x8x4xbf16>
    %57 = vector.shape_cast %56 : vector<8x8x4xbf16> to vector<64x4xbf16>
    %c5 = arith.constant 5 : index
    %c0_57 = arith.constant 0 : index
    %c0_58 = arith.constant 0 : index
    %58 = vector.load %arg2[%c5, %c0_57, %c0_58] : memref<9x4x8xbf16, #tpu.memory_space<vmem>>, vector<1x4x8xbf16>
    %59 = vector.shape_cast %58 : vector<1x4x8xbf16> to vector<4x8xbf16>
    %cst_59 = arith.constant dense<0.000000e+00> : vector<64x8xf32>
    %60 = tpu.matmul %57, %59, %cst_59 {dimension_numbers = #tpu.dot_dimension_numbers<[1], [0], [0], [1], [0, 0, 1, 1], [], []>} : vector<64x4xbf16>, vector<4x8xbf16>, vector<64x8xf32> -> vector<64x8xf32>
    %61 = arith.addf %55, %60 : vector<64x8xf32>
    %c2_60 = arith.constant 2 : index
    %c0_61 = arith.constant 0 : index
    %c0_62 = arith.constant 0 : index
    %62 = vector.load %arg6[%c2_60, %c0_61, %c0_62] : memref<10x16x4xbf16, #tpu.memory_space<vmem>>, vector<8x8x4xbf16>
    %63 = vector.shape_cast %62 : vector<8x8x4xbf16> to vector<64x4xbf16>
    %c6 = arith.constant 6 : index
    %c0_63 = arith.constant 0 : index
    %c0_64 = arith.constant 0 : index
    %64 = vector.load %arg2[%c6, %c0_63, %c0_64] : memref<9x4x8xbf16, #tpu.memory_space<vmem>>, vector<1x4x8xbf16>
    %65 = vector.shape_cast %64 : vector<1x4x8xbf16> to vector<4x8xbf16>
    %cst_65 = arith.constant dense<0.000000e+00> : vector<64x8xf32>
    %66 = tpu.matmul %63, %65, %cst_65 {dimension_numbers = #tpu.dot_dimension_numbers<[1], [0], [0], [1], [0, 0, 1, 1], [], []>} : vector<64x4xbf16>, vector<4x8xbf16>, vector<64x8xf32> -> vector<64x8xf32>
    %67 = arith.addf %61, %66 : vector<64x8xf32>
    %c2_66 = arith.constant 2 : index
    %c1_67 = arith.constant 1 : index
    %c0_68 = arith.constant 0 : index
    %68 = vector.load %arg6[%c2_66, %c1_67, %c0_68] : memref<10x16x4xbf16, #tpu.memory_space<vmem>>, vector<8x8x4xbf16>
    %69 = vector.shape_cast %68 : vector<8x8x4xbf16> to vector<64x4xbf16>
    %c7_69 = arith.constant 7 : index
    %c0_70 = arith.constant 0 : index
    %c0_71 = arith.constant 0 : index
    %70 = vector.load %arg2[%c7_69, %c0_70, %c0_71] : memref<9x4x8xbf16, #tpu.memory_space<vmem>>, vector<1x4x8xbf16>
    %71 = vector.shape_cast %70 : vector<1x4x8xbf16> to vector<4x8xbf16>
    %cst_72 = arith.constant dense<0.000000e+00> : vector<64x8xf32>
    %72 = tpu.matmul %69, %71, %cst_72 {dimension_numbers = #tpu.dot_dimension_numbers<[1], [0], [0], [1], [0, 0, 1, 1], [], []>} : vector<64x4xbf16>, vector<4x8xbf16>, vector<64x8xf32> -> vector<64x8xf32>
    %73 = arith.addf %67, %72 : vector<64x8xf32>
    %c2_73 = arith.constant 2 : index
    %c2_74 = arith.constant 2 : index
    %c0_75 = arith.constant 0 : index
    %74 = vector.load %arg6[%c2_73, %c2_74, %c0_75] : memref<10x16x4xbf16, #tpu.memory_space<vmem>>, vector<8x8x4xbf16>
    %75 = vector.shape_cast %74 : vector<8x8x4xbf16> to vector<64x4xbf16>
    %c8 = arith.constant 8 : index
    %c0_76 = arith.constant 0 : index
    %c0_77 = arith.constant 0 : index
    %76 = vector.load %arg2[%c8, %c0_76, %c0_77] : memref<9x4x8xbf16, #tpu.memory_space<vmem>>, vector<1x4x8xbf16>
    %77 = vector.shape_cast %76 : vector<1x4x8xbf16> to vector<4x8xbf16>
    %cst_78 = arith.constant dense<0.000000e+00> : vector<64x8xf32>
    %78 = tpu.matmul %75, %77, %cst_78 {dimension_numbers = #tpu.dot_dimension_numbers<[1], [0], [0], [1], [0, 0, 1, 1], [], []>} : vector<64x4xbf16>, vector<4x8xbf16>, vector<64x8xf32> -> vector<64x8xf32>
    %79 = arith.addf %73, %78 : vector<64x8xf32>
    %cst_79 = arith.constant dense<0.000000e+00> : vector<8xf32>
    %80 = vector.multi_reduction <add>, %79, %cst_79 [0] : vector<64x8xf32> to vector<8xf32>
    %81 = vector.shape_cast %80 : vector<8xf32> to vector<1x8xf32>
    %cst_80 = arith.constant 1.562500e-02 : f32
    %82 = vector.broadcast %cst_80 : f32 to vector<1x8xf32>
    %83 = arith.mulf %81, %82 : vector<1x8xf32>
    %84 = vector.broadcast %83 : vector<1x8xf32> to vector<64x8xf32>
    %85 = arith.subf %79, %84 : vector<64x8xf32>
    %c0_81 = arith.constant 0 : index
    %c0_82 = arith.constant 0 : index
    %c0_83 = arith.constant 0 : index
    %86 = vector.load %arg5[%c0_81, %c0_82, %c0_83] : memref<1x2x8xf32, #tpu.memory_space<vmem>>, vector<1x1x8xf32>
    %87 = vector.shape_cast %86 : vector<1x1x8xf32> to vector<1x8xf32>
    %88 = vector.shape_cast %81 : vector<1x8xf32> to vector<1x1x8xf32>
    tpu.vector_store %arg5[%c0_81, %c0_82, %c0_83], %88 {strides = array<i32>} : memref<1x2x8xf32, #tpu.memory_space<vmem>>, vector<1x1x8xf32>,
    %89 = arith.mulf %85, %85 : vector<64x8xf32>
    %cst_84 = arith.constant dense<0.000000e+00> : vector<8xf32>
    %90 = vector.multi_reduction <add>, %89, %cst_84 [0] : vector<64x8xf32> to vector<8xf32>
    %91 = vector.shape_cast %90 : vector<8xf32> to vector<1x8xf32>
    %c0_85 = arith.constant 0 : index
    %c1_86 = arith.constant 1 : index
    %c0_87 = arith.constant 0 : index
    %92 = vector.load %arg5[%c0_85, %c1_86, %c0_87] : memref<1x2x8xf32, #tpu.memory_space<vmem>>, vector<1x1x8xf32>
    %93 = vector.shape_cast %92 : vector<1x1x8xf32> to vector<1x8xf32>
    %94 = vector.shape_cast %91 : vector<1x8xf32> to vector<1x1x8xf32>
    tpu.vector_store %arg5[%c0_85, %c1_86, %c0_87], %94 {strides = array<i32>} : memref<1x2x8xf32, #tpu.memory_space<vmem>>, vector<1x1x8xf32>,
    %95 = tpu.transpose %79, [1, 0] : vector<64x8xf32> -> vector<8x64xf32>
    %96 = arith.truncf %95 : vector<8x64xf32> to vector<8x64xbf16>
    %c0_88 = arith.constant 0 : index
    %c0_89 = arith.constant 0 : index
    %c0_90 = arith.constant 0 : index
    %97 = vector.load %arg4[%c0_88, %c0_89, %c0_90] : memref<1x8x64xbf16, #tpu.memory_space<vmem>>, vector<1x8x64xbf16>
    %98 = vector.shape_cast %97 : vector<1x8x64xbf16> to vector<8x64xbf16>
    %99 = vector.shape_cast %96 : vector<8x64xbf16> to vector<1x8x64xbf16>
    tpu.vector_store %arg4[%c0_88, %c0_89, %c0_90], %99 {strides = array<i32>} : memref<1x8x64xbf16, #tpu.memory_space<vmem>>, vector<1x8x64xbf16>,
    return
  }
  func.func @transform_0(%arg0: i32) -> (i32, i32, i32) {
    %c0_i32 = arith.constant 0 : i32
    %c0_i32_0 = arith.constant 0 : i32
    %c0_i32_1 = arith.constant 0 : i32
    return %arg0, %c0_i32, %c0_i32_0 : i32, i32, i32
  }
  func.func @transform_1(%arg0: i32) -> (i32, i32, i32) {
    %c0_i32 = arith.constant 0 : i32
    %c0_i32_0 = arith.constant 0 : i32
    %c0_i32_1 = arith.constant 0 : i32
    %c0_i32_2 = arith.constant 0 : i32
    return %c0_i32, %c0_i32_0, %c0_i32_1 : i32, i32, i32
  }
  func.func @transform_2(%arg0: i32) -> (i32, i32) {
    %c0_i32 = arith.constant 0 : i32
    %c0_i32_0 = arith.constant 0 : i32
    %c0_i32_1 = arith.constant 0 : i32
    return %c0_i32, %c0_i32_0 : i32, i32
  }
  func.func @transform_3(%arg0: i32) -> (i32, i32, i32) {
    %c0_i32 = arith.constant 0 : i32
    %c0_i32_0 = arith.constant 0 : i32
    %c0_i32_1 = arith.constant 0 : i32
    return %arg0, %c0_i32, %c0_i32_0 : i32, i32, i32
  }
  func.func @transform_4(%arg0: i32) -> (i32, i32, i32) {
    %c0_i32 = arith.constant 0 : i32
    %c0_i32_0 = arith.constant 0 : i32
    %c0_i32_1 = arith.constant 0 : i32
    return %arg0, %c0_i32, %c0_i32_0 : i32, i32, i32
  }
}

module attributes {stable_mosaic.version = 11 : i64} {
  func.func @bn_conv2_kernel(%arg0: i32, %arg1: memref<1x8x64xbf16, #tpu.memory_space<vmem>>, %arg2: memref<8x1xf32, #tpu.memory_space<vmem>>, %arg3: memref<8x1xf32, #tpu.memory_space<vmem>>, %arg4: memref<9x8x8xbf16, #tpu.memory_space<vmem>>, %arg5: memref<1x8xf32, #tpu.memory_space<vmem>>, %arg6: memref<1x8x64xbf16, #tpu.memory_space<vmem>>, %arg7: memref<1x2x8xf32, #tpu.memory_space<vmem>>, %arg8: memref<10x16x8xbf16, #tpu.memory_space<vmem>>) attributes {dimension_semantics = [#tpu.dimension_semantics<parallel>], iteration_bounds = array<i64: 2>, scalar_prefetch = 0 : i64, scratch_operands = 1 : i64, tpu.core_type = #tpu.core_type<tc>, window_params = [{transform_indices = @transform_0, window_bounds = array<i64: 1, 8, 64>}, {pipeline_mode = #tpu.pipeline_mode<synchronous>, transform_indices = @transform_1, window_bounds = array<i64: 8, 1>}, {pipeline_mode = #tpu.pipeline_mode<synchronous>, transform_indices = @transform_2, window_bounds = array<i64: 8, 1>}, {pipeline_mode = #tpu.pipeline_mode<synchronous>, transform_indices = @transform_3, window_bounds = array<i64: 9, 8, 8>}, {pipeline_mode = #tpu.pipeline_mode<synchronous>, transform_indices = @transform_4, window_bounds = array<i64: 1, 8>}, {transform_indices = @transform_5, window_bounds = array<i64: 1, 8, 64>}, {transform_indices = @transform_6, window_bounds = array<i64: 1, 2, 8>}]} {
    %c0 = arith.constant 0 : index
    %c0_0 = arith.constant 0 : index
    %c0_1 = arith.constant 0 : index
    %0 = vector.load %arg1[%c0, %c0_0, %c0_1] : memref<1x8x64xbf16, #tpu.memory_space<vmem>>, vector<1x8x64xbf16>
    %1 = vector.shape_cast %0 : vector<1x8x64xbf16> to vector<8x64xbf16>
    %2 = arith.extf %1 : vector<8x64xbf16> to vector<8x64xf32>
    %c0_2 = arith.constant 0 : index
    %c0_3 = arith.constant 0 : index
    %3 = vector.load %arg2[%c0_2, %c0_3] : memref<8x1xf32, #tpu.memory_space<vmem>>, vector<8x1xf32>
    %4 = vector.broadcast %3 : vector<8x1xf32> to vector<8x64xf32>
    %5 = arith.mulf %2, %4 : vector<8x64xf32>
    %c0_4 = arith.constant 0 : index
    %c0_5 = arith.constant 0 : index
    %6 = vector.load %arg3[%c0_4, %c0_5] : memref<8x1xf32, #tpu.memory_space<vmem>>, vector<8x1xf32>
    %7 = vector.broadcast %6 : vector<8x1xf32> to vector<8x64xf32>
    %8 = arith.addf %5, %7 : vector<8x64xf32>
    %cst = arith.constant 0.000000e+00 : f32
    %9 = vector.broadcast %cst : f32 to vector<8x64xf32>
    %10 = arith.maximumf %8, %9 : vector<8x64xf32>
    %11 = tpu.transpose %10, [1, 0] : vector<8x64xf32> -> vector<64x8xf32>
    %12 = arith.truncf %11 : vector<64x8xf32> to vector<64x8xbf16>
    %13 = vector.shape_cast %12 : vector<64x8xbf16> to vector<8x8x8xbf16>
    %c1 = arith.constant 1 : index
    %c1_6 = arith.constant 1 : index
    %c0_7 = arith.constant 0 : index
    %14 = vector.load %arg8[%c1, %c1_6, %c0_7] : memref<10x16x8xbf16, #tpu.memory_space<vmem>>, vector<8x8x8xbf16>
    tpu.vector_store %arg8[%c1, %c1_6, %c0_7], %13 {strides = array<i32>} : memref<10x16x8xbf16, #tpu.memory_space<vmem>>, vector<8x8x8xbf16>,
    %15 = vector.extract_strided_slice %13 {offsets = [1, 0, 0], sizes = [1, 8, 8], strides = [1, 1, 1]} : vector<8x8x8xbf16> to vector<1x8x8xbf16>
    %c0_8 = arith.constant 0 : index
    %c1_9 = arith.constant 1 : index
    %c0_10 = arith.constant 0 : index
    %16 = vector.load %arg8[%c0_8, %c1_9, %c0_10] : memref<10x16x8xbf16, #tpu.memory_space<vmem>>, vector<1x8x8xbf16>
    tpu.vector_store %arg8[%c0_8, %c1_9, %c0_10], %15 {strides = array<i32>} : memref<10x16x8xbf16, #tpu.memory_space<vmem>>, vector<1x8x8xbf16>,
    %17 = vector.extract_strided_slice %13 {offsets = [6, 0, 0], sizes = [1, 8, 8], strides = [1, 1, 1]} : vector<8x8x8xbf16> to vector<1x8x8xbf16>
    %c9 = arith.constant 9 : index
    %c1_11 = arith.constant 1 : index
    %c0_12 = arith.constant 0 : index
    %18 = vector.load %arg8[%c9, %c1_11, %c0_12] : memref<10x16x8xbf16, #tpu.memory_space<vmem>>, vector<1x8x8xbf16>
    tpu.vector_store %arg8[%c9, %c1_11, %c0_12], %17 {strides = array<i32>} : memref<10x16x8xbf16, #tpu.memory_space<vmem>>, vector<1x8x8xbf16>,
    %c0_13 = arith.constant 0 : index
    %c2 = arith.constant 2 : index
    %c0_14 = arith.constant 0 : index
    %19 = vector.load %arg8[%c0_13, %c2, %c0_14] : memref<10x16x8xbf16, #tpu.memory_space<vmem>>, vector<10x1x8xbf16>
    %c0_15 = arith.constant 0 : index
    %c0_16 = arith.constant 0 : index
    %c0_17 = arith.constant 0 : index
    %20 = vector.load %arg8[%c0_15, %c0_16, %c0_17] : memref<10x16x8xbf16, #tpu.memory_space<vmem>>, vector<10x1x8xbf16>
    tpu.vector_store %arg8[%c0_15, %c0_16, %c0_17], %19 {strides = array<i32>} : memref<10x16x8xbf16, #tpu.memory_space<vmem>>, vector<10x1x8xbf16>,
    %c0_18 = arith.constant 0 : index
    %c7 = arith.constant 7 : index
    %c0_19 = arith.constant 0 : index
    %21 = vector.load %arg8[%c0_18, %c7, %c0_19] : memref<10x16x8xbf16, #tpu.memory_space<vmem>>, vector<10x1x8xbf16>
    %c0_20 = arith.constant 0 : index
    %c9_21 = arith.constant 9 : index
    %c0_22 = arith.constant 0 : index
    %22 = vector.load %arg8[%c0_20, %c9_21, %c0_22] : memref<10x16x8xbf16, #tpu.memory_space<vmem>>, vector<10x1x8xbf16>
    tpu.vector_store %arg8[%c0_20, %c9_21, %c0_22], %21 {strides = array<i32>} : memref<10x16x8xbf16, #tpu.memory_space<vmem>>, vector<10x1x8xbf16>,
    %cst_23 = arith.constant 0.000000e+00 : f32
    %23 = vector.broadcast %cst_23 : f32 to vector<64x8xf32>
    %c0_24 = arith.constant 0 : index
    %c0_25 = arith.constant 0 : index
    %24 = vector.load %arg5[%c0_24, %c0_25] : memref<1x8xf32, #tpu.memory_space<vmem>>, vector<1x8xf32>
    %25 = vector.broadcast %24 : vector<1x8xf32> to vector<64x8xf32>
    %26 = arith.addf %23, %25 : vector<64x8xf32>
    %c0_26 = arith.constant 0 : index
    %c0_27 = arith.constant 0 : index
    %c0_28 = arith.constant 0 : index
    %27 = vector.load %arg8[%c0_26, %c0_27, %c0_28] : memref<10x16x8xbf16, #tpu.memory_space<vmem>>, vector<8x8x8xbf16>
    %28 = vector.shape_cast %27 : vector<8x8x8xbf16> to vector<64x8xbf16>
    %c0_29 = arith.constant 0 : index
    %c0_30 = arith.constant 0 : index
    %c0_31 = arith.constant 0 : index
    %29 = vector.load %arg4[%c0_29, %c0_30, %c0_31] : memref<9x8x8xbf16, #tpu.memory_space<vmem>>, vector<1x8x8xbf16>
    %30 = vector.shape_cast %29 : vector<1x8x8xbf16> to vector<8x8xbf16>
    %cst_32 = arith.constant dense<0.000000e+00> : vector<64x8xf32>
    %31 = tpu.matmul %28, %30, %cst_32 {dimension_numbers = #tpu.dot_dimension_numbers<[1], [0], [0], [1], [0, 0, 1, 1], [], []>} : vector<64x8xbf16>, vector<8x8xbf16>, vector<64x8xf32> -> vector<64x8xf32>
    %32 = arith.addf %26, %31 : vector<64x8xf32>
    %c0_33 = arith.constant 0 : index
    %c1_34 = arith.constant 1 : index
    %c0_35 = arith.constant 0 : index
    %33 = vector.load %arg8[%c0_33, %c1_34, %c0_35] : memref<10x16x8xbf16, #tpu.memory_space<vmem>>, vector<8x8x8xbf16>
    %34 = vector.shape_cast %33 : vector<8x8x8xbf16> to vector<64x8xbf16>
    %c1_36 = arith.constant 1 : index
    %c0_37 = arith.constant 0 : index
    %c0_38 = arith.constant 0 : index
    %35 = vector.load %arg4[%c1_36, %c0_37, %c0_38] : memref<9x8x8xbf16, #tpu.memory_space<vmem>>, vector<1x8x8xbf16>
    %36 = vector.shape_cast %35 : vector<1x8x8xbf16> to vector<8x8xbf16>
    %cst_39 = arith.constant dense<0.000000e+00> : vector<64x8xf32>
    %37 = tpu.matmul %34, %36, %cst_39 {dimension_numbers = #tpu.dot_dimension_numbers<[1], [0], [0], [1], [0, 0, 1, 1], [], []>} : vector<64x8xbf16>, vector<8x8xbf16>, vector<64x8xf32> -> vector<64x8xf32>
    %38 = arith.addf %32, %37 : vector<64x8xf32>
    %c0_40 = arith.constant 0 : index
    %c2_41 = arith.constant 2 : index
    %c0_42 = arith.constant 0 : index
    %39 = vector.load %arg8[%c0_40, %c2_41, %c0_42] : memref<10x16x8xbf16, #tpu.memory_space<vmem>>, vector<8x8x8xbf16>
    %40 = vector.shape_cast %39 : vector<8x8x8xbf16> to vector<64x8xbf16>
    %c2_43 = arith.constant 2 : index
    %c0_44 = arith.constant 0 : index
    %c0_45 = arith.constant 0 : index
    %41 = vector.load %arg4[%c2_43, %c0_44, %c0_45] : memref<9x8x8xbf16, #tpu.memory_space<vmem>>, vector<1x8x8xbf16>
    %42 = vector.shape_cast %41 : vector<1x8x8xbf16> to vector<8x8xbf16>
    %cst_46 = arith.constant dense<0.000000e+00> : vector<64x8xf32>
    %43 = tpu.matmul %40, %42, %cst_46 {dimension_numbers = #tpu.dot_dimension_numbers<[1], [0], [0], [1], [0, 0, 1, 1], [], []>} : vector<64x8xbf16>, vector<8x8xbf16>, vector<64x8xf32> -> vector<64x8xf32>
    %44 = arith.addf %38, %43 : vector<64x8xf32>
    %c1_47 = arith.constant 1 : index
    %c0_48 = arith.constant 0 : index
    %c0_49 = arith.constant 0 : index
    %45 = vector.load %arg8[%c1_47, %c0_48, %c0_49] : memref<10x16x8xbf16, #tpu.memory_space<vmem>>, vector<8x8x8xbf16>
    %46 = vector.shape_cast %45 : vector<8x8x8xbf16> to vector<64x8xbf16>
    %c3 = arith.constant 3 : index
    %c0_50 = arith.constant 0 : index
    %c0_51 = arith.constant 0 : index
    %47 = vector.load %arg4[%c3, %c0_50, %c0_51] : memref<9x8x8xbf16, #tpu.memory_space<vmem>>, vector<1x8x8xbf16>
    %48 = vector.shape_cast %47 : vector<1x8x8xbf16> to vector<8x8xbf16>
    %cst_52 = arith.constant dense<0.000000e+00> : vector<64x8xf32>
    %49 = tpu.matmul %46, %48, %cst_52 {dimension_numbers = #tpu.dot_dimension_numbers<[1], [0], [0], [1], [0, 0, 1, 1], [], []>} : vector<64x8xbf16>, vector<8x8xbf16>, vector<64x8xf32> -> vector<64x8xf32>
    %50 = arith.addf %44, %49 : vector<64x8xf32>
    %c1_53 = arith.constant 1 : index
    %c1_54 = arith.constant 1 : index
    %c0_55 = arith.constant 0 : index
    %51 = vector.load %arg8[%c1_53, %c1_54, %c0_55] : memref<10x16x8xbf16, #tpu.memory_space<vmem>>, vector<8x8x8xbf16>
    %52 = vector.shape_cast %51 : vector<8x8x8xbf16> to vector<64x8xbf16>
    %c4 = arith.constant 4 : index
    %c0_56 = arith.constant 0 : index
    %c0_57 = arith.constant 0 : index
    %53 = vector.load %arg4[%c4, %c0_56, %c0_57] : memref<9x8x8xbf16, #tpu.memory_space<vmem>>, vector<1x8x8xbf16>
    %54 = vector.shape_cast %53 : vector<1x8x8xbf16> to vector<8x8xbf16>
    %cst_58 = arith.constant dense<0.000000e+00> : vector<64x8xf32>
    %55 = tpu.matmul %52, %54, %cst_58 {dimension_numbers = #tpu.dot_dimension_numbers<[1], [0], [0], [1], [0, 0, 1, 1], [], []>} : vector<64x8xbf16>, vector<8x8xbf16>, vector<64x8xf32> -> vector<64x8xf32>
    %56 = arith.addf %50, %55 : vector<64x8xf32>
    %c1_59 = arith.constant 1 : index
    %c2_60 = arith.constant 2 : index
    %c0_61 = arith.constant 0 : index
    %57 = vector.load %arg8[%c1_59, %c2_60, %c0_61] : memref<10x16x8xbf16, #tpu.memory_space<vmem>>, vector<8x8x8xbf16>
    %58 = vector.shape_cast %57 : vector<8x8x8xbf16> to vector<64x8xbf16>
    %c5 = arith.constant 5 : index
    %c0_62 = arith.constant 0 : index
    %c0_63 = arith.constant 0 : index
    %59 = vector.load %arg4[%c5, %c0_62, %c0_63] : memref<9x8x8xbf16, #tpu.memory_space<vmem>>, vector<1x8x8xbf16>
    %60 = vector.shape_cast %59 : vector<1x8x8xbf16> to vector<8x8xbf16>
    %cst_64 = arith.constant dense<0.000000e+00> : vector<64x8xf32>
    %61 = tpu.matmul %58, %60, %cst_64 {dimension_numbers = #tpu.dot_dimension_numbers<[1], [0], [0], [1], [0, 0, 1, 1], [], []>} : vector<64x8xbf16>, vector<8x8xbf16>, vector<64x8xf32> -> vector<64x8xf32>
    %62 = arith.addf %56, %61 : vector<64x8xf32>
    %c2_65 = arith.constant 2 : index
    %c0_66 = arith.constant 0 : index
    %c0_67 = arith.constant 0 : index
    %63 = vector.load %arg8[%c2_65, %c0_66, %c0_67] : memref<10x16x8xbf16, #tpu.memory_space<vmem>>, vector<8x8x8xbf16>
    %64 = vector.shape_cast %63 : vector<8x8x8xbf16> to vector<64x8xbf16>
    %c6 = arith.constant 6 : index
    %c0_68 = arith.constant 0 : index
    %c0_69 = arith.constant 0 : index
    %65 = vector.load %arg4[%c6, %c0_68, %c0_69] : memref<9x8x8xbf16, #tpu.memory_space<vmem>>, vector<1x8x8xbf16>
    %66 = vector.shape_cast %65 : vector<1x8x8xbf16> to vector<8x8xbf16>
    %cst_70 = arith.constant dense<0.000000e+00> : vector<64x8xf32>
    %67 = tpu.matmul %64, %66, %cst_70 {dimension_numbers = #tpu.dot_dimension_numbers<[1], [0], [0], [1], [0, 0, 1, 1], [], []>} : vector<64x8xbf16>, vector<8x8xbf16>, vector<64x8xf32> -> vector<64x8xf32>
    %68 = arith.addf %62, %67 : vector<64x8xf32>
    %c2_71 = arith.constant 2 : index
    %c1_72 = arith.constant 1 : index
    %c0_73 = arith.constant 0 : index
    %69 = vector.load %arg8[%c2_71, %c1_72, %c0_73] : memref<10x16x8xbf16, #tpu.memory_space<vmem>>, vector<8x8x8xbf16>
    %70 = vector.shape_cast %69 : vector<8x8x8xbf16> to vector<64x8xbf16>
    %c7_74 = arith.constant 7 : index
    %c0_75 = arith.constant 0 : index
    %c0_76 = arith.constant 0 : index
    %71 = vector.load %arg4[%c7_74, %c0_75, %c0_76] : memref<9x8x8xbf16, #tpu.memory_space<vmem>>, vector<1x8x8xbf16>
    %72 = vector.shape_cast %71 : vector<1x8x8xbf16> to vector<8x8xbf16>
    %cst_77 = arith.constant dense<0.000000e+00> : vector<64x8xf32>
    %73 = tpu.matmul %70, %72, %cst_77 {dimension_numbers = #tpu.dot_dimension_numbers<[1], [0], [0], [1], [0, 0, 1, 1], [], []>} : vector<64x8xbf16>, vector<8x8xbf16>, vector<64x8xf32> -> vector<64x8xf32>
    %74 = arith.addf %68, %73 : vector<64x8xf32>
    %c2_78 = arith.constant 2 : index
    %c2_79 = arith.constant 2 : index
    %c0_80 = arith.constant 0 : index
    %75 = vector.load %arg8[%c2_78, %c2_79, %c0_80] : memref<10x16x8xbf16, #tpu.memory_space<vmem>>, vector<8x8x8xbf16>
    %76 = vector.shape_cast %75 : vector<8x8x8xbf16> to vector<64x8xbf16>
    %c8 = arith.constant 8 : index
    %c0_81 = arith.constant 0 : index
    %c0_82 = arith.constant 0 : index
    %77 = vector.load %arg4[%c8, %c0_81, %c0_82] : memref<9x8x8xbf16, #tpu.memory_space<vmem>>, vector<1x8x8xbf16>
    %78 = vector.shape_cast %77 : vector<1x8x8xbf16> to vector<8x8xbf16>
    %cst_83 = arith.constant dense<0.000000e+00> : vector<64x8xf32>
    %79 = tpu.matmul %76, %78, %cst_83 {dimension_numbers = #tpu.dot_dimension_numbers<[1], [0], [0], [1], [0, 0, 1, 1], [], []>} : vector<64x8xbf16>, vector<8x8xbf16>, vector<64x8xf32> -> vector<64x8xf32>
    %80 = arith.addf %74, %79 : vector<64x8xf32>
    %cst_84 = arith.constant dense<0.000000e+00> : vector<8xf32>
    %81 = vector.multi_reduction <add>, %80, %cst_84 [0] : vector<64x8xf32> to vector<8xf32>
    %82 = vector.shape_cast %81 : vector<8xf32> to vector<1x8xf32>
    %cst_85 = arith.constant 1.562500e-02 : f32
    %83 = vector.broadcast %cst_85 : f32 to vector<1x8xf32>
    %84 = arith.mulf %82, %83 : vector<1x8xf32>
    %85 = vector.broadcast %84 : vector<1x8xf32> to vector<64x8xf32>
    %86 = arith.subf %80, %85 : vector<64x8xf32>
    %c0_86 = arith.constant 0 : index
    %c0_87 = arith.constant 0 : index
    %c0_88 = arith.constant 0 : index
    %87 = vector.load %arg7[%c0_86, %c0_87, %c0_88] : memref<1x2x8xf32, #tpu.memory_space<vmem>>, vector<1x1x8xf32>
    %88 = vector.shape_cast %87 : vector<1x1x8xf32> to vector<1x8xf32>
    %89 = vector.shape_cast %82 : vector<1x8xf32> to vector<1x1x8xf32>
    tpu.vector_store %arg7[%c0_86, %c0_87, %c0_88], %89 {strides = array<i32>} : memref<1x2x8xf32, #tpu.memory_space<vmem>>, vector<1x1x8xf32>,
    %90 = arith.mulf %86, %86 : vector<64x8xf32>
    %cst_89 = arith.constant dense<0.000000e+00> : vector<8xf32>
    %91 = vector.multi_reduction <add>, %90, %cst_89 [0] : vector<64x8xf32> to vector<8xf32>
    %92 = vector.shape_cast %91 : vector<8xf32> to vector<1x8xf32>
    %c0_90 = arith.constant 0 : index
    %c1_91 = arith.constant 1 : index
    %c0_92 = arith.constant 0 : index
    %93 = vector.load %arg7[%c0_90, %c1_91, %c0_92] : memref<1x2x8xf32, #tpu.memory_space<vmem>>, vector<1x1x8xf32>
    %94 = vector.shape_cast %93 : vector<1x1x8xf32> to vector<1x8xf32>
    %95 = vector.shape_cast %92 : vector<1x8xf32> to vector<1x1x8xf32>
    tpu.vector_store %arg7[%c0_90, %c1_91, %c0_92], %95 {strides = array<i32>} : memref<1x2x8xf32, #tpu.memory_space<vmem>>, vector<1x1x8xf32>,
    %96 = tpu.transpose %80, [1, 0] : vector<64x8xf32> -> vector<8x64xf32>
    %97 = arith.truncf %96 : vector<8x64xf32> to vector<8x64xbf16>
    %c0_93 = arith.constant 0 : index
    %c0_94 = arith.constant 0 : index
    %c0_95 = arith.constant 0 : index
    %98 = vector.load %arg6[%c0_93, %c0_94, %c0_95] : memref<1x8x64xbf16, #tpu.memory_space<vmem>>, vector<1x8x64xbf16>
    %99 = vector.shape_cast %98 : vector<1x8x64xbf16> to vector<8x64xbf16>
    %100 = vector.shape_cast %97 : vector<8x64xbf16> to vector<1x8x64xbf16>
    tpu.vector_store %arg6[%c0_93, %c0_94, %c0_95], %100 {strides = array<i32>} : memref<1x8x64xbf16, #tpu.memory_space<vmem>>, vector<1x8x64xbf16>,
    return
  }
  func.func @transform_0(%arg0: i32) -> (i32, i32, i32) {
    %c0_i32 = arith.constant 0 : i32
    %c0_i32_0 = arith.constant 0 : i32
    %c0_i32_1 = arith.constant 0 : i32
    return %arg0, %c0_i32, %c0_i32_0 : i32, i32, i32
  }
  func.func @transform_1(%arg0: i32) -> (i32, i32) {
    %c0_i32 = arith.constant 0 : i32
    %c0_i32_0 = arith.constant 0 : i32
    %c0_i32_1 = arith.constant 0 : i32
    return %c0_i32, %c0_i32_0 : i32, i32
  }
  func.func @transform_2(%arg0: i32) -> (i32, i32) {
    %c0_i32 = arith.constant 0 : i32
    %c0_i32_0 = arith.constant 0 : i32
    %c0_i32_1 = arith.constant 0 : i32
    return %c0_i32, %c0_i32_0 : i32, i32
  }
  func.func @transform_3(%arg0: i32) -> (i32, i32, i32) {
    %c0_i32 = arith.constant 0 : i32
    %c0_i32_0 = arith.constant 0 : i32
    %c0_i32_1 = arith.constant 0 : i32
    %c0_i32_2 = arith.constant 0 : i32
    return %c0_i32, %c0_i32_0, %c0_i32_1 : i32, i32, i32
  }
  func.func @transform_4(%arg0: i32) -> (i32, i32) {
    %c0_i32 = arith.constant 0 : i32
    %c0_i32_0 = arith.constant 0 : i32
    %c0_i32_1 = arith.constant 0 : i32
    return %c0_i32, %c0_i32_0 : i32, i32
  }
  func.func @transform_5(%arg0: i32) -> (i32, i32, i32) {
    %c0_i32 = arith.constant 0 : i32
    %c0_i32_0 = arith.constant 0 : i32
    %c0_i32_1 = arith.constant 0 : i32
    return %arg0, %c0_i32, %c0_i32_0 : i32, i32, i32
  }
  func.func @transform_6(%arg0: i32) -> (i32, i32, i32) {
    %c0_i32 = arith.constant 0 : i32
    %c0_i32_0 = arith.constant 0 : i32
    %c0_i32_1 = arith.constant 0 : i32
    return %arg0, %c0_i32, %c0_i32_0 : i32, i32, i32
  }
}

module attributes {stable_mosaic.version = 11 : i64} {
  func.func @bn_relu_out_kernel(%arg0: i32, %arg1: memref<1x8x64xbf16, #tpu.memory_space<vmem>>, %arg2: memref<8x1xf32, #tpu.memory_space<vmem>>, %arg3: memref<8x1xf32, #tpu.memory_space<vmem>>, %arg4: memref<1x8x64xf32, #tpu.memory_space<vmem>>) attributes {dimension_semantics = [#tpu.dimension_semantics<parallel>], iteration_bounds = array<i64: 2>, scalar_prefetch = 0 : i64, scratch_operands = 0 : i64, tpu.core_type = #tpu.core_type<tc>, window_params = [{transform_indices = @transform_0, window_bounds = array<i64: 1, 8, 64>}, {pipeline_mode = #tpu.pipeline_mode<synchronous>, transform_indices = @transform_1, window_bounds = array<i64: 8, 1>}, {pipeline_mode = #tpu.pipeline_mode<synchronous>, transform_indices = @transform_2, window_bounds = array<i64: 8, 1>}, {transform_indices = @transform_3, window_bounds = array<i64: 1, 8, 64>}]} {
    %c0 = arith.constant 0 : index
    %c0_0 = arith.constant 0 : index
    %c0_1 = arith.constant 0 : index
    %0 = vector.load %arg1[%c0, %c0_0, %c0_1] : memref<1x8x64xbf16, #tpu.memory_space<vmem>>, vector<1x8x64xbf16>
    %1 = vector.shape_cast %0 : vector<1x8x64xbf16> to vector<8x64xbf16>
    %2 = arith.extf %1 : vector<8x64xbf16> to vector<8x64xf32>
    %c0_2 = arith.constant 0 : index
    %c0_3 = arith.constant 0 : index
    %3 = vector.load %arg2[%c0_2, %c0_3] : memref<8x1xf32, #tpu.memory_space<vmem>>, vector<8x1xf32>
    %4 = vector.broadcast %3 : vector<8x1xf32> to vector<8x64xf32>
    %5 = arith.mulf %2, %4 : vector<8x64xf32>
    %c0_4 = arith.constant 0 : index
    %c0_5 = arith.constant 0 : index
    %6 = vector.load %arg3[%c0_4, %c0_5] : memref<8x1xf32, #tpu.memory_space<vmem>>, vector<8x1xf32>
    %7 = vector.broadcast %6 : vector<8x1xf32> to vector<8x64xf32>
    %8 = arith.addf %5, %7 : vector<8x64xf32>
    %cst = arith.constant 0.000000e+00 : f32
    %9 = vector.broadcast %cst : f32 to vector<8x64xf32>
    %10 = arith.maximumf %8, %9 : vector<8x64xf32>
    %c0_6 = arith.constant 0 : index
    %c0_7 = arith.constant 0 : index
    %c0_8 = arith.constant 0 : index
    %11 = vector.load %arg4[%c0_6, %c0_7, %c0_8] : memref<1x8x64xf32, #tpu.memory_space<vmem>>, vector<1x8x64xf32>
    %12 = vector.shape_cast %11 : vector<1x8x64xf32> to vector<8x64xf32>
    %13 = vector.shape_cast %10 : vector<8x64xf32> to vector<1x8x64xf32>
    tpu.vector_store %arg4[%c0_6, %c0_7, %c0_8], %13 {strides = array<i32>} : memref<1x8x64xf32, #tpu.memory_space<vmem>>, vector<1x8x64xf32>,
    return
  }
  func.func @transform_0(%arg0: i32) -> (i32, i32, i32) {
    %c0_i32 = arith.constant 0 : i32
    %c0_i32_0 = arith.constant 0 : i32
    %c0_i32_1 = arith.constant 0 : i32
    return %arg0, %c0_i32, %c0_i32_0 : i32, i32, i32
  }
  func.func @transform_1(%arg0: i32) -> (i32, i32) {
    %c0_i32 = arith.constant 0 : i32
    %c0_i32_0 = arith.constant 0 : i32
    %c0_i32_1 = arith.constant 0 : i32
    return %c0_i32, %c0_i32_0 : i32, i32
  }
  func.func @transform_2(%arg0: i32) -> (i32, i32) {
    %c0_i32 = arith.constant 0 : i32
    %c0_i32_0 = arith.constant 0 : i32
    %c0_i32_1 = arith.constant 0 : i32
    return %c0_i32, %c0_i32_0 : i32, i32
  }
  func.func @transform_3(%arg0: i32) -> (i32, i32, i32) {
    %c0_i32 = arith.constant 0 : i32
    %c0_i32_0 = arith.constant 0 : i32
    %c0_i32_1 = arith.constant 0 : i32
    return %arg0, %c0_i32, %c0_i32_0 : i32, i32, i32
  }
}

</mosaic_0001>

<bundles_post_ra>
// kernel: down_forward.5
= control target key start
LH: loop header
LB: loop body
LE: loop exit
PB: predicated region body
PF: predicated region fallthrough
CT: control target
= control target key end

     0   :  { %s286_s12 = smov 0   ;;  %s309_s0 = inlined_call_operand.vmem [shape: bf16[2,8,64], index: 0, kind: input, shape index: {}]   ;;  %s310_s1 = inlined_call_operand.vmem [shape: f32[8,1], index: 1, kind: input, shape index: {}]   ;;  %s311_s2 = inlined_call_operand.vmem [shape: f32[8,1], index: 2, kind: input, shape index: {}]   ;;  %s312_s3 = inlined_call_operand.vmem [shape: f32[2,8,64], index: 3, kind: output, shape index: {}]  }
   0x1 LB: > { %s238_s13 = sadd.s32 4294967295, %s263_s12   ;;  %p242_p0 = scmp.ge.s32.totalorder %s263_s12, 1  ;;  %s263_s12 = sphi %s286_s12, %s13_s12  }
   0x2   : > { %p136_p1 = scmp.lt.s32.totalorder %s263_s12, 3 }
   0x4   : > { %p137_p2 = pnand %p242_p0, %p136_p1 }
   0x5   : > { %p158_p3 = scmp.lt.s32.totalorder (!%p137_p2), %s238_s13, 1 }
   0x6   : > { %140 = sbr.rel (%p137_p2) target bundleno = 141 (0x8d), region = 32 }
   0xb   : > { %v168_v0 = vld [vmem:[%s310_s1] sm:$0xff]  ;;  %v265_v1 = vmov 0   ;;  %s314_s13 = smov (!%p158_p3, %s238_s13), 1  ;;  %vm183_vm0 = vcmask 523264  }
   0xc   : > { %256 = vset.pattern.permute.xlu0 %v265_v1  ;;  %v175_v2 = vld [vmem:[%s311_s2] sm:$0xff]  ;;  %s243_s18 = sshll.u32 %s314_s13, 2  ;;  %s244_s22 = sshll.u32 %s314_s13, 3 }
   0xd   : > { %171 = vperm.xlu0 %256, %v168_v0   ;;  %s161_s21 = scalar_lea.vmem %s309_s0, %s243_s18  ;;  %s165_s25 = scalar_lea.vmem %s312_s3, %s244_s22 }
   0xe   : > { %v166_v4 = vld [vmem:[%s161_s21] sm:$0xf] }
   0xf   : > { %v167_v5 = vunpack.c.l.bf16 %v166_v4 }
  0x15   : > { %178 = vperm.xlu0 %256, %v175_v2  }
  0x7f   : > { %v172_v3 = vpop.permute.xlu0 %171 }
  0x80   : > { %v174_v6 = vmul.f32 %v172_v3, %v167_v5 }
  0x87   : > { %v179_v7 = vpop.permute.xlu0 %178 }
  0x88   : > { %v181_v8 = vadd.f32 %v179_v7, %v174_v6 }
  0x8a   : > { %v182_v9 = vmax.f32 %v181_v8, 0.0 }
  0x8c   : > { %184 = vst.msk [vmem:[%s165_s25] sm:$0xff] %vm183_vm0, %v182_v9 }
  0x8d PF: > { %s13_s12 = sadd.s32 1, %s263_s12  }
  0x8e   : > { %p10_p4 = scmp.ge.s32.totalorder %s13_s12, 4  }
  0x90   :  { %12 = sbr.rel (!%p10_p4) target bundleno = 1 (0x1), region = 62 }

// kernel: down_forward.4
= control target key start
LH: loop header
LB: loop body
LE: loop exit
PB: predicated region body
PF: predicated region fallthrough
CT: control target
= control target key end

     0   :  { %s2230_s21 = smov 0   ;;  %s2776_s0 = inlined_call_operand.vmem [shape: bf16[2,8,64], index: 0, kind: input, shape index: {}]   ;;  %s2777_s1 = inlined_call_operand.vmem [shape: f32[8,1], index: 1, kind: input, shape index: {}]   ;;  %s2778_s2 = inlined_call_operand.vmem [shape: f32[8,1], index: 2, kind: input, shape index: {}]   ;;  %s2779_s3 = inlined_call_operand.vmem [shape: bf16[9,8,8], index: 3, kind: input, shape index: {}]   ;;  %s2780_s4 = inlined_call_operand.vmem [shape: f32[1,8], index: 4, kind: input, shape index: {}]   ;;  %s2781_s5 = inlined_call_operand.vmem [shape: bf16[2,8,64], index: 5, kind: output, shape index: {0}]   ;;  %s2782_s6 = inlined_call_operand.vmem [shape: f32[2,2,8], index: 6, kind: output, shape index: {1}]  }
   0x1 LB: > { %s2013_s22 = sadd.s32 4294967295, %s2192_s21   ;;  %p2017_p0 = scmp.ge.s32.totalorder %s2192_s21, 1  ;;  %s2192_s21 = sphi %s2230_s21, %s17_s21  }
   0x2   : > { %p214_p1 = scmp.lt.s32.totalorder %s2192_s21, 3 }
   0x4   : > { %p215_p2 = pnand %p2017_p0, %p214_p1 }
   0x5   : > { %p246_p3 = scmp.lt.s32.totalorder (!%p215_p2), %s2013_s22, 1 }
   0x6   : > { %218 = sbr.rel (%p215_p2) target bundleno = 768 (0x300), region = 40 }
   0xb   : > { %v261_v0 = vld [vmem:[%s2777_s1] sm:$0xff]  ;;  %v2194_v1 = vmov 0   ;;  %s2794_s22 = smov (!%p246_p3, %s2013_s22), 1  ;;  %vm397_vm0 = vcmask 60416   ;;  %vm398_vm1 = vsmask.f32 7938 }
   0xc   : > { %2184 = vset.pattern.permute.xlu0 %v2194_v1  ;;  %v268_v2 = vld [vmem:[%s2778_s2] sm:$0xff]  ;;  %s2018_s27 = sshll.u32 %s2794_s22, 2  ;;  %vm403_vm2 = vcmask 57344   ;;  %vm404_vm3 = vsmask.f32 256  ;;  %vm2253_vm4 = vmand %vm397_vm0, %vm398_vm1  ;;  %vm672_vm6 = vcmask 1043456  }
   0xd   : > { %264 = vperm.xlu0 %2184, %v261_v0   ;;  %s249_s30 = scalar_lea.vmem %s2776_s0, %s2018_s27  ;;  %v400_v16 = vld [vmem:[#allocation2 + $0x8] sm:$0xf]  ;;  %vm2258_vm5 = vmand %vm403_vm2, %vm404_vm3  ;;  %v406_v18 = vld [vmem:[#allocation2 + $0xc] sm:$0x1]  ;;  %vm729_vm8 = vsmask.f32 3328  ;;  %s253_s12 = scalar_lea.vmem %s2781_s5, %s2018_s27 }
   0xe   : > { %v259_v4 = vld [vmem:[%s249_s30] sm:$0xf]  ;;  %v409_v30 = vld [vmem:[#allocation2 + $0x10] sm:$0xf]  ;;  %v412_v31 = vld [vmem:[#allocation2 + $0x14] sm:$0x1] }
   0xf   : > { %v260_v5 = vunpack.c.l.bf16 %v259_v4  ;;  %v638_v25 = vld [vmem:[%s2779_s3] sm:$0xf]  ;;  %vm2272_vm7 = vmand %vm403_vm2, %vm398_vm1  ;;  %v454_v39 = vld [vmem:[#allocation2 + $0x4] sm:$0x1]  ;;  %vm659_vm9 = vcmask 64512   ;;  %vm934_vm12 = vcmask 1042432  }
  0x10   : > { %v674_v26 = vsel %vm672_vm6, %v638_v25, 0  ;;  %v451_v32 = vld [vmem:[#allocation2] sm:$0xf]  ;;  %v415_v54 = vld [vmem:[#allocation2 + $0x18] sm:$0xf]  ;;  %vm935_vm13 = vcmask 1046532  }
  0x11   : > { %683 = vmatpush.bf16.msra.mxu0 %v674_v26  ;;  %2171 = vmatpush.bf16.msra.mxu1 %v674_v26  ;;  %v418_v59 = vld [vmem:[#allocation2 + $0x1c] sm:$0x1]  ;;  %vm730_vm10 = vsmask.f32 7440  ;;  %vm2419_vm14 = vmor %vm934_vm12, %vm935_vm13  ;;  %s2020_s30 = sshll.u32 %s2794_s22, 1  ;;  %vm1927_vm15 = vcmask 519168  }
  0x12   : > { %2172 = vmatpush.bf16.msra.mxu2 %v674_v26  ;;  %2173 = vmatpush.bf16.msra.mxu3 %v674_v26  ;;  %vm2325_vm11 = vmor %vm729_vm8, %vm730_vm10  ;;  %s2750_s9 = scalar_lea.vmem %s2782_s6, %s2020_s30 }
  0x15   : > { %271 = vperm.xlu0 %2184, %v268_v2   ;;  %v2100_v2 = vld [vmem:[%s2779_s3 + $0x10] sm:$0xf] }
  0x7f   : > { %v265_v3 = vpop.permute.xlu0 %264 }
  0x80   : > { %v267_v6 = vmul.f32 %v265_v3, %v260_v5 }
  0x87   : > { %v272_v7 = vpop.permute.xlu0 %271 }
  0x88   : > { %v274_v8 = vadd.f32 %v272_v7, %v267_v6 }
  0x8a   : > { %v275_v9 = vmax.f32 %v274_v8, 0.0 }
  0x8c   : > { %276 = vxpose.xlu1.b32.start.end [1/1] (short) (narrow) %v275_v9, 64 }
 0x130   : > { %v292_v10 = vpop.trf.xlu1 }
 0x131   : > { %v308_v11 = vpack.c.bf16 %v292_v10, %v292_v10 }
 0x133   : > { %v317_v12 = vshrl.u32 %v308_v11, 16  ;;  %v320_v15 = vshll.u32 %v308_v11, 16 }
 0x135   : > { %v319_v14 = vrot.slane %v317_v12, 7  ;;  %v1272_v12 = vsel %vm672_vm6, %v2100_v2, 0 }
 0x136   : > { %1281 = vmatpush.bf16.msrb.mxu0 %v1272_v12 }
 0x137   : > { %v322_v19 = vor.u32 %v320_v15, %v319_v14  ;;  %v323_v20 = vrot.slane %v319_v14, 4 }
 0x138   : > { %v293_v21 = vpop.trf.xlu1 }
 0x139   : > { %v401_v22 = vsel %vm2253_vm4, %v322_v19, %v400_v16  ;;  %v407_v23 = vsel %vm2258_vm5, %v323_v20, %v406_v18  ;;  %v309_v24 = vpack.c.bf16 %v293_v21, %v293_v21 }
 0x13a   : > { %402 = vst [vmem:[#allocation2 + $0x8] sm:$0xf] %v401_v22 }
 0x13b   : > { %408 = vst [vmem:[#allocation2 + $0xc] sm:$0x1] %v407_v23  ;;  %v325_v27 = vshrl.u32 %v309_v24, 16  ;;  %v328_v29 = vshll.u32 %v309_v24, 16  ;;  %v421_v23 = vld [vmem:[#allocation2 + $0x20] sm:$0xf] }
 0x13c   : > { %v424_v24 = vld [vmem:[#allocation2 + $0x24] sm:$0x1] }
 0x13d   : > { %v327_v28 = vrot.slane %v325_v27, 7 }
 0x13f   : > { %v330_v33 = vor.u32 %v328_v29, %v327_v28  ;;  %v331_v34 = vrot.slane %v327_v28, 4 }
 0x140   : > { %v294_v36 = vpop.trf.xlu1 }
 0x141   : > { %v465_v37 = vld [vmem:[#allocation2 + $0x8] sm:$0x2]  ;;  %v545_v38 = vld [vmem:[#allocation2 + $0x8] sm:$0x8]  ;;  %v410_v40 = vsel %vm2253_vm4, %v330_v33, %v409_v30  ;;  %v413_v41 = vsel %vm2258_vm5, %v331_v34, %v412_v31  ;;  %v452_v42 = vsel %vm2253_vm4, %v330_v33, %v451_v32  ;;  %v310_v45 = vpack.c.bf16 %v294_v36, %v294_v36  ;;  %v517_v46 = vld [vmem:[#allocation2 + $0x8] sm:$0x1] }
 0x142   : > { %v2022_v43 = vrot.slane %v465_v37, 9  ;;  %v2032_v44 = vrot.slane %v545_v38, 11  ;;  %411 = vst [vmem:[#allocation2 + $0x10] sm:$0xf] %v410_v40  ;;  %v598_v47 = vld [vmem:[#allocation2 + $0xc] sm:$0x1]  ;;  %v455_v50 = vsel %vm2258_vm5, %v331_v34, %v454_v39 }
 0x143   : > { %414 = vst [vmem:[#allocation2 + $0x14] sm:$0x1] %v413_v41  ;;  %v333_v51 = vshrl.u32 %v310_v45, 16  ;;  %v336_v53 = vshll.u32 %v310_v45, 16 }
 0x144   : > { %v518_v48 = vsel %vm2258_vm5, %v2022_v43, %v517_v46  ;;  %v599_v49 = vsel %vm2272_vm7, %v2032_v44, %v598_v47  ;;  %453 = vst [vmem:[#allocation2] sm:$0xf] %v452_v42  ;;  %v427_v42 = vld [vmem:[#allocation2 + $0x28] sm:$0xf]  ;;  %v430_v43 = vld [vmem:[#allocation2 + $0x2c] sm:$0x1] }
 0x145   : > { %519 = vst [vmem:[#allocation2 + $0x8] sm:$0x1] %v518_v48  ;;  %v335_v52 = vrot.slane %v333_v51, 7 }
 0x146   : > { %600 = vst [vmem:[#allocation2 + $0xc] sm:$0x1] %v599_v49 }
 0x147   : > { %456 = vst [vmem:[#allocation2 + $0x4] sm:$0x1] %v455_v50  ;;  %v338_v55 = vor.u32 %v336_v53, %v335_v52  ;;  %v339_v60 = vrot.slane %v335_v52, 4 }
 0x148   : > { %v295_v56 = vpop.trf.xlu1 }
 0x149   : > { %v466_v57 = vld [vmem:[#allocation2 + $0x10] sm:$0x2]  ;;  %v546_v58 = vld [vmem:[#allocation2 + $0x10] sm:$0x8]  ;;  %v311_v61 = vpack.c.bf16 %v295_v56, %v295_v56  ;;  %v520_v63 = vld [vmem:[#allocation2 + $0x10] sm:$0x1]  ;;  %v416_v1 = vsel %vm2253_vm4, %v338_v55, %v415_v54  ;;  %v419_v16 = vsel %vm2258_vm5, %v339_v60, %v418_v59 }
 0x14a   : > { %v2023_v62 = vrot.slane %v466_v57, 9  ;;  %v2033_v0 = vrot.slane %v546_v58, 11  ;;  %v601_v5 = vld [vmem:[#allocation2 + $0x14] sm:$0x1]  ;;  %417 = vst [vmem:[#allocation2 + $0x18] sm:$0xf] %v416_v1 }
 0x14b   : > { %v464_v3 = vld [vmem:[#allocation2] sm:$0x2]  ;;  %v544_v4 = vld [vmem:[#allocation2] sm:$0x8]  ;;  %v514_v10 = vld [vmem:[#allocation2] sm:$0x1] }
 0x14c   : > { %v2021_v6 = vrot.slane %v464_v3, 9  ;;  %v521_v7 = vsel %vm2258_vm5, %v2023_v62, %v520_v63  ;;  %v2031_v8 = vrot.slane %v544_v4, 11  ;;  %v602_v9 = vsel %vm2272_vm7, %v2033_v0, %v601_v5  ;;  %v1117_v18 = vld [vmem:[#allocation2 + $0x8] sm:$0xf]  ;;  %420 = vst [vmem:[#allocation2 + $0x1c] sm:$0x1] %v419_v16 }
 0x14d   : > { %522 = vst [vmem:[#allocation2 + $0x10] sm:$0x1] %v521_v7  ;;  %v341_v11 = vshrl.u32 %v311_v61, 16  ;;  %v344_v21 = vshll.u32 %v311_v61, 16  ;;  %v1134_v22 = vshrl.u32 %v1117_v18, 16  ;;  %v1137_v29 = vshll.u32 %v1117_v18, 16 }
 0x14e   : > { %v515_v14 = vsel %vm2258_vm5, %v2021_v6, %v514_v10  ;;  %v595_v15 = vld [vmem:[#allocation2 + $0x4] sm:$0x1]  ;;  %603 = vst [vmem:[#allocation2 + $0x14] sm:$0x1] %v602_v9  ;;  %v2159_v39 = vld [vmem:[#allocation2 + $0x4] sm:$0xf0] }
 0x14f   : > { %516 = vst [vmem:[#allocation2] sm:$0x1] %v515_v14  ;;  %v596_v19 = vsel %vm2272_vm7, %v2031_v8, %v595_v15  ;;  %v343_v20 = vrot.slane %v341_v11, 7  ;;  %v1136_v34 = vrot.slane %v1134_v22, 4  ;;  %v2308_v40 = vld [vmem:[#allocation2 + $0xc] sm:$0x1] }
 0x150   : > { %597 = vst [vmem:[#allocation2 + $0x4] sm:$0x1] %v596_v19  ;;  %v296_v25 = vpop.trf.xlu1  ;;  %v1139_v49 = vrot.slane %v1137_v29, 5  ;;  %v1143_v61 = vshll.u32 %v2308_v40, 16  ;;  %v715_v18 = vld [vmem:[#allocation2 + $0x8] sm:$0xf] }
 0x151   : > { %v346_v26 = vor.u32 %v344_v21, %v343_v20  ;;  %v347_v27 = vrot.slane %v343_v20, 4  ;;  %v312_v28 = vpack.c.bf16 %v296_v25, %v296_v25  ;;  %v467_v30 = vld [vmem:[#allocation2 + $0x18] sm:$0x2]  ;;  %v547_v31 = vld [vmem:[#allocation2 + $0x18] sm:$0x8] }
 0x152   : > { %v2024_v36 = vrot.slane %v467_v30, 9  ;;  %v523_v37 = vld [vmem:[#allocation2 + $0x18] sm:$0x1]  ;;  %v2034_v41 = vrot.slane %v547_v31, 11  ;;  %v1140_v58 = vor.u32 %v1139_v49, %v1136_v34  ;;  %v1145_v16 = vrot.slane %v1143_v61, 5 }
 0x153   : > { %v422_v32 = vsel %vm2253_vm4, %v346_v26, %v421_v23  ;;  %v425_v33 = vsel %vm2258_vm5, %v347_v27, %v424_v24  ;;  %v349_v38 = vshrl.u32 %v312_v28, 16  ;;  %v352_v47 = vshll.u32 %v312_v28, 16  ;;  %v604_v54 = vld [vmem:[#allocation2 + $0x1c] sm:$0x1]  ;;  %v433_v21 = vld [vmem:[#allocation2 + $0x30] sm:$0xf] }
 0x154   : > { %423 = vst [vmem:[#allocation2 + $0x20] sm:$0xf] %v422_v32  ;;  %v1119_v44 = vld [vmem:[#allocation2 + $0x10] sm:$0xf]  ;;  %v524_v45 = vsel %vm2258_vm5, %v2024_v36, %v523_v37  ;;  %v605_v59 = vsel %vm2272_vm7, %v2034_v41, %v604_v54  ;;  %v1141_v5 = vrot.slane %v1140_v58, 4 }
 0x155   : > { %426 = vst [vmem:[#allocation2 + $0x24] sm:$0x1] %v425_v33  ;;  %v351_v46 = vrot.slane %v349_v38, 7  ;;  %v2312_v51 = vld [vmem:[#allocation2 + $0x14] sm:$0x1]  ;;  %v1148_v52 = vshrl.u32 %v1119_v44, 16 }
 0x156   : > { %v2043_v48 = vld [vmem:[#allocation2] sm:$0xf]  ;;  %525 = vst [vmem:[#allocation2 + $0x18] sm:$0x1] %v524_v45  ;;  %v1151_v53 = vshll.u32 %v1119_v44, 16  ;;  %v1157_v2 = vshll.u32 %v2312_v51, 16  ;;  %v1146_v30 = vsel %vm2325_vm11, %v1141_v5, %v1145_v16 }
 0x157   : > { %v2044_v50 = vor.u32 %v2159_v39, %v2043_v48  ;;  %v354_v55 = vor.u32 %v352_v47, %v351_v46  ;;  %v355_v56 = vrot.slane %v351_v46, 4  ;;  %v1150_v62 = vrot.slane %v1148_v52, 4  ;;  %606 = vst [vmem:[#allocation2 + $0x1c] sm:$0x1] %v605_v59  ;;  %v713_v6 = vld [vmem:[#allocation2] sm:$0xf] }
 0x158   : > { %v297_v57 = vpop.trf.xlu1  ;;  %v1153_v1 = vrot.slane %v1151_v53, 5  ;;  %v2047_v10 = vld [vmem:[#allocation2 + $0x10] sm:$0xf]  ;;  %v436_v22 = vld [vmem:[#allocation2 + $0x34] sm:$0x1]  ;;  %v1159_v25 = vrot.slane %v1157_v2, 5  ;;  %v1247_v52 = vunpack.c.l.b16 %v1146_v30 }
 0x159   : > { %2057 = vmatmul.msk.bf16.vlgmr.msra.gmra.mxu0 %vm659_vm9, %v2044_v50  ;;  %v313_v60 = vpack.c.bf16 %v297_v57, %v297_v57  ;;  %v428_v63 = vsel %vm2253_vm4, %v354_v55, %v427_v42  ;;  %v431_v0 = vsel %vm2258_vm5, %v355_v56, %v430_v43  ;;  %v2333_v26 = vld [vmem:[#allocation2 + $0x4] sm:$0x1]  ;;  %v733_v36 = vshrl.u32 %v713_v6, 16  ;;  %v2344_v43 = vld [vmem:[#allocation2 + $0xc] sm:$0x1] }
 0x15a   : > { %429 = vst [vmem:[#allocation2 + $0x28] sm:$0xf] %v428_v63  ;;  %v1154_v12 = vor.u32 %v1153_v1, %v1150_v62  ;;  %v2061_v31 = vld [vmem:[%s2779_s3 + $0x4] sm:$0xf]  ;;  %v736_v37 = vshll.u32 %v713_v6, 16  ;;  %v747_v46 = vshrl.u32 %v715_v18, 16 }
 0x15b   : > { %v468_v3 = vld [vmem:[#allocation2 + $0x20] sm:$0x2]  ;;  %v548_v4 = vld [vmem:[#allocation2 + $0x20] sm:$0x8]  ;;  %v526_v8 = vld [vmem:[#allocation2 + $0x20] sm:$0x1] }
 0x15c   : > { %v2025_v7 = vrot.slane %v468_v3, 9  ;;  %v2035_v9 = vrot.slane %v548_v4, 11  ;;  %v607_v14 = vld [vmem:[#allocation2 + $0x24] sm:$0x1]  ;;  %432 = vst [vmem:[#allocation2 + $0x2c] sm:$0x1] %v431_v0 }
 0x15d   : > { %v357_v15 = vshrl.u32 %v313_v60, 16  ;;  %v2160_v23 = vld [vmem:[#allocation2 + $0x14] sm:$0xf0]  ;;  %v1155_v24 = vrot.slane %v1154_v12, 4  ;;  %v360_v28 = vshll.u32 %v313_v60, 16  ;;  %v871_v34 = vsel %vm672_vm6, %v2061_v31, 0 }
 0x15e   : > { %v527_v19 = vsel %vm2258_vm5, %v2025_v7, %v526_v8  ;;  %v608_v20 = vsel %vm2272_vm7, %v2035_v9, %v607_v14  ;;  %v2048_v29 = vor.u32 %v2160_v23, %v2047_v10  ;;  %880 = vmatpush.bf16.msrb.mxu1 %v871_v34  ;;  %v735_v44 = vrot.slane %v733_v36, 4  ;;  %v1121_v54 = vld [vmem:[#allocation2 + $0x18] sm:$0xf]  ;;  %v442_v2 = vld [vmem:[#allocation2 + $0x3c] sm:$0x1] }
 0x15f   : > { %528 = vst [vmem:[#allocation2 + $0x20] sm:$0x1] %v527_v19  ;;  %v359_v27 = vrot.slane %v357_v15, 7  ;;  %v1160_v33 = vsel %vm2325_vm11, %v1155_v24, %v1159_v25  ;;  %v738_v45 = vrot.slane %v736_v37, 5  ;;  %v742_v53 = vshll.u32 %v2333_v26, 16 }
 0x160   : > { %609 = vst [vmem:[#allocation2 + $0x24] sm:$0x1] %v608_v20  ;;  %v298_v32 = vpop.trf.xlu1  ;;  %2058 = vmatmul.msk.bf16.vlgmr.msra.gmra.mxu1 %vm659_vm9, %v2048_v29  ;;  %v1248_v42 = vunpack.c.l.b16 %v1160_v33  ;;  %v749_v62 = vrot.slane %v747_v46, 4  ;;  %v439_v1 = vld [vmem:[#allocation2 + $0x38] sm:$0xf]  ;;  %v750_v5 = vshll.u32 %v715_v18, 16 }
 0x161   : > { %v362_v38 = vor.u32 %v360_v28, %v359_v27  ;;  %v363_v39 = vrot.slane %v359_v27, 4  ;;  %v314_v41 = vpack.c.bf16 %v298_v32, %v298_v32  ;;  %v469_v47 = vld [vmem:[#allocation2 + $0x28] sm:$0x2]  ;;  %v549_v48 = vld [vmem:[#allocation2 + $0x28] sm:$0x8]  ;;  %v739_v58 = vor.u32 %v738_v45, %v735_v44 }
 0x162   : > { %v2026_v55 = vrot.slane %v469_v47, 9  ;;  %v529_v56 = vld [vmem:[#allocation2 + $0x28] sm:$0x1]  ;;  %v2036_v57 = vrot.slane %v549_v48, 11  ;;  %v1255_v61 = vpack.c.b16 %v1248_v42, %v1247_v52  ;;  %v744_v8 = vrot.slane %v742_v53, 5 }
 0x163   : > { %v434_v49 = vsel %vm2253_vm4, %v362_v38, %v433_v21  ;;  %v437_v50 = vsel %vm2258_vm5, %v363_v39, %v436_v22  ;;  %v610_v59 = vld [vmem:[#allocation2 + $0x2c] sm:$0x1]  ;;  %v365_v60 = vshrl.u32 %v314_v41, 16  ;;  %v458_v3 = vld [vmem:[#allocation2 + $0x48] sm:$0xf]  ;;  %v740_v4 = vrot.slane %v739_v58, 4 }
 0x164   : > { %435 = vst [vmem:[#allocation2 + $0x30] sm:$0xf] %v434_v49  ;;  %v530_v63 = vsel %vm2258_vm5, %v2026_v55, %v529_v56  ;;  %v611_v0 = vsel %vm2272_vm7, %v2036_v57, %v610_v59  ;;  %v368_v7 = vshll.u32 %v314_v41, 16  ;;  %v756_v9 = vshll.u32 %v2344_v43, 16  ;;  %v461_v16 = vld [vmem:[#allocation2 + $0x4c] sm:$0x1] }
 0x165   : > { %438 = vst [vmem:[#allocation2 + $0x34] sm:$0x1] %v437_v50  ;;  %v367_v6 = vrot.slane %v365_v60, 7  ;;  %v752_v12 = vrot.slane %v750_v5, 5  ;;  %v1162_v14 = vshrl.u32 %v1121_v54, 16  ;;  %v1165_v15 = vshll.u32 %v1121_v54, 16 }
 0x166   : > { %531 = vst [vmem:[#allocation2 + $0x28] sm:$0x1] %v530_v63  ;;  %v745_v18 = vsel %vm2325_vm11, %v740_v4, %v744_v8  ;;  %v758_v23 = vrot.slane %v756_v9, 5  ;;  %v2359_v24 = vld [vmem:[#allocation2 + $0x1c] sm:$0x1]  ;;  %v939_v17 = vrot.slane %v2333_v26, 5 }
 0x167   : > { %612 = vst [vmem:[#allocation2 + $0x2c] sm:$0x1] %v611_v0  ;;  %v370_v19 = vor.u32 %v368_v7, %v367_v6  ;;  %v371_v20 = vrot.slane %v367_v6, 4  ;;  %v753_v22 = vor.u32 %v752_v12, %v749_v62  ;;  %v1123_v25 = vld [vmem:[#allocation2 + $0x20] sm:$0xf]  ;;  %v1164_v27 = vrot.slane %v1162_v14, 4 }
 0x168   : > { %v299_v10 = vpop.trf.xlu1  ;;  %v1167_v28 = vrot.slane %v1165_v15, 5  ;;  %v2367_v36 = vld [vmem:[#allocation2 + $0x24] sm:$0x1]  ;;  %v2051_v41 = vld [vmem:[#allocation2 + $0x20] sm:$0xf]  ;;  %v846_v42 = vunpack.c.l.b16 %v745_v18  ;;  %v1176_v55 = vshrl.u32 %v1123_v25, 16 }
 0x169   : > { %2101 = vmatmul.msk.bf16.vlgmr.msrb.gmra.mxu0 %vm659_vm9, %v1255_v61  ;;  %v315_v21 = vpack.c.bf16 %v299_v10, %v299_v10  ;;  %v440_v32 = vsel %vm2253_vm4, %v370_v19, %v439_v1  ;;  %v443_v33 = vsel %vm2258_vm5, %v371_v20, %v442_v2  ;;  %v459_v34 = vsel %vm2253_vm4, %v370_v19, %v458_v3  ;;  %v2074_v44 = vld [vmem:[%s2779_s3 + $0x8] sm:$0xf]  ;;  %v445_v53 = vld [vmem:[#allocation2 + $0x40] sm:$0xf]  ;;  %v448_v56 = vld [vmem:[#allocation2 + $0x44] sm:$0x1] }
 0x16a   : > { %441 = vst [vmem:[#allocation2 + $0x38] sm:$0xf] %v440_v32  ;;  %v754_v47 = vrot.slane %v753_v22, 4  ;;  %v1168_v48 = vor.u32 %v1167_v28, %v1164_v27  ;;  %v462_v52 = vsel %vm2258_vm5, %v371_v20, %v461_v16  ;;  %v1171_v60 = vshll.u32 %v2359_v24, 16  ;;  %v717_v7 = vld [vmem:[#allocation2 + $0x10] sm:$0xf] }
 0x16b   : > { %v470_v29 = vld [vmem:[#allocation2 + $0x30] sm:$0x2]  ;;  %v532_v30 = vld [vmem:[#allocation2 + $0x30] sm:$0x1]  ;;  %v550_v31 = vld [vmem:[#allocation2 + $0x30] sm:$0x8] }
 0x16c   : > { %v2027_v37 = vrot.slane %v470_v29, 9  ;;  %v2037_v38 = vrot.slane %v550_v31, 11  ;;  %v613_v39 = vld [vmem:[#allocation2 + $0x34] sm:$0x1]  ;;  %444 = vst [vmem:[#allocation2 + $0x3c] sm:$0x1] %v443_v33  ;;  %v759_v59 = vsel %vm2325_vm11, %v754_v47, %v758_v23 }
 0x16d   : > { %v373_v45 = vshrl.u32 %v315_v21, 16  ;;  %v376_v46 = vshll.u32 %v315_v21, 16  ;;  %460 = vst [vmem:[#allocation2 + $0x48] sm:$0xf] %v459_v34  ;;  %v2161_v54 = vld [vmem:[#allocation2 + $0x24] sm:$0xf0]  ;;  %v847_v61 = vunpack.c.l.b16 %v759_v59 }
 0x16e   : > { %v533_v49 = vsel %vm2258_vm5, %v2027_v37, %v532_v30  ;;  %v614_v50 = vsel %vm2272_vm7, %v2037_v38, %v613_v39  ;;  %v2052_v58 = vor.u32 %v2161_v54, %v2051_v41  ;;  %v1178_v62 = vrot.slane %v1176_v55, 4  ;;  %463 = vst [vmem:[#allocation2 + $0x4c] sm:$0x1] %v462_v52  ;;  %v2384_v8 = vld [vmem:[#allocation2 + $0x14] sm:$0x1] }
 0x16f   : > { %534 = vst [vmem:[#allocation2 + $0x30] sm:$0x1] %v533_v49  ;;  %v375_v57 = vrot.slane %v373_v45, 7  ;;  %v1179_v63 = vshll.u32 %v1123_v25, 16  ;;  %v1185_v0 = vshll.u32 %v2367_v36, 16  ;;  %v1169_v3 = vrot.slane %v1168_v48, 4 }
 0x170   : > { %615 = vst [vmem:[#allocation2 + $0x34] sm:$0x1] %v614_v50  ;;  %2059 = vmatmul.msk.bf16.vlgmr.msra.gmra.mxu2 %vm659_vm9, %v2052_v58  ;;  %v996_v4 = vsel %vm672_vm6, %v2074_v44, 0  ;;  %v854_v5 = vpack.c.b16 %v847_v61, %v846_v42  ;;  %v1173_v15 = vrot.slane %v1171_v60, 5  ;;  %v719_v19 = vld [vmem:[#allocation2 + $0x18] sm:$0xf] }
 0x171   : > { %v378_v1 = vor.u32 %v376_v46, %v375_v57  ;;  %v379_v2 = vrot.slane %v375_v57, 4  ;;  %v1181_v6 = vrot.slane %v1179_v63, 5  ;;  %1005 = vmatpush.bf16.msrb.mxu2 %v996_v4  ;;  %v471_v9 = vld [vmem:[#allocation2 + $0x38] sm:$0x2]  ;;  %v551_v10 = vld [vmem:[#allocation2 + $0x38] sm:$0x8] }
 0x172   : > { %v1187_v16 = vrot.slane %v1185_v0, 5  ;;  %v2028_v20 = vrot.slane %v471_v9, 9  ;;  %v535_v21 = vld [vmem:[#allocation2 + $0x38] sm:$0x1]  ;;  %v2038_v18 = vrot.slane %v551_v10, 11  ;;  %2062 = vmatmul.msk.bf16.vlgmr.msrb.gmra.mxu1 %vm659_vm9, %v854_v5  ;;  %v1174_v13 = vsel %vm2325_vm11, %v1169_v3, %v1173_v15 }
 0x173   : > { %v446_v12 = vsel %vm2253_vm4, %v378_v1, %v445_v53  ;;  %v449_v14 = vsel %vm2258_vm5, %v379_v2, %v448_v56  ;;  %v1182_v22 = vor.u32 %v1181_v6, %v1178_v62  ;;  %v616_v27 = vld [vmem:[#allocation2 + $0x3c] sm:$0x1]  ;;  %v761_v34 = vshrl.u32 %v717_v7, 16  ;;  %v910_v52 = vld [vmem:[#allocation2] sm:$0xe] }
 0x174   : > { %447 = vst [vmem:[#allocation2 + $0x40] sm:$0xf] %v446_v12  ;;  %v473_v23 = vld [vmem:[#allocation2 + $0x48] sm:$0x2]  ;;  %v553_v25 = vld [vmem:[#allocation2 + $0x48] sm:$0x8]  ;;  %v536_v29 = vsel %vm2258_vm5, %v2028_v20, %v535_v21  ;;  %v617_v32 = vsel %vm2272_vm7, %v2038_v18, %v616_v27  ;;  %v1249_v42 = vunpack.c.l.b16 %v1174_v13 }
 0x175   : > { %v2030_v28 = vrot.slane %v473_v23, 9  ;;  %v541_v30 = vld [vmem:[#allocation2 + $0x48] sm:$0x1]  ;;  %v2040_v31 = vrot.slane %v553_v25, 11  ;;  %450 = vst [vmem:[#allocation2 + $0x44] sm:$0x1] %v449_v14 }
 0x176   : > { %537 = vst [vmem:[#allocation2 + $0x38] sm:$0x1] %v536_v29  ;;  %v1183_v33 = vrot.slane %v1182_v22, 4  ;;  %v764_v37 = vshll.u32 %v717_v7, 16  ;;  %v770_v38 = vshll.u32 %v2384_v8, 16  ;;  %v775_v45 = vshrl.u32 %v719_v19, 16 }
 0x177   : > { %v542_v39 = vsel %vm2258_vm5, %v2030_v28, %v541_v30  ;;  %618 = vst [vmem:[#allocation2 + $0x3c] sm:$0x1] %v617_v32  ;;  %v622_v41 = vld [vmem:[#allocation2 + $0x4c] sm:$0x1]  ;;  %v2400_v44 = vld [vmem:[#allocation2 + $0x1c] sm:$0x1] }
 0x178   : > { %v778_v46 = vshll.u32 %v719_v19, 16  ;;  %543 = vst [vmem:[#allocation2 + $0x48] sm:$0x1] %v542_v39  ;;  %v623_v47 = vsel %vm2272_vm7, %v2040_v31, %v622_v41  ;;  %v1188_v48 = vsel %vm2325_vm11, %v1183_v33, %v1187_v16  ;;  %v763_v49 = vrot.slane %v761_v34, 4  ;;  %v911_v61 = vld [vmem:[#allocation2 + $0x8] sm:$0xe] }
 0x179   : > { %v766_v50 = vrot.slane %v764_v37, 5  ;;  %624 = vst [vmem:[#allocation2 + $0x4c] sm:$0x1] %v623_v47  ;;  %v1250_v53 = vunpack.c.l.b16 %v1188_v48  ;;  %v772_v54 = vrot.slane %v770_v38, 5  ;;  %v777_v55 = vrot.slane %v775_v45, 4 }
 0x17a   : > { %v780_v56 = vrot.slane %v778_v46, 5  ;;  %v2079_v2 = vld [vmem:[%s2779_s3 + $0xc] sm:$0xf]  ;;  %v1125_v3 = vld [vmem:[#allocation2 + $0x28] sm:$0xf]  ;;  %v784_v6 = vshll.u32 %v2400_v44, 16 }
 0x17b   : > { %v472_v57 = vld [vmem:[#allocation2 + $0x40] sm:$0x2]  ;;  %v538_v58 = vld [vmem:[#allocation2 + $0x40] sm:$0x1]  ;;  %v552_v59 = vld [vmem:[#allocation2 + $0x40] sm:$0x8]  ;;  %v767_v60 = vor.u32 %v766_v50, %v763_v49  ;;  %v1256_v0 = vpack.c.b16 %v1250_v53, %v1249_v42 }
 0x17c   : > { %v2029_v62 = vrot.slane %v472_v57, 9  ;;  %v2039_v63 = vrot.slane %v552_v59, 11  ;;  %v781_v1 = vor.u32 %v780_v56, %v777_v55  ;;  %v619_v4 = vld [vmem:[#allocation2 + $0x44] sm:$0x1]  ;;  %v2410_v7 = vld [vmem:[#allocation2 + $0x2c] sm:$0x1] }
 0x17d   : > { %v768_v5 = vrot.slane %v767_v60, 4  ;;  %2102 = vmatmul.msk.bf16.gmra.mxu0 %vm659_vm9, %v1256_v0  ;;  %v2055_v12 = vld [vmem:[#allocation2 + $0x30] sm:$0xf]  ;;  %v2162_v14 = vld [vmem:[#allocation2 + $0x34] sm:$0xf0]  ;;  %v2066_v16 = vrot.slane %v910_v52, 9 }
 0x17e   : > { %v539_v9 = vsel %vm2258_vm5, %v2029_v62, %v538_v58  ;;  %v620_v10 = vsel %vm2272_vm7, %v2039_v63, %v619_v4  ;;  %v782_v15 = vrot.slane %v781_v1, 4  ;;  %v2056_v19 = vor.u32 %v2162_v14, %v2055_v12  ;;  %v1127_v35 = vld [vmem:[#allocation2 + $0x30] sm:$0xf]  ;;  %v2433_v33 = vld [vmem:[#allocation2 + $0x34] sm:$0x1] }
 0x17f   : > { %540 = vst [vmem:[#allocation2 + $0x40] sm:$0x1] %v539_v9  ;;  %v773_v20 = vsel %vm2325_vm11, %v768_v5, %v772_v54  ;;  %v786_v21 = vrot.slane %v784_v6, 5  ;;  %v2067_v23 = vrot.slane %v911_v61, 9  ;;  %v943_v25 = vrot.slane %v2344_v43, 5 }
 0x180   : > { %621 = vst [vmem:[#allocation2 + $0x44] sm:$0x1] %v620_v10  ;;  %v848_v22 = vunpack.c.l.b16 %v773_v20  ;;  %v1078_v27 = vsel %vm672_vm6, %v2079_v2, 0  ;;  %2060 = vmatmul.msk.bf16.vlgmr.msra.gmra.mxu3 %vm659_vm9, %v2056_v19  ;;  %v940_v28 = vsel %vm2419_vm14, %v2066_v16, %v939_v17  ;;  %v1190_v29 = vshrl.u32 %v1125_v3, 16  ;;  %v2118_v34 = vld [vmem:[%s2779_s3 + $0x18] sm:$0xf] }
 0x181   : > { %v787_v13 = vsel %vm2325_vm11, %v782_v15, %v786_v21  ;;  %v1193_v30 = vshll.u32 %v1125_v3, 16  ;;  %v944_v26 = vsel %vm2419_vm14, %v2067_v23, %v943_v25  ;;  %v971_v32 = vunpack.c.l.b16 %v940_v28  ;;  %1087 = vmatpush.bf16.msrb.mxu3 %v1078_v27  ;;  %v721_v42 = vld [vmem:[#allocation2 + $0x20] sm:$0xf]  ;;  %v2439_v48 = vld [vmem:[#allocation2 + $0x24] sm:$0x1] }
 0x182   : > { %v849_v31 = vunpack.c.l.b16 %v787_v13  ;;  %v1199_v43 = vshll.u32 %v2410_v7, 16  ;;  %v972_v37 = vunpack.c.l.b16 %v944_v26  ;;  %v1192_v38 = vrot.slane %v1190_v29, 4  ;;  %v723_v49 = vld [vmem:[#allocation2 + $0x28] sm:$0xf]  ;;  %v2444_v57 = vld [vmem:[#allocation2 + $0x2c] sm:$0x1] }
 0x183   : > { %v1195_v39 = vrot.slane %v1193_v30, 5  ;;  %v1204_v41 = vshrl.u32 %v1127_v35, 16  ;;  %v1207_v47 = vshll.u32 %v1127_v35, 16  ;;  %v1477_v54 = vsel %vm672_vm6, %v2118_v34, 0  ;;  %v912_v3 = vld [vmem:[#allocation2 + $0x10] sm:$0xe] }
 0x184   : > { %v855_v45 = vpack.c.b16 %v849_v31, %v848_v22  ;;  %v1201_v46 = vrot.slane %v1199_v43, 5  ;;  %v979_v50 = vpack.c.b16 %v972_v37, %v971_v32  ;;  %v1213_v56 = vshll.u32 %v2433_v33, 16  ;;  %1486 = vmatpush.bf16.msra.mxu2 %v1477_v54  ;;  %v913_v10 = vld [vmem:[#allocation2 + $0x18] sm:$0xe]  ;;  %v2139_v19 = vld [vmem:[%s2779_s3 + $0x1c] sm:$0xf] }
 0x185   : > { %v1196_v52 = vor.u32 %v1195_v39, %v1192_v38  ;;  %v1206_v53 = vrot.slane %v1204_v41, 4  ;;  %v1209_v55 = vrot.slane %v1207_v47, 5  ;;  %v789_v58 = vshrl.u32 %v721_v42, 16  ;;  %v2163_v22 = vld [vmem:[#allocation2 + $0xc] sm:$0xf0] }
 0x186   : > { %2063 = vmatmul.msk.bf16.gmra.mxu1 %vm659_vm9, %v855_v45  ;;  %v792_v59 = vshll.u32 %v721_v42, 16  ;;  %2075 = vmatmul.msk.bf16.vlgmr.msrb.gmra.mxu2 %vm659_vm9, %v979_v50  ;;  %v798_v61 = vshll.u32 %v2439_v48, 16  ;;  %v803_v62 = vshrl.u32 %v723_v49, 16  ;;  %v806_v63 = vshll.u32 %v723_v49, 16  ;;  %v2113_v23 = vld [vmem:[%s2779_s3 + $0x14] sm:$0xf] }
 0x187   : > { %v1197_v60 = vrot.slane %v1196_v52, 4  ;;  %v1210_v0 = vor.u32 %v1209_v55, %v1206_v53  ;;  %v791_v1 = vrot.slane %v789_v58, 4  ;;  %v812_v9 = vshll.u32 %v2444_v57, 16  ;;  %v2082_v29 = vld [vmem:[#allocation2 + $0x8] sm:$0xf] }
 0x188   : > { %v794_v2 = vrot.slane %v792_v59, 5  ;;  %v805_v5 = vrot.slane %v803_v62, 4  ;;  %v808_v6 = vrot.slane %v806_v63, 5  ;;  %v1215_v14 = vrot.slane %v1213_v56, 5  ;;  %v1129_v43 = vld [vmem:[#allocation2 + $0x38] sm:$0xf] }
 0x189   : > { %v1202_v4 = vsel %vm2325_vm11, %v1197_v60, %v1201_v46  ;;  %v1211_v12 = vrot.slane %v1210_v0, 4  ;;  %v800_v16 = vrot.slane %v798_v61, 5  ;;  %v2068_v17 = vrot.slane %v912_v3, 9  ;;  %v1131_v39 = vld [vmem:[#allocation2 + $0x40] sm:$0xf] }
 0x18a   : > { %v795_v15 = vor.u32 %v794_v2, %v791_v1  ;;  %v1251_v20 = vunpack.c.l.b16 %v1202_v4  ;;  %v809_v21 = vor.u32 %v808_v6, %v805_v5  ;;  %v947_v35 = vrot.slane %v2384_v8, 5  ;;  %v2471_v46 = vld [vmem:[#allocation2 + $0x3c] sm:$0x1]  ;;  %v2473_v49 = vld [vmem:[#allocation2 + $0x44] sm:$0x1] }
 0x18b   : > { %v1216_v25 = vsel %vm2325_vm11, %v1211_v12, %v1215_v14  ;;  %v2069_v13 = vrot.slane %v913_v10, 9  ;;  %v951_v28 = vrot.slane %v2400_v44, 5  ;;  %v814_v26 = vrot.slane %v812_v9, 5  ;;  %v2152_v53 = vld [vmem:[%s2779_s3 + $0x20] sm:$0xf] }
 0x18c   : > { %v796_v27 = vrot.slane %v795_v15, 4  ;;  %v1252_v30 = vunpack.c.l.b16 %v1216_v25  ;;  %v810_v31 = vrot.slane %v809_v21, 4  ;;  %v1671_v32 = vsel %vm672_vm6, %v2139_v19, 0  ;;  %v725_v59 = vld [vmem:[#allocation2 + $0x30] sm:$0xf] }
 0x18d   : > { %v948_v8 = vsel %vm2419_vm14, %v2068_v17, %v947_v35  ;;  %v952_v34 = vsel %vm2419_vm14, %v2069_v13, %v951_v28  ;;  %v2083_v37 = vor.u32 %v2163_v22, %v2082_v29  ;;  %1680 = vmatpush.bf16.msra.mxu3 %v1671_v32  ;;  %v1394_v38 = vsel %vm672_vm6, %v2113_v23, 0  ;;  %v727_v0 = vld [vmem:[#allocation2 + $0x38] sm:$0xf]  ;;  %v2483_v9 = vld [vmem:[#allocation2 + $0x3c] sm:$0x1] }
 0x18e   : > { %v1257_v41 = vpack.c.b16 %v1252_v30, %v1251_v20  ;;  %v801_v44 = vsel %vm2325_vm11, %v796_v27, %v800_v16  ;;  %v815_v42 = vsel %vm2325_vm11, %v810_v31, %v814_v26  ;;  %v974_v45 = vunpack.c.l.b16 %v952_v34  ;;  %1403 = vmatpush.bf16.msra.mxu1 %v1394_v38  ;;  %v2486_v21 = vld [vmem:[#allocation2 + $0x34] sm:$0x1]  ;;  %v915_v26 = vld [vmem:[#allocation2 + $0x28] sm:$0xe]  ;;  %v2169_v18 = vld [vmem:[#allocation2 + $0x34] sm:$0xf0] }
 0x18f   : > { %v851_v47 = vunpack.c.l.b16 %v815_v42  ;;  %v1218_v50 = vshrl.u32 %v1129_v43, 16  ;;  %v1221_v52 = vshll.u32 %v1129_v43, 16  ;;  %v973_v54 = vunpack.c.l.b16 %v948_v8  ;;  %v2164_v42 = vld [vmem:[#allocation2 + $0x1c] sm:$0xf0] }
 0x190   : > { %2103 = vmatmul.msk.bf16.gmra.mxu0 %vm659_vm9, %v1257_v41  ;;  %2096 = vmatmul.msk.bf16.vlgmr.msrb.gmra.mxu3 %vm659_vm9, %v2083_v37  ;;  %v1232_v55 = vshrl.u32 %v1131_v39, 16  ;;  %v1235_v56 = vshll.u32 %v1131_v39, 16  ;;  %v1241_v58 = vshll.u32 %v2473_v49, 16  ;;  %v850_v60 = vunpack.c.l.b16 %v801_v44  ;;  %v914_v39 = vld [vmem:[#allocation2 + $0x20] sm:$0xe] }
 0x191   : > { %v1220_v61 = vrot.slane %v1218_v50, 4  ;;  %v1223_v62 = vrot.slane %v1221_v52, 5  ;;  %v1227_v63 = vshll.u32 %v2471_v46, 16  ;;  %v980_v1 = vpack.c.b16 %v974_v45, %v973_v54  ;;  %v2086_v52 = vld [vmem:[#allocation2 + $0x18] sm:$0xf] }
 0x192   : > { %v1234_v2 = vrot.slane %v1232_v55, 4  ;;  %v1237_v3 = vrot.slane %v1235_v56, 5  ;;  %v1793_v4 = vsel %vm672_vm6, %v2152_v53, 0  ;;  %v856_v5 = vpack.c.b16 %v851_v47, %v850_v60  ;;  %v1311_v55 = vld [vmem:[#allocation2 + $0x8] sm:$0xe] }
 0x193   : > { %v1224_v6 = vor.u32 %v1223_v62, %v1220_v61  ;;  %1802 = vmatpush.bf16.msra.mxu0 %v1793_v4  ;;  %v817_v10 = vshrl.u32 %v725_v59, 16  ;;  %v820_v12 = vshll.u32 %v725_v59, 16  ;;  %v1243_v15 = vrot.slane %v1241_v58, 5  ;;  %v1312_v56 = vld [vmem:[#allocation2 + $0x10] sm:$0xe] }
 0x194   : > { %v1238_v14 = vor.u32 %v1237_v3, %v1234_v2  ;;  %v831_v16 = vshrl.u32 %v727_v0, 16  ;;  %v834_v19 = vshll.u32 %v727_v0, 16  ;;  %v840_v27 = vshll.u32 %v2483_v9, 16  ;;  %v1711_v4 = vld [vmem:[#allocation2 + $0x18] sm:$0xe] }
 0x195   : > { %v1225_v20 = vrot.slane %v1224_v6, 4  ;;  %v819_v17 = vrot.slane %v817_v10, 4  ;;  %v822_v35 = vrot.slane %v820_v12, 5  ;;  %v1229_v13 = vrot.slane %v1227_v63, 5  ;;  %v2509_v63 = vld [vmem:[#allocation2 + $0x1c] sm:$0x1] }
 0x196   : > { %2064 = vmatmul.msk.bf16.gmra.mxu1 %vm659_vm9, %v856_v5  ;;  %2076 = vmatmul.msk.bf16.gmra.mxu2 %vm659_vm9, %v980_v1  ;;  %v1239_v22 = vrot.slane %v1238_v14, 4  ;;  %v833_v23 = vrot.slane %v831_v16, 4  ;;  %v836_v25 = vrot.slane %v834_v19, 5  ;;  %v826_v30 = vshll.u32 %v2486_v21, 16  ;;  %v1313_v10 = vld [vmem:[#allocation2 + $0x18] sm:$0xe] }
 0x197   : > { %v823_v28 = vor.u32 %v822_v35, %v819_v17  ;;  %v1230_v32 = vsel %vm2325_vm11, %v1225_v20, %v1229_v13  ;;  %v959_v43 = vrot.slane %v2444_v57, 5  ;;  %v842_v38 = vrot.slane %v840_v27, 5  ;;  %v1314_v19 = vld [vmem:[#allocation2 + $0x20] sm:$0xe]  ;;  %v1710_v17 = vld [vmem:[#allocation2 + $0x10] sm:$0xe] }
 0x198   : > { %v1244_v29 = vsel %vm2325_vm11, %v1239_v22, %v1243_v15  ;;  %v837_v31 = vor.u32 %v836_v25, %v833_v23  ;;  %v955_v41 = vrot.slane %v2439_v48, 5  ;;  %v2071_v44 = vrot.slane %v915_v26, 9  ;;  %v917_v26 = vld [vmem:[#allocation2 + $0x38] sm:$0xe] }
 0x199   : > { %v1254_v8 = vunpack.c.l.b16 %v1244_v29  ;;  %v824_v34 = vrot.slane %v823_v28, 4  ;;  %v1253_v45 = vunpack.c.l.b16 %v1230_v32  ;;  %v828_v47 = vrot.slane %v826_v30, 5 }
 0x19a   : > { %v838_v37 = vrot.slane %v837_v31, 4  ;;  %v1337_v53 = vrot.slane %v2308_v40, 5  ;;  %v2070_v54 = vrot.slane %v914_v39, 9  ;;  %v960_v57 = vsel %vm2419_vm14, %v2071_v44, %v959_v43 }
 0x19b   : > { %v1341_v58 = vrot.slane %v2312_v51, 5  ;;  %v1258_v59 = vpack.c.b16 %v1254_v8, %v1253_v45  ;;  %v829_v48 = vsel %vm2325_vm11, %v824_v34, %v828_v47  ;;  %v2087_v60 = vor.u32 %v2164_v42, %v2086_v52  ;;  %v2511_v51 = vld [vmem:[#allocation2 + $0x14] sm:$0x1]  ;;  %v1315_v42 = vld [vmem:[#allocation2 + $0x28] sm:$0xe] }
 0x19c   : > { %v843_v50 = vsel %vm2325_vm11, %v838_v37, %v842_v38  ;;  %v956_v62 = vsel %vm2419_vm14, %v2070_v54, %v955_v41  ;;  %v976_v40 = vunpack.c.l.b16 %v960_v57  ;;  %v2105_v0 = vrot.slane %v1311_v55, 9  ;;  %v2165_v41 = vld [vmem:[#allocation2 + $0x2c] sm:$0xf0] }
 0x19d   : > { %v853_v61 = vunpack.c.l.b16 %v843_v50  ;;  %v2106_v1 = vrot.slane %v1312_v56, 9  ;;  %v852_v2 = vunpack.c.l.b16 %v829_v48  ;;  %v975_v3 = vunpack.c.l.b16 %v956_v62  ;;  %v1713_v62 = vld [vmem:[#allocation2 + $0x28] sm:$0xe] }
 0x19e   : > { %v1338_v5 = vsel %vm2419_vm14, %v2105_v0, %v1337_v53  ;;  %v1740_v14 = vrot.slane %v2509_v63, 5  ;;  %v1736_v35 = vrot.slane %v2511_v51, 5  ;;  %v2145_v22 = vrot.slane %v1711_v4, 9  ;;  %v2090_v53 = vld [vmem:[#allocation2 + $0x28] sm:$0xf] }
 0x19f   : > { %v1342_v6 = vsel %vm2419_vm14, %v2106_v1, %v1341_v58  ;;  %v857_v12 = vpack.c.b16 %v853_v61, %v852_v2  ;;  %v1369_v15 = vunpack.c.l.b16 %v1338_v5  ;;  %v981_v20 = vpack.c.b16 %v976_v40, %v975_v3  ;;  %v2542_v58 = vld [vmem:[#allocation2 + $0x2c] sm:$0x1]  ;;  %v2547_v61 = vld [vmem:[#allocation2 + $0x24] sm:$0x1]  ;;  %v1712_v4 = vld [vmem:[#allocation2 + $0x20] sm:$0xe] }
 0x1a0   : > { %2104 = vmatmul.msk.bf16.gmra.mxu0 %vm659_vm9, %v1258_v59  ;;  %2097 = vmatmul.msk.bf16.gmra.mxu3 %vm659_vm9, %v2087_v60  ;;  %v1370_v16 = vunpack.c.l.b16 %v1342_v6  ;;  %v2107_v25 = vrot.slane %v1313_v10, 9  ;;  %v1345_v27 = vrot.slane %v2359_v24, 5  ;;  %v2108_v13 = vrot.slane %v1314_v19, 9  ;;  %v1518_v5 = vld [vmem:[#allocation2 + $0x18] sm:$0xf] }
 0x1a1   : > { %v1349_v28 = vrot.slane %v2367_v36, 5  ;;  %v2144_v29 = vrot.slane %v1710_v17, 9  ;;  %v1741_v30 = vsel %vm2419_vm14, %v2145_v22, %v1740_v14  ;;  %v967_v24 = vrot.slane %v2483_v9, 5  ;;  %v916_v36 = vld [vmem:[#allocation2 + $0x30] sm:$0xe] }
 0x1a2   : > { %v1377_v23 = vpack.c.b16 %v1370_v16, %v1369_v15  ;;  %v1346_v31 = vsel %vm2419_vm14, %v2107_v25, %v1345_v27  ;;  %v1769_v37 = vunpack.c.l.b16 %v1741_v30  ;;  %v963_v38 = vrot.slane %v2486_v21, 5  ;;  %v1316_v9 = vld [vmem:[#allocation2 + $0x30] sm:$0xe] }
 0x1a3   : > { %v1350_v32 = vsel %vm2419_vm14, %v2108_v13, %v1349_v28  ;;  %v1737_v43 = vsel %vm2419_vm14, %v2144_v29, %v1736_v35  ;;  %v1371_v8 = vunpack.c.l.b16 %v1346_v31  ;;  %v2073_v39 = vrot.slane %v917_v26, 9  ;;  %v1317_v28 = vld [vmem:[#allocation2 + $0x38] sm:$0xe] }
 0x1a4   : > { %v1372_v34 = vunpack.c.l.b16 %v1350_v32  ;;  %v1768_v45 = vunpack.c.l.b16 %v1737_v43  ;;  %v1353_v47 = vrot.slane %v2410_v7, 5  ;;  %v2072_v50 = vrot.slane %v916_v36, 9  ;;  %v2094_v29 = vld [vmem:[#allocation2 + $0x38] sm:$0xf] }
 0x1a5   : > { %v968_v52 = vsel %vm2419_vm14, %v2073_v39, %v967_v24  ;;  %v2091_v57 = vor.u32 %v2165_v41, %v2090_v53  ;;  %v2109_v55 = vrot.slane %v1315_v42, 9  ;;  %v2110_v59 = vrot.slane %v1316_v9, 9  ;;  %v2562_v24 = vld [vmem:[#allocation2 + $0x3c] sm:$0x1]  ;;  %v1715_v39 = vld [vmem:[#allocation2 + $0x38] sm:$0xe] }
 0x1a6   : > { %2065 = vmatmul.msk.bf16.gmra.mxu1 %vm659_vm9, %v857_v12  ;;  %2077 = vmatmul.msk.bf16.gmra.mxu2 %vm659_vm9, %v981_v20  ;;  %v2533_v44 = vpack.c.b16 %v1372_v34, %v1371_v8  ;;  %v1776_v54 = vpack.c.b16 %v1769_v37, %v1768_v45  ;;  %v964_v21 = vsel %vm2419_vm14, %v2072_v50, %v963_v38  ;;  %v978_v56 = vunpack.c.l.b16 %v968_v52  ;;  %v1516_v12 = vld [vmem:[#allocation2 + $0x10] sm:$0xf]  ;;  %v1318_v37 = vld [vmem:[#allocation2 + $0x40] sm:$0xe]  ;;  %v2167_v38 = vld [vmem:[#allocation2 + $0x14] sm:$0xf0] }
 0x1a7   : > { %v1354_v7 = vsel %vm2419_vm14, %v2109_v55, %v1353_v47  ;;  %v1357_v48 = vrot.slane %v2433_v33, 5  ;;  %v977_v60 = vunpack.c.l.b16 %v964_v21  ;;  %v1748_v0 = vrot.slane %v2542_v58, 5  ;;  %v2570_v47 = vld [vmem:[#allocation2 + $0x34] sm:$0x1]  ;;  %v2121_v52 = vld [vmem:[#allocation2 + $0x10] sm:$0xf] }
 0x1a8   : > { %v1373_v1 = vunpack.c.l.b16 %v1354_v7  ;;  %v1744_v6 = vrot.slane %v2547_v61, 5  ;;  %v2147_v10 = vrot.slane %v1713_v62, 9  ;;  %v2146_v14 = vrot.slane %v1712_v4, 9  ;;  %v1714_v53 = vld [vmem:[#allocation2 + $0x30] sm:$0xe] }
 0x1a9   : > { %v1358_v40 = vsel %vm2419_vm14, %v2110_v59, %v1357_v48  ;;  %v982_v3 = vpack.c.b16 %v978_v56, %v977_v60  ;;  %v1547_v16 = vshrl.u32 %v1518_v5, 16  ;;  %v1550_v19 = vshll.u32 %v1518_v5, 16  ;;  %v1522_v56 = vld [vmem:[#allocation2 + $0x28] sm:$0xf] }
 0x1aa   : > { %v1374_v2 = vunpack.c.l.b16 %v1358_v40  ;;  %v1749_v15 = vsel %vm2419_vm14, %v2147_v10, %v1748_v0  ;;  %v1745_v20 = vsel %vm2419_vm14, %v2146_v14, %v1744_v6  ;;  %v1533_v17 = vshrl.u32 %v1516_v12, 16  ;;  %v1520_v40 = vld [vmem:[#allocation2 + $0x20] sm:$0xf] }
 0x1ab   : > { %v1536_v35 = vshll.u32 %v1516_v12, 16  ;;  %v1771_v22 = vunpack.c.l.b16 %v1749_v15  ;;  %v1549_v25 = vrot.slane %v1547_v16, 4  ;;  %v1552_v27 = vrot.slane %v1550_v19, 5 }
 0x1ac   : > { %v2554_v33 = vpack.c.b16 %v1374_v2, %v1373_v1  ;;  %v1770_v13 = vunpack.c.l.b16 %v1745_v20  ;;  %v1535_v30 = vrot.slane %v1533_v17, 4  ;;  %v1361_v26 = vrot.slane %v2471_v46, 5 }
 0x1ad   : > { %v1538_v31 = vrot.slane %v1536_v35, 5  ;;  %v1553_v8 = vor.u32 %v1552_v27, %v1549_v25  ;;  %v2111_v34 = vrot.slane %v1317_v28, 9  ;;  %v1365_v36 = vrot.slane %v2473_v49, 5  ;;  %v2592_v25 = vld [vmem:[#allocation2 + $0x44] sm:$0x1] }
 0x1ae   : > { %v1777_v32 = vpack.c.b16 %v1771_v22, %v1770_v13  ;;  %v1556_v42 = vshll.u32 %v2509_v63, 16  ;;  %v2112_v45 = vrot.slane %v1318_v37, 9  ;;  %v1756_v50 = vrot.slane %v2562_v24, 5  ;;  %v1716_v27 = vld [vmem:[#allocation2 + $0x40] sm:$0xe] }
 0x1af   : > { %v1539_v41 = vor.u32 %v1538_v31, %v1535_v30  ;;  %v1362_v46 = vsel %vm2419_vm14, %v2111_v34, %v1361_v26  ;;  %v1542_v9 = vshll.u32 %v2511_v51, 16  ;;  %v2149_v55 = vrot.slane %v1715_v39, 9  ;;  %v2168_v13 = vld [vmem:[#allocation2 + $0x24] sm:$0xf0]  ;;  %v2125_v30 = vld [vmem:[#allocation2 + $0x20] sm:$0xf] }
 0x1b0   : > { %2153 = vmatmul.msk.bf16.vlgmr.msra.gmra.mxu0 %vm659_vm9, %v1776_v54  ;;  %2098 = vmatmul.msk.bf16.gmra.mxu3 %vm659_vm9, %v2091_v57  ;;  %v1554_v54 = vrot.slane %v1553_v8, 4  ;;  %v1366_v49 = vsel %vm2419_vm14, %v2112_v45, %v1365_v36  ;;  %v2122_v57 = vor.u32 %v2167_v38, %v2121_v52  ;;  %v1375_v21 = vunpack.c.l.b16 %v1362_v46  ;;  %v2595_v31 = vld [vmem:[#allocation2 + $0x4c] sm:$0x1]  ;;  %v1526_v36 = vld [vmem:[#allocation2 + $0x38] sm:$0xf] }
 0x1b1   : > { %v1376_v63 = vunpack.c.l.b16 %v1366_v49  ;;  %v1752_v7 = vrot.slane %v2570_v47, 5  ;;  %v1540_v59 = vrot.slane %v1539_v41, 4  ;;  %v1558_v48 = vrot.slane %v1556_v42, 5  ;;  %v1524_v46 = vld [vmem:[#allocation2 + $0x30] sm:$0xf] }
 0x1b2   : > { %v2148_v60 = vrot.slane %v1714_v53, 9  ;;  %v1757_v51 = vsel %vm2419_vm14, %v2149_v55, %v1756_v50  ;;  %v1544_v0 = vrot.slane %v1542_v9, 5  ;;  %v1575_v2 = vshrl.u32 %v1522_v56, 16 }
 0x1b3   : > { %v2582_v62 = vpack.c.b16 %v1376_v63, %v1375_v21  ;;  %v1559_v1 = vsel %vm2325_vm11, %v1554_v54, %v1558_v48  ;;  %v1561_v5 = vshrl.u32 %v1520_v40, 16  ;;  %v1564_v6 = vshll.u32 %v1520_v40, 16 }
 0x1b4   : > { %v1545_v4 = vsel %vm2325_vm11, %v1540_v59, %v1544_v0  ;;  %v1773_v10 = vunpack.c.l.b16 %v1757_v51  ;;  %v1647_v12 = vunpack.c.l.b16 %v1559_v1  ;;  %v1577_v14 = vrot.slane %v1575_v2, 4 }
 0x1b5   : > { %v1646_v19 = vunpack.c.l.b16 %v1545_v4  ;;  %v1563_v20 = vrot.slane %v1561_v5, 4  ;;  %v1566_v17 = vrot.slane %v1564_v6, 5  ;;  %v1570_v26 = vshll.u32 %v2547_v61, 16  ;;  %v1528_v6 = vld [vmem:[#allocation2 + $0x40] sm:$0xf] }
 0x1b6   : > { %2114 = vmatmul.msk.bf16.vlgmr.msra.gmra.mxu1 %vm659_vm9, %v1377_v23  ;;  %2078 = vmatmul.msk.bf16.gmra.mxu2 %vm659_vm9, %v982_v3  ;;  %v2166_v23 = vld [vmem:[#allocation2 + $0x3c] sm:$0xf0]  ;;  %v1578_v3 = vshll.u32 %v1522_v56, 16  ;;  %v1760_v8 = vrot.slane %v2592_v25, 5  ;;  %v2126_v37 = vor.u32 %v2168_v13, %v2125_v30  ;;  %v1764_v38 = vrot.slane %v2595_v31, 5 }
 0x1b7   : > { %v2095_v43 = vor.u32 %v2166_v23, %v2094_v29  ;;  %v1654_v22 = vpack.c.b16 %v1647_v12, %v1646_v19  ;;  %v1567_v28 = vor.u32 %v1566_v17, %v1563_v20  ;;  %v1584_v29 = vshll.u32 %v2542_v58, 16 }
 0x1b8   : > { %v1580_v15 = vrot.slane %v1578_v3, 5  ;;  %v1572_v42 = vrot.slane %v1570_v26, 5  ;;  %v1603_v50 = vshrl.u32 %v1526_v36, 16  ;;  %v1606_v52 = vshll.u32 %v1526_v36, 16  ;;  %v2129_v3 = vld [vmem:[#allocation2 + $0x30] sm:$0xf] }
 0x1b9   : > { %v1568_v39 = vrot.slane %v1567_v28, 4  ;;  %v1586_v41 = vrot.slane %v1584_v29, 5  ;;  %v1589_v9 = vshrl.u32 %v1524_v46, 16  ;;  %v1592_v54 = vshll.u32 %v1524_v46, 16 }
 0x1ba   : > { %v1581_v23 = vor.u32 %v1580_v15, %v1577_v14  ;;  %v1605_v55 = vrot.slane %v1603_v50, 4  ;;  %v1608_v21 = vrot.slane %v1606_v52, 5  ;;  %v1612_v1 = vshll.u32 %v2562_v24, 16  ;;  %v1530_v15 = vld [vmem:[#allocation2 + $0x48] sm:$0xf] }
 0x1bb   : > { %v1573_v53 = vsel %vm2325_vm11, %v1568_v39, %v1572_v42  ;;  %v1591_v59 = vrot.slane %v1589_v9, 4  ;;  %v1594_v48 = vrot.slane %v1592_v54, 5  ;;  %v2130_v5 = vor.u32 %v2169_v18, %v2129_v3 }
 0x1bc   : > { %v1582_v34 = vrot.slane %v1581_v23, 4  ;;  %v1648_v56 = vunpack.c.l.b16 %v1573_v53  ;;  %v1609_v40 = vor.u32 %v1608_v21, %v1605_v55  ;;  %v1614_v12 = vrot.slane %v1612_v1, 5 }
 0x1bd   : > { %v1595_v0 = vor.u32 %v1594_v48, %v1591_v59  ;;  %v1617_v19 = vshrl.u32 %v1528_v6, 16  ;;  %v1620_v20 = vshll.u32 %v1528_v6, 16  ;;  %v1631_v17 = vshrl.u32 %v1530_v15, 16 }
 0x1be   : > { %v1587_v45 = vsel %vm2325_vm11, %v1582_v34, %v1586_v41  ;;  %v1610_v4 = vrot.slane %v1609_v40, 4  ;;  %v1640_v39 = vshll.u32 %v2595_v31, 16 }
 0x1bf   : > { %v1622_v23 = vrot.slane %v1620_v20, 5  ;;  %v1633_v28 = vrot.slane %v1631_v17, 4 }
 0x1c0   : > { %2154 = vmatmul.msk.bf16.gmra.mxu0 %vm659_vm9, %v1777_v32  ;;  %2099 = vmatmul.msk.bf16.gmra.mxu3 %vm659_vm9, %v2095_v43  ;;  %v1717_v32 = vld [vmem:[#allocation2 + $0x48] sm:$0xe]  ;;  %v2150_v43 = vrot.slane %v1716_v27, 9  ;;  %v1615_v24 = vsel %vm2325_vm11, %v1610_v4, %v1614_v12 }
 0x1c1   : > { %v2151_v58 = vrot.slane %v1717_v32, 9  ;;  %v1626_v32 = vshll.u32 %v2592_v25, 16 }
 0x1c2   : > { %v1761_v61 = vsel %vm2419_vm14, %v2150_v43, %v1760_v8  ;;  %v2133_v8 = vld [vmem:[#allocation2 + $0x40] sm:$0xf] }
 0x1c3   : > { %v1774_v49 = vunpack.c.l.b16 %v1761_v61  ;;  %v1642_v61 = vrot.slane %v1640_v39, 5 }
 0x1c6   : > { %2115 = vmatmul.msk.bf16.gmra.mxu1 %vm659_vm9, %v2533_v44  ;;  %2135 = vmatmul.msk.bf16.vlgmr.msra.gmra.mxu2 %vm659_vm9, %v2122_v57  ;;  %v1753_v44 = vsel %vm2419_vm14, %v2148_v60, %v1752_v7  ;;  %v1649_v57 = vunpack.c.l.b16 %v1587_v45 }
 0x1c7   : > { %v1772_v16 = vunpack.c.l.b16 %v1753_v44  ;;  %v1598_v44 = vshll.u32 %v2570_v47, 16 }
 0x1c8   : > { %v1655_v51 = vpack.c.b16 %v1649_v57, %v1648_v56 }
 0x1c9   : > { %v1778_v35 = vpack.c.b16 %v1773_v10, %v1772_v16  ;;  %v1596_v10 = vrot.slane %v1595_v0, 4  ;;  %v1600_v16 = vrot.slane %v1598_v44, 5 }
 0x1cb   : > { %v1601_v47 = vsel %vm2325_vm11, %v1596_v10, %v1600_v16 }
 0x1cc   : > { %v1650_v27 = vunpack.c.l.b16 %v1601_v47  ;;  %v2680_v47 = vld [vmem:[%s2780_s4] ss:$0 sm:$0xff] }
 0x1d0   : > { %2155 = vmatmul.msk.bf16.gmra.mxu0 %vm659_vm9, %v1778_v35  ;;  %2140 = vmatmul.msk.bf16.vlgmr.msra.gmra.mxu3 %vm659_vm9, %v1654_v22  ;;  %v1634_v35 = vshll.u32 %v1530_v15, 16  ;;  %v1651_v22 = vunpack.c.l.b16 %v1615_v24 }
 0x1d2   : > { %v1636_v29 = vrot.slane %v1634_v35, 5  ;;  %v1656_v30 = vpack.c.b16 %v1651_v22, %v1650_v27 }
 0x1d4   : > { %v1637_v34 = vor.u32 %v1636_v29, %v1633_v28 }
 0x1d6   : > { %2116 = vmatmul.msk.bf16.gmra.mxu1 %vm659_vm9, %v2554_v33  ;;  %2136 = vmatmul.msk.bf16.gmra.mxu2 %vm659_vm9, %v2126_v37  ;;  %v1765_v33 = vsel %vm2419_vm14, %v2151_v58, %v1764_v38  ;;  %v2616_v2 = vpop.f32.mrf.mxu0  ;;  %v2170_v37 = vld [vmem:[#allocation2 + $0x44] sm:$0xf0]  ;;  %v1628_v38 = vrot.slane %v1626_v32, 5  ;;  %v1638_v42 = vrot.slane %v1637_v34, 4 }
 0x1d7   : > { %v1775_v63 = vunpack.c.l.b16 %v1765_v33  ;;  %v2134_v41 = vor.u32 %v2170_v37, %v2133_v8  ;;  %v705_v22 = vadd.f32 %v2680_v47, %v2616_v2 }
 0x1d8   : > { %v1643_v50 = vsel %vm2325_vm11, %v1638_v42, %v1642_v61 }
 0x1d9   : > { %v1779_v60 = vpack.c.b16 %v1775_v63, %v1774_v49  ;;  %v1653_v33 = vunpack.c.l.b16 %v1643_v50 }
 0x1dd   : > { %v2611_v7 = vpop.f32.mrf.mxu1 }
 0x1de   : > { %v2628_v13 = vpop.f32.mrf.mxu0 }
 0x1df   : > { %v706_v32 = vadd.f32 %v2680_v47, %v2628_v13 }
 0x1e0   : > { %2156 = vmatmul.msk.bf16.gmra.mxu0 %vm659_vm9, %v1779_v60  ;;  %2141 = vmatmul.msk.bf16.gmra.mxu3 %vm659_vm9, %v1655_v51 }
 0x1e5   : > { %v2622_v14 = vpop.f32.mrf.mxu1 }
 0x1e6   : > { %2117 = vmatmul.msk.bf16.gmra.mxu1 %vm659_vm9, %v2582_v62  ;;  %2137 = vmatmul.msk.bf16.gmra.mxu2 %vm659_vm9, %v2130_v5  ;;  %v1619_v62 = vrot.slane %v1617_v19, 4  ;;  %v1283_v46 = vpop.f32.mrf.mxu0 }
 0x1e8   : > { %v1623_v26 = vor.u32 %v1622_v23, %v1619_v62 }
 0x1ea   : > { %v1624_v36 = vrot.slane %v1623_v26, 4 }
 0x1ec   : > { %v1629_v25 = vsel %vm2325_vm11, %v1624_v36, %v1628_v38 }
 0x1ed   : > { %v1652_v52 = vunpack.c.l.b16 %v1629_v25  ;;  %v707_v25 = vadd.f32 %v2680_v47, %v2611_v7 }
 0x1ee   : > { %v1285_v31 = vpop.f32.mrf.mxu0 }
 0x1ef   : > { %v882_v43 = vpop.f32.mrf.mxu1  ;;  %v1657_v53 = vpack.c.b16 %v1653_v33, %v1652_v52 }
 0x1f0   : > { %2142 = vmatmul.msk.bf16.gmra.mxu3 %vm659_vm9, %v1656_v30  ;;  %v902_v62 = vadd.f32 %v882_v43, %v705_v22 }
 0x1f3   : > { %v2633_v58 = vpop.f32.mrf.mxu2 }
 0x1f6   : > { %2138 = vmatmul.msk.bf16.gmra.mxu2 %vm659_vm9, %v2134_v41 }
 0x1f7   : > { %v884_v45 = vpop.f32.mrf.mxu1 }
 0x1f8   : > { %v903_v8 = vadd.f32 %v884_v45, %v706_v32 }
 0x1fa   : > { %v2645_v55 = vpop.f32.mrf.mxu0 }
 0x1fb   : > { %v2640_v9 = vpop.f32.mrf.mxu2 }
 0x200   : > { %2143 = vmatmul.msk.bf16.gmra.mxu3 %vm659_vm9, %v1657_v53 }
 0x202   : > { %v2649_v59 = vpop.f32.mrf.mxu0 }
 0x203   : > { %v887_v54 = vpop.f32.mrf.mxu1  ;;  %v2643_v49 = vpop.f32.mrf.mxu3 }
 0x204   : > { %v904_v50 = vadd.f32 %v887_v54, %v707_v25 }
 0x209   : > { %v1007_v57 = vpop.f32.mrf.mxu2 }
 0x20a   : > { %v1027_v27 = vadd.f32 %v1007_v57, %v902_v62 }
 0x20b   : > { %v2647_v21 = vpop.f32.mrf.mxu3  ;;  %v889_v63 = vpop.f32.mrf.mxu1 }
 0x20d   : > { %v2653_v40 = vpop.f32.mrf.mxu0 }
 0x211   : > { %v1009_v56 = vpop.f32.mrf.mxu2 }
 0x212   : > { %v1028_v37 = vadd.f32 %v1009_v56, %v903_v8 }
 0x213   : > { %v1089_v11 = vpop.f32.mrf.mxu3  ;;  %v2651_v48 = vpop.f32.mrf.mxu1 }
 0x214   : > { %v1109_v30 = vadd.f32 %v1089_v11, %v1027_v27 }
 0x215   : > { %v2657_v3 = vpop.f32.mrf.mxu0 }
 0x216   : > { %v1303_v34 = vadd.f32 %v1283_v46, %v1109_v30 }
 0x219   : > { %v1012_v60 = vpop.f32.mrf.mxu2 }
 0x21a   : > { %v1029_v53 = vadd.f32 %v1012_v60, %v904_v50 }
 0x21b   : > { %v1091_v51 = vpop.f32.mrf.mxu3  ;;  %v2655_v18 = vpop.f32.mrf.mxu1 }
 0x21c   : > { %v1110_v41 = vadd.f32 %v1091_v51, %v1028_v37  ;;  %v708_v51 = vadd.f32 %v2680_v47, %v2622_v14 }
 0x21d   : > { %v2665_v10 = vpop.f32.mrf.mxu0 }
 0x21e   : > { %v1304_v52 = vadd.f32 %v1285_v31, %v1110_v41  ;;  %v905_v7 = vadd.f32 %v889_v63, %v708_v51 }
 0x221   : > { %v1014_v0 = vpop.f32.mrf.mxu2 }
 0x222   : > { %v1030_v62 = vadd.f32 %v1014_v0, %v905_v7 }
 0x223   : > { %v1094_v1 = vpop.f32.mrf.mxu3  ;;  %v2661_v4 = vpop.f32.mrf.mxu1 }
 0x224   : > { %v1111_v45 = vadd.f32 %v1094_v1, %v1029_v53 }
 0x225   : > { %v2675_v19 = vpop.f32.mrf.mxu0 }
 0x226   : > { %v1305_v54 = vadd.f32 %v2645_v55, %v1111_v45 }
 0x229   : > { %v2659_v44 = vpop.f32.mrf.mxu2 }
 0x22b   : > { %v1096_v5 = vpop.f32.mrf.mxu3  ;;  %v2669_v15 = vpop.f32.mrf.mxu1 }
 0x22c   : > { %v1112_v27 = vadd.f32 %v1096_v5, %v1030_v62 }
 0x22d   : > { %v1804_v23 = vpop.f32.mrf.mxu0 }
 0x22e   : > { %v1306_v63 = vadd.f32 %v2649_v59, %v1112_v27 }
 0x231   : > { %v2663_v6 = vpop.f32.mrf.mxu2 }
 0x233   : > { %v2667_v12 = vpop.f32.mrf.mxu3  ;;  %v1405_v20 = vpop.f32.mrf.mxu1 }
 0x234   : > { %v1425_v36 = vadd.f32 %v1405_v20, %v1303_v34 }
 0x235   : > { %v1806_v38 = vpop.f32.mrf.mxu0 }
 0x239   : > { %v2671_v16 = vpop.f32.mrf.mxu2 }
 0x23b   : > { %v2673_v24 = vpop.f32.mrf.mxu3  ;;  %v1407_v28 = vpop.f32.mrf.mxu1 }
 0x23c   : > { %v1426_v13 = vadd.f32 %v1407_v28, %v1304_v52 }
 0x23d   : > { %v1809_v56 = vpop.f32.mrf.mxu0 }
 0x241   : > { %v2682_v17 = vpop.f32.mrf.mxu2 }
 0x243   : > { %v2684_v35 = vpop.f32.mrf.mxu3  ;;  %v1410_v2 = vpop.f32.mrf.mxu1 }
 0x244   : > { %v1427_v60 = vadd.f32 %v1410_v2, %v1305_v54 }
 0x245   : > { %v1811_v14 = vpop.f32.mrf.mxu0 }
 0x249   : > { %v1488_v29 = vpop.f32.mrf.mxu2 }
 0x24a   : > { %v1508_v42 = vadd.f32 %v1488_v29, %v1425_v36  ;;  %v709_v29 = vadd.f32 %v2680_v47, %v2633_v58 }
 0x24b   : > { %v2688_v26 = vpop.f32.mrf.mxu3  ;;  %v1412_v22 = vpop.f32.mrf.mxu1 }
 0x24c   : > { %v906_v32 = vadd.f32 %v2651_v48, %v709_v29  ;;  %v1428_v34 = vadd.f32 %v1412_v22, %v1306_v63  ;;  %v710_v48 = vadd.f32 %v2680_v47, %v2640_v9 }
 0x24e   : > { %v1031_v0 = vadd.f32 %v2659_v44, %v906_v32 }
 0x250   : > { %v1113_v37 = vadd.f32 %v2667_v12, %v1031_v0 }
 0x251   : > { %v1490_v39 = vpop.f32.mrf.mxu2 }
 0x252   : > { %v1509_v57 = vadd.f32 %v1490_v39, %v1426_v13  ;;  %v1307_v12 = vadd.f32 %v2653_v40, %v1113_v37  ;;  %v711_v40 = vadd.f32 %v2680_v47, %v2643_v49  ;;  %v712_v49 = vadd.f32 %v2680_v47, %v2647_v21 }
 0x253   : > { %v1682_v43 = vpop.f32.mrf.mxu3  ;;  %v1415_v8 = vpop.f32.mrf.mxu1 }
 0x254   : > { %v1702_v61 = vadd.f32 %v1682_v43, %v1508_v42  ;;  %v907_v42 = vadd.f32 %v2655_v18, %v710_v48  ;;  %v1814_v43 = vpop.f32.mrf.mxu0  ;;  %v1429_v50 = vadd.f32 %v1415_v8, %v1307_v12 }
 0x256   : > { %v2694_v33 = vadd.f32 %v1804_v23, %v1702_v61  ;;  %v1032_v61 = vadd.f32 %v2663_v6, %v907_v42 }
 0x258   : > { %1894 = vxpose.xlu1.b32.start [1/8] (short) (narrow) %v2694_v33, 8  ;;  %v1832_v59 = vsel %vm659_vm9, %v2694_v33, 0.0  ;;  %v1114_v13 = vadd.f32 %v2673_v24, %v1032_v61 }
 0x259   : > { %v1493_v46 = vpop.f32.mrf.mxu2 }
 0x25a   : > { %v1510_v1 = vadd.f32 %v1493_v46, %v1427_v60  ;;  %v1308_v6 = vadd.f32 %v2657_v3, %v1114_v13  ;;  %v909_v3 = vadd.f32 %v2669_v15, %v712_v49 }
 0x25b   : > { %v1684_v11 = vpop.f32.mrf.mxu3  ;;  %v1417_v52 = vpop.f32.mrf.mxu1 }
 0x25c   : > { %v1703_v20 = vadd.f32 %v1684_v11, %v1509_v57  ;;  %v1816_v7 = vpop.f32.mrf.mxu0 }
 0x25e   : > { %v2700_v31 = vadd.f32 %v1806_v38, %v1703_v20  ;;  %v1430_v20 = vadd.f32 %v1417_v52, %v1308_v6 }
 0x260   : > { %1895 = vxpose.xlu1.b32.cont [2/8] (short) (narrow) %v2700_v31, 8  ;;  %v1833_v58 = vsel %vm659_vm9, %v2700_v31, 0.0 }
 0x261   : > { %v1495_v23 = vpop.f32.mrf.mxu2  ;;  %v1834_v41 = vadd.f32 %v1833_v58, %v1832_v59 }
 0x262   : > { %v1511_v36 = vadd.f32 %v1495_v23, %v1428_v34 }
 0x263   : > { %v1687_v28 = vpop.f32.mrf.mxu3  ;;  %v1420_v60 = vpop.f32.mrf.mxu1 }
 0x264   : > { %v1704_v30 = vadd.f32 %v1687_v28, %v1510_v1  ;;  %v1034_v28 = vadd.f32 %v2682_v17, %v909_v3  ;;  %v1819_v63 = vpop.f32.mrf.mxu0 }
 0x266   : > { %v2707_v55 = vadd.f32 %v1809_v56, %v1704_v30  ;;  %v908_v56 = vadd.f32 %v2661_v4, %v711_v40 }
 0x268   : > { %1896 = vxpose.xlu1.b32.cont [3/8] (short) (narrow) %v2707_v55, 8  ;;  %v1835_v44 = vsel %vm659_vm9, %v2707_v55, 0.0  ;;  %v1033_v51 = vadd.f32 %v2671_v16, %v908_v56 }
 0x269   : > { %v1498_v5 = vpop.f32.mrf.mxu2  ;;  %v1836_v25 = vadd.f32 %v1835_v44, %v1834_v41 }
 0x26a   : > { %v1512_v46 = vadd.f32 %v1498_v5, %v1429_v50  ;;  %v1115_v54 = vadd.f32 %v2684_v35, %v1033_v51 }
 0x26b   : > { %v1689_v38 = vpop.f32.mrf.mxu3  ;;  %v1422_v47 = vpop.f32.mrf.mxu1 }
 0x26c   : > { %v1705_v39 = vadd.f32 %v1689_v38, %v1511_v36  ;;  %v1309_v16 = vadd.f32 %v2665_v10, %v1115_v54  ;;  %v1821_v38 = vpop.f32.mrf.mxu0 }
 0x26e   : > { %v2722_v2 = vadd.f32 %v1811_v14, %v1705_v39  ;;  %v1431_v29 = vadd.f32 %v1420_v60, %v1309_v16  ;;  %v1116_v14 = vadd.f32 %v2688_v26, %v1034_v28 }
 0x270   : > { %v1837_v9 = vsel %vm659_vm9, %v2722_v2, 0.0  ;;  %1897 = vxpose.xlu1.b32.cont [4/8] (short) (narrow) %v2722_v2, 8  ;;  %v1310_v0 = vadd.f32 %v2675_v19, %v1116_v14 }
 0x271   : > { %v1838_v53 = vadd.f32 %v1837_v9, %v1836_v25  ;;  %v1500_v18 = vpop.f32.mrf.mxu2 }
 0x272   : > { %v1513_v62 = vadd.f32 %v1500_v18, %v1430_v20  ;;  %v1432_v10 = vadd.f32 %v1422_v47, %v1310_v0 }
 0x273   : > { %v1692_v45 = vpop.f32.mrf.mxu3 }
 0x274   : > { %v1706_v57 = vadd.f32 %v1692_v45, %v1512_v46 }
 0x276   : > { %v1828_v11 = vadd.f32 %v1814_v43, %v1706_v57 }
 0x278   : > { %v1839_v22 = vsel %vm659_vm9, %v1828_v11, 0.0  ;;  %1898 = vxpose.xlu1.b32.cont [5/8] (short) (narrow) %v1828_v11, 8 }
 0x279   : > { %v1840_v24 = vadd.f32 %v1839_v22, %v1838_v53  ;;  %v1503_v27 = vpop.f32.mrf.mxu2 }
 0x27a   : > { %v1514_v32 = vadd.f32 %v1503_v27, %v1431_v29 }
 0x27b   : > { %v1694_v23 = vpop.f32.mrf.mxu3 }
 0x27c   : > { %v1707_v4 = vadd.f32 %v1694_v23, %v1513_v62 }
 0x27e   : > { %v1829_v1 = vadd.f32 %v1816_v7, %v1707_v4 }
 0x280   : > { %v1841_v30 = vsel %vm659_vm9, %v1829_v1, 0.0  ;;  %1899 = vxpose.xlu1.b32.cont [6/8] (short) (narrow) %v1829_v1, 8 }
 0x281   : > { %v1842_v35 = vadd.f32 %v1841_v30, %v1840_v24  ;;  %v1505_v34 = vpop.f32.mrf.mxu2 }
 0x282   : > { %v1515_v37 = vadd.f32 %v1505_v34, %v1432_v10 }
 0x283   : > { %v1697_v8 = vpop.f32.mrf.mxu3 }
 0x284   : > { %v1708_v21 = vadd.f32 %v1697_v8, %v1514_v32 }
 0x286   : > { %v1830_v15 = vadd.f32 %v1819_v63, %v1708_v21 }
 0x288   : > { %v1843_v17 = vsel %vm659_vm9, %v1830_v15, 0.0  ;;  %1900 = vxpose.xlu1.b32.cont [7/8] (short) (narrow) %v1830_v15, 8 }
 0x289   : > { %v1844_v5 = vadd.f32 %v1843_v17, %v1842_v35 }
 0x28b   : > { %v1699_v36 = vpop.f32.mrf.mxu3 }
 0x28c   : > { %v1709_v58 = vadd.f32 %v1699_v36, %v1515_v37 }
 0x28e   : > { %v1831_v26 = vadd.f32 %v1821_v38, %v1709_v58 }
 0x290   : > { %v1845_v48 = vsel %vm659_vm9, %v1831_v26, 0.0  ;;  %1901 = vxpose.xlu1.b32.end [8/8] (short) (narrow) %v1831_v26, 8 }
 0x291   : > { %v1846_v59 = vadd.f32 %v1845_v48, %v1844_v5 }
 0x293   : > { %v1847_v44 = vrot.slane %v1846_v59, 4 }
 0x295   : > { %v1848_v39 = vadd.f32 %v1847_v44, %v1846_v59 }
 0x297   : > { %v1849_v19 = vrot.slane %v1848_v39, 2 }
 0x299   : > { %v1850_v41 = vadd.f32 %v1849_v19, %v1848_v39 }
 0x29b   : > { %v1851_v42 = vrot.slane %v1850_v41, 1 }
 0x29d   : > { %v1852_v12 = vadd.f32 %v1851_v42, %v1850_v41 }
 0x29f   : > { %v1853_v43 = vmul.f32 0.015625, %v1852_v12  ;;  %1863 = vst.msk [vmem:[%s2750_s9] sm:$0x1] %vm403_vm2, %v1852_v12 }
 0x2a1   : > { %v1854_v25 = vsub.f32 %v2694_v33, %v1853_v43  ;;  %v1855_v61 = vsub.f32 %v2700_v31, %v1853_v43  ;;  %v1856_v50 = vsub.f32 %v2707_v55, %v1853_v43  ;;  %v1857_v9 = vsub.f32 %v2722_v2, %v1853_v43 }
 0x2a2   : > { %v1858_v52 = vsub.f32 %v1828_v11, %v1853_v43  ;;  %v1859_v53 = vsub.f32 %v1829_v1, %v1853_v43  ;;  %v1860_v13 = vsub.f32 %v1830_v15, %v1853_v43  ;;  %v1861_v46 = vsub.f32 %v1831_v26, %v1853_v43 }
 0x2a3   : > { %v1864_v18 = vmul.f32 %v1854_v25, %v1854_v25  ;;  %v1865_v45 = vmul.f32 %v1855_v61, %v1855_v61  ;;  %v1866_v40 = vmul.f32 %v1856_v50, %v1856_v50  ;;  %v1867_v57 = vmul.f32 %v1857_v9, %v1857_v9 }
 0x2a4   : > { %v1868_v33 = vmul.f32 %v1858_v52, %v1858_v52  ;;  %v1869_v55 = vmul.f32 %v1859_v53, %v1859_v53  ;;  %v1870_v22 = vmul.f32 %v1860_v13, %v1860_v13  ;;  %v1871_v54 = vmul.f32 %v1861_v46, %v1861_v46 }
 0x2a5   : > { %v1872_v56 = vsel %vm659_vm9, %v1864_v18, 0.0  ;;  %v1873_v6 = vsel %vm659_vm9, %v1865_v45, 0.0  ;;  %v1875_v31 = vsel %vm659_vm9, %v1866_v40, 0.0  ;;  %v1877_v2 = vsel %vm659_vm9, %v1867_v57, 0.0 }
 0x2a6   : > { %v1874_v51 = vadd.f32 %v1873_v6, %v1872_v56  ;;  %v1879_v7 = vsel %vm659_vm9, %v1868_v33, 0.0  ;;  %v1881_v62 = vsel %vm659_vm9, %v1869_v55, 0.0  ;;  %v1883_v23 = vsel %vm659_vm9, %v1870_v22, 0.0 }
 0x2a7   : > { %v1885_v4 = vsel %vm659_vm9, %v1871_v54, 0.0 }
 0x2a8   : > { %v1876_v20 = vadd.f32 %v1875_v31, %v1874_v51 }
 0x2aa   : > { %v1878_v11 = vadd.f32 %v1877_v2, %v1876_v20 }
 0x2ac   : > { %v1880_v24 = vadd.f32 %v1879_v7, %v1878_v11 }
 0x2ae   : > { %v1882_v60 = vadd.f32 %v1881_v62, %v1880_v24 }
 0x2b0   : > { %v1884_v49 = vadd.f32 %v1883_v23, %v1882_v60 }
 0x2b2   : > { %v1886_v27 = vadd.f32 %v1885_v4, %v1884_v49 }
 0x2b4   : > { %v1887_v3 = vrot.slane %v1886_v27, 4 }
 0x2b6   : > { %v1888_v16 = vadd.f32 %v1887_v3, %v1886_v27 }
 0x2b8   : > { %v1889_v1 = vrot.slane %v1888_v16, 2 }
 0x2ba   : > { %v1890_v28 = vadd.f32 %v1889_v1, %v1888_v16 }
 0x2bc   : > { %v1891_v29 = vrot.slane %v1890_v28, 1 }
 0x2be   : > { %v1892_v30 = vadd.f32 %v1891_v29, %v1890_v28 }
 0x2c0   : > { %1893 = vst.msk [vmem:[%s2750_s9 + $0x1] sm:$0x1] %vm403_vm2, %v1892_v30 }
 0x2fc   : > { %v1910_v35 = vpop.trf.xlu1 }
 0x2fd   : > { %v1926_v14 = vpack.c.bf16 %v1910_v35, %v1910_v35 }
 0x2ff   : > { %1928 = vst.msk [vmem:[%s253_s12] sm:$0xf] %vm1927_vm15, %v1926_v14 }
 0x300 PF: > { %s17_s21 = sadd.s32 1, %s2192_s21  }
 0x301   : > { %p14_p4 = scmp.ge.s32.totalorder %s17_s21, 4  }
 0x303   :  { %16 = sbr.rel (!%p14_p4) target bundleno = 1 (0x1), region = 93 }

// kernel: down_forward.3
= control target key start
LH: loop header
LB: loop body
LE: loop exit
PB: predicated region body
PF: predicated region fallthrough
CT: control target
= control target key end

     0   :  { %s2967_s15 = smov 0   ;;  %s3600_s0 = inlined_call_operand.vmem [shape: f32[2,4,256], index: 0, kind: input, shape index: {}]   ;;  %s3601_s1 = inlined_call_operand.vmem [shape: bf16[9,4,8], index: 1, kind: input, shape index: {}]   ;;  %s3602_s2 = inlined_call_operand.vmem [shape: f32[1,8], index: 2, kind: input, shape index: {}]   ;;  %s3603_s3 = inlined_call_operand.vmem [shape: bf16[2,8,64], index: 3, kind: output, shape index: {0}]   ;;  %s3604_s4 = inlined_call_operand.vmem [shape: f32[2,2,8], index: 4, kind: output, shape index: {1}]  }
   0x1 LB: > { %s2615_s16 = sadd.s32 4294967295, %s2940_s15   ;;  %p2619_p0 = scmp.ge.s32.totalorder %s2940_s15, 1  ;;  %s2940_s15 = sphi %s2967_s15, %s15_s15  }
   0x2   : > { %p165_p1 = scmp.lt.s32.totalorder %s2940_s15, 3 }
   0x4   : > { %p166_p2 = pnand %p2619_p0, %p165_p1 }
   0x5   : > { %p194_p3 = scmp.lt.s32.totalorder (!%p166_p2), %s2615_s16, 1 }
   0x6   : > { %169 = sbr.rel (%p166_p2) target bundleno = 761 (0x2f9), region = 32 }
   0xb   : > { %s3616_s16 = smov (!%p194_p3, %s2615_s16), 1  ;;  %vm857_vm0 = vcmask 1042434   ;;  %vm860_vm1 = vcmask 1043459   ;;  %vm863_vm2 = vcmask 1044484   ;;  %vm1004_vm3 = vcmask 24576  }
   0xc   : > { %s2826_s17 = sshll.u32 %s3616_s16, 3  ;;  %vm1005_vm4 = vsmask.f32 256  ;;  %vm866_vm5 = vcmask 1045509   ;;  %vm869_vm6 = vcmask 1046534   ;;  %vm872_vm7 = vcmask 1047559  }
   0xd   : > { %s198_s20 = scalar_lea.vmem %s3600_s0, %s2826_s17  ;;  %vm998_vm8 = vcmask 27648   ;;  %vm999_vm9 = vsmask.f32 7938  ;;  %vm2999_vm10 = vmand %vm1004_vm3, %vm1005_vm4  ;;  %vm1273_vm13 = vcmask 1041408   ;;  %vm1260_vm14 = vcmask 31744   ;;  %s2623_s17 = sshll.u32 %s3616_s16, 1 }
   0xe   : > { %v208_v0 = vld [vmem:[%s198_s20] sm:$0xff]  ;;  %vm3010_vm11 = vmand %vm998_vm8, %vm999_vm9  ;;  %vm1330_vm15 = vsmask.f32 3328  ;;  %s3575_s20 = scalar_lea.vmem %s3604_s4, %s2623_s17  ;;  %s2622_s21 = sshll.u32 %s3616_s16, 2 }
   0xf   : > { %210 = vst [vmem:[#allocation1] ss:$2 sm:$0xff] %v208_v0  ;;  %vm3029_vm12 = vmand %vm1004_vm3, %vm999_vm9  ;;  %vm1331_vm3 = vsmask.f32 7440  ;;  %s202_s24 = scalar_lea.vmem %s3603_s3, %s2622_s21 }
  0x16   : > { %v211_v1 = vld.sshfl [vmem:[#allocation1] sm:$0xff pattern:$0x75316420]  ;;  %v212_v2 = vld.sshfl [vmem:[#allocation1 + $0x8] sm:$0xff pattern:$0x75316420] }
  0x17   : > { %v2851_v3 = vpack.i.bf16 %v212_v2, %v211_v1 }
  0x19   : > { %2852 = vxpose.xlu0.b32.start.end [1/1] (short) %v2851_v3, 128 }
  0xbd   : > { %v2853_v4 = vpop.trf.xlu0 }
  0xbe   : > { %v2857_v6 = vunpack.i.h.bf16 %v2853_v4  ;;  %v2854_v7 = vunpack.i.l.bf16 %v2853_v4 }
  0xc5   : > { %v2981_v5 = vpop.trf.xlu0 }
  0xc6   : > { %v2862_v13 = vunpack.i.h.bf16 %v2981_v5  ;;  %v2859_v14 = vunpack.i.l.bf16 %v2981_v5 }
  0xcd   : > { %v2863_v8 = vpop.trf.xlu0 }
  0xce   : > { %v2867_v9 = vunpack.i.h.bf16 %v2863_v8  ;;  %v2864_v10 = vunpack.i.l.bf16 %v2863_v8 }
  0xd0   : > { %v279_v11 = vmax.f32 %v2854_v7, %v2864_v10  ;;  %v287_v12 = vmax.f32 %v2857_v6, %v2867_v9 }
  0xd2   : > { %v311_v15 = vrot.slane %v279_v11, 2  ;;  %v312_v16 = vrot.slane %v279_v11, 4  ;;  %v313_v17 = vrot.slane %v279_v11, 6  ;;  %v335_v18 = vrot.slane %v287_v12, 2 }
  0xd3   : > { %v336_v19 = vrot.slane %v287_v12, 4  ;;  %v337_v20 = vrot.slane %v287_v12, 6  ;;  %v2624_v21 = vrot.slane %v279_v11, 9  ;;  %v2656_v22 = vrot.slane %v287_v12, 9 }
  0xd4   : > { %v2625_v23 = vrot.slane %v311_v15, 9  ;;  %v2626_v24 = vrot.slane %v312_v16, 9  ;;  %v2627_v25 = vrot.slane %v313_v17, 9  ;;  %v2657_v26 = vrot.slane %v335_v18, 9 }
  0xd5   : > { %v2658_v27 = vrot.slane %v336_v19, 9  ;;  %v2659_v28 = vrot.slane %v337_v20, 9  ;;  %v599_v29 = vmax.f32 %v279_v11, %v2624_v21  ;;  %v631_v30 = vmax.f32 %v287_v12, %v2656_v22  ;;  %v2868_v31 = vpop.trf.xlu0 }
  0xd6   : > { %v600_v32 = vmax.f32 %v311_v15, %v2625_v23  ;;  %v601_v33 = vmax.f32 %v312_v16, %v2626_v24  ;;  %v602_v34 = vmax.f32 %v313_v17, %v2627_v25  ;;  %v632_v35 = vmax.f32 %v335_v18, %v2657_v26 }
  0xd7   : > { %v633_v36 = vmax.f32 %v336_v19, %v2658_v27  ;;  %v634_v37 = vmax.f32 %v337_v20, %v2659_v28  ;;  %v663_v38 = vpack.c.bf16 %v599_v29, %v599_v29  ;;  %v695_v39 = vpack.c.bf16 %v631_v30, %v631_v30 }
  0xd8   : > { %v664_v40 = vpack.c.bf16 %v600_v32, %v600_v32  ;;  %v665_v41 = vpack.c.bf16 %v601_v33, %v601_v33  ;;  %v666_v42 = vpack.c.bf16 %v602_v34, %v602_v34  ;;  %v696_v43 = vpack.c.bf16 %v632_v35, %v632_v35 }
  0xd9   : > { %v697_v44 = vpack.c.bf16 %v633_v36, %v633_v36  ;;  %v698_v45 = vpack.c.bf16 %v634_v37, %v634_v37  ;;  %v791_v46 = vunpack.c.l.b16 %v663_v38  ;;  %v823_v47 = vunpack.c.l.b16 %v695_v39 }
  0xda   : > { %v792_v48 = vunpack.c.l.b16 %v664_v40  ;;  %v793_v49 = vunpack.c.l.b16 %v665_v41  ;;  %v794_v50 = vunpack.c.l.b16 %v666_v42  ;;  %v824_v51 = vunpack.c.l.b16 %v696_v43 }
  0xdb   : > { %v825_v52 = vunpack.c.l.b16 %v697_v44  ;;  %v826_v53 = vunpack.c.l.b16 %v698_v45  ;;  %v855_v54 = vrot.slane %v791_v46, 7  ;;  %v913_v55 = vrot.slane %v823_v47, 7  ;;  %v1031_v47 = vld [vmem:[#allocation2 + $0x2c] sm:$0x1] }
  0xdc   : > { %v856_v56 = vrot.slane %v792_v48, 6  ;;  %v859_v57 = vrot.slane %v793_v49, 5  ;;  %v862_v58 = vrot.slane %v794_v50, 4  ;;  %v914_v59 = vrot.slane %v824_v51, 6 }
  0xdd   : > { %v916_v60 = vrot.slane %v825_v52, 5  ;;  %v918_v61 = vrot.slane %v826_v53, 4  ;;  %v2872_v62 = vunpack.i.h.bf16 %v2868_v31  ;;  %v2985_v63 = vpop.trf.xlu0  ;;  %v2869_v2 = vunpack.i.l.bf16 %v2868_v31  ;;  %v1007_v52 = vld [vmem:[#allocation2 + $0xc] sm:$0x1] }
  0xde   : > { %v858_v0 = vsel %vm857_vm0, %v856_v56, %v855_v54  ;;  %v915_v1 = vsel %vm857_vm0, %v914_v59, %v913_v55 }
  0xdf   : > { %v861_v3 = vsel %vm860_vm1, %v859_v57, %v858_v0  ;;  %v917_v4 = vsel %vm860_vm1, %v916_v60, %v915_v1  ;;  %v288_v6 = vmax.f32 %v2862_v13, %v2872_v62  ;;  %v280_v9 = vmax.f32 %v2859_v14, %v2869_v2  ;;  %v1028_v2 = vld [vmem:[#allocation2 + $0x28] sm:$0xf] }
  0xe0   : > { %v864_v7 = vsel %vm863_vm2, %v862_v58, %v861_v3  ;;  %v919_v8 = vsel %vm863_vm2, %v918_v61, %v917_v4 }
  0xe1   : > { %v338_v10 = vrot.slane %v288_v6, 2  ;;  %v339_v11 = vrot.slane %v288_v6, 4  ;;  %v340_v12 = vrot.slane %v288_v6, 6  ;;  %v2660_v15 = vrot.slane %v288_v6, 9 }
  0xe2   : > { %v314_v16 = vrot.slane %v280_v9, 2  ;;  %v315_v17 = vrot.slane %v280_v9, 4  ;;  %v316_v18 = vrot.slane %v280_v9, 6  ;;  %v2628_v19 = vrot.slane %v280_v9, 9 }
  0xe3   : > { %v2661_v13 = vrot.slane %v338_v10, 9  ;;  %v2662_v20 = vrot.slane %v339_v11, 9  ;;  %v2663_v21 = vrot.slane %v340_v12, 9  ;;  %v635_v22 = vmax.f32 %v288_v6, %v2660_v15 }
  0xe4   : > { %v2629_v23 = vrot.slane %v314_v16, 9  ;;  %v2630_v24 = vrot.slane %v315_v17, 9  ;;  %v2631_v5 = vrot.slane %v316_v18, 9  ;;  %v603_v14 = vmax.f32 %v280_v9, %v2628_v19 }
  0xe5   : > { %v636_v25 = vmax.f32 %v338_v10, %v2661_v13  ;;  %v637_v26 = vmax.f32 %v339_v11, %v2662_v20  ;;  %v638_v27 = vmax.f32 %v340_v12, %v2663_v21  ;;  %v699_v28 = vpack.c.bf16 %v635_v22, %v635_v22  ;;  %v2995_v29 = vpop.trf.xlu0 }
  0xe6   : > { %v604_v30 = vmax.f32 %v314_v16, %v2629_v23  ;;  %v605_v31 = vmax.f32 %v315_v17, %v2630_v24  ;;  %v606_v32 = vmax.f32 %v316_v18, %v2631_v5  ;;  %v667_v33 = vpack.c.bf16 %v603_v14, %v603_v14 }
  0xe7   : > { %v700_v34 = vpack.c.bf16 %v636_v25, %v636_v25  ;;  %v701_v35 = vpack.c.bf16 %v637_v26, %v637_v26  ;;  %v702_v36 = vpack.c.bf16 %v638_v27, %v638_v27  ;;  %v827_v37 = vunpack.c.l.b16 %v699_v28 }
  0xe8   : > { %v668_v38 = vpack.c.bf16 %v604_v30, %v604_v30  ;;  %v669_v39 = vpack.c.bf16 %v605_v31, %v605_v31  ;;  %v670_v40 = vpack.c.bf16 %v606_v32, %v606_v32  ;;  %v795_v41 = vunpack.c.l.b16 %v667_v33 }
  0xe9   : > { %v828_v42 = vunpack.c.l.b16 %v700_v34  ;;  %v829_v43 = vunpack.c.l.b16 %v701_v35  ;;  %v830_v44 = vunpack.c.l.b16 %v702_v36  ;;  %v920_v45 = vrot.slane %v827_v37, 3 }
  0xea   : > { %v796_v48 = vunpack.c.l.b16 %v668_v38  ;;  %v797_v49 = vunpack.c.l.b16 %v669_v39  ;;  %v798_v50 = vunpack.c.l.b16 %v670_v40  ;;  %v865_v51 = vrot.slane %v795_v41, 3 }
  0xeb   : > { %v921_v53 = vsel %vm866_vm5, %v920_v45, %v919_v8  ;;  %v922_v54 = vrot.slane %v828_v42, 2  ;;  %v924_v55 = vrot.slane %v829_v43, 1  ;;  %v974_v56 = vpack.c.b16 %v830_v44, %v830_v44 }
  0xec   : > { %v867_v57 = vsel %vm866_vm5, %v865_v51, %v864_v7  ;;  %v868_v58 = vrot.slane %v796_v48, 2  ;;  %v871_v59 = vrot.slane %v797_v49, 1  ;;  %v966_v60 = vpack.c.b16 %v798_v50, %v798_v50  ;;  %v1001_v7 = vld [vmem:[#allocation2 + $0x8] sm:$0xf] }
  0xed   : > { %v923_v61 = vsel %vm869_vm6, %v922_v54, %v921_v53  ;;  %v1032_v62 = vsel %vm2999_vm10, %v974_v56, %v1031_v47  ;;  %v2883_v0 = vpop.trf.xlu0  ;;  %v2877_v11 = vunpack.i.h.bf16 %v2985_v63  ;;  %v2874_v16 = vunpack.i.l.bf16 %v2985_v63 }
  0xee   : > { %v870_v3 = vsel %vm869_vm6, %v868_v58, %v867_v57  ;;  %v925_v4 = vsel %vm872_vm7, %v924_v55, %v923_v61  ;;  %v1008_v6 = vsel %vm2999_vm10, %v966_v60, %v1007_v52  ;;  %1033 = vst [vmem:[#allocation2 + $0x2c] sm:$0x1] %v1032_v62  ;;  %v2887_v12 = vunpack.i.h.bf16 %v2883_v0 }
  0xef   : > { %v873_v8 = vsel %vm872_vm7, %v871_v59, %v870_v3  ;;  %v973_v9 = vpack.c.b16 %v925_v4, %v925_v4  ;;  %1009 = vst [vmem:[#allocation2 + $0xc] sm:$0x1] %v1008_v6  ;;  %v2884_v17 = vunpack.i.l.bf16 %v2883_v0  ;;  %v2882_v13 = vunpack.i.h.bf16 %v2995_v29 }
  0xf0   : > { %v965_v10 = vpack.c.b16 %v873_v8, %v873_v8  ;;  %v289_v19 = vmax.f32 %v2877_v11, %v2887_v12  ;;  %v2879_v20 = vunpack.i.l.bf16 %v2995_v29 }
  0xf1   : > { %v1029_v15 = vsel %vm3010_vm11, %v973_v9, %v1028_v2  ;;  %v281_v21 = vmax.f32 %v2874_v16, %v2884_v17 }
  0xf2   : > { %v1002_v18 = vsel %vm3010_vm11, %v965_v10, %v1001_v7  ;;  %1030 = vst [vmem:[#allocation2 + $0x28] sm:$0xf] %v1029_v15  ;;  %v341_v22 = vrot.slane %v289_v19, 2  ;;  %v342_v23 = vrot.slane %v289_v19, 4  ;;  %v343_v24 = vrot.slane %v289_v19, 6 }
  0xf3   : > { %1003 = vst [vmem:[#allocation2 + $0x8] sm:$0xf] %v1002_v18  ;;  %v2664_v5 = vrot.slane %v289_v19, 9  ;;  %v317_v14 = vrot.slane %v281_v21, 2  ;;  %v318_v25 = vrot.slane %v281_v21, 4  ;;  %v319_v26 = vrot.slane %v281_v21, 6 }
  0xf4   : > { %v2632_v63 = vrot.slane %v281_v21, 9  ;;  %v2665_v28 = vrot.slane %v341_v22, 9  ;;  %v2666_v30 = vrot.slane %v342_v23, 9  ;;  %v2667_v31 = vrot.slane %v343_v24, 9 }
  0xf5   : > { %v2888_v27 = vpop.trf.xlu0  ;;  %v639_v32 = vmax.f32 %v289_v19, %v2664_v5  ;;  %v2633_v33 = vrot.slane %v317_v14, 9  ;;  %v2634_v34 = vrot.slane %v318_v25, 9  ;;  %v2635_v35 = vrot.slane %v319_v26, 9  ;;  %v1211_v54 = vld [vmem:[#allocation2 + $0x2c] sm:$0x1] }
  0xf6   : > { %v607_v36 = vmax.f32 %v281_v21, %v2632_v63  ;;  %v640_v37 = vmax.f32 %v341_v22, %v2665_v28  ;;  %v641_v38 = vmax.f32 %v342_v23, %v2666_v30  ;;  %v642_v39 = vmax.f32 %v343_v24, %v2667_v31  ;;  %v1199_v58 = vld [vmem:[#allocation2 + $0xc] sm:$0x1] }
  0xf7   : > { %v703_v40 = vpack.c.bf16 %v639_v32, %v639_v32  ;;  %v608_v43 = vmax.f32 %v317_v14, %v2633_v33  ;;  %v609_v44 = vmax.f32 %v318_v25, %v2634_v34  ;;  %v610_v45 = vmax.f32 %v319_v26, %v2635_v35 }
  0xf8   : > { %v671_v47 = vpack.c.bf16 %v607_v36, %v607_v36  ;;  %v704_v50 = vpack.c.bf16 %v640_v37, %v640_v37  ;;  %v705_v51 = vpack.c.bf16 %v641_v38, %v641_v38  ;;  %v706_v52 = vpack.c.bf16 %v642_v39, %v642_v39 }
  0xf9   : > { %v1150_v42 = vld [vmem:[#allocation2 + $0x28] sm:$0x8]  ;;  %v672_v55 = vpack.c.bf16 %v608_v43, %v608_v43  ;;  %v673_v56 = vpack.c.bf16 %v609_v44, %v609_v44  ;;  %v674_v57 = vpack.c.bf16 %v610_v45, %v610_v45  ;;  %v831_v61 = vunpack.c.l.b16 %v703_v40 }
  0xfa   : > { %v1146_v48 = vld [vmem:[#allocation2 + $0x8] sm:$0x8]  ;;  %v2703_v49 = vrot.slane %v1150_v42, 11  ;;  %v799_v60 = vunpack.c.l.b16 %v671_v47  ;;  %v832_v62 = vunpack.c.l.b16 %v704_v50  ;;  %v833_v7 = vunpack.c.l.b16 %v705_v51 }
  0xfb   : > { %v2699_v53 = vrot.slane %v1146_v48, 11  ;;  %v800_v2 = vunpack.c.l.b16 %v672_v55  ;;  %v801_v3 = vunpack.c.l.b16 %v673_v56  ;;  %v802_v4 = vunpack.c.l.b16 %v674_v57 }
  0xfc   : > { %v1212_v59 = vsel %vm3029_vm12, %v2703_v49, %v1211_v54  ;;  %v834_v8 = vunpack.c.l.b16 %v706_v52  ;;  %v874_v9 = vrot.slane %v799_v60, 7  ;;  %v926_v10 = vrot.slane %v831_v61, 7 }
  0xfd   : > { %v1200_v0 = vsel %vm3029_vm12, %v2699_v53, %v1199_v58  ;;  %1213 = vst [vmem:[#allocation2 + $0x2c] sm:$0x1] %v1212_v59  ;;  %v3037_v6 = vpop.trf.xlu0  ;;  %v875_v11 = vrot.slane %v800_v2, 6  ;;  %v877_v12 = vrot.slane %v801_v3, 5  ;;  %v879_v15 = vrot.slane %v802_v4, 4 }
  0xfe   : > { %1201 = vst [vmem:[#allocation2 + $0xc] sm:$0x1] %v1200_v0  ;;  %v927_v16 = vrot.slane %v832_v62, 6  ;;  %v929_v17 = vrot.slane %v833_v7, 5  ;;  %v931_v18 = vrot.slane %v834_v8, 4  ;;  %v2892_v19 = vunpack.i.h.bf16 %v2888_v27 }
  0xff   : > { %v876_v21 = vsel %vm857_vm0, %v875_v11, %v874_v9  ;;  %v2889_v23 = vunpack.i.l.bf16 %v2888_v27  ;;  %v1037_v2 = vld [vmem:[#allocation2 + $0x34] sm:$0x1]  ;;  %v1055_v11 = vld [vmem:[#allocation2 + $0x4] sm:$0x1] }
 0x100   : > { %v928_v22 = vsel %vm857_vm0, %v927_v16, %v926_v10  ;;  %v878_v24 = vsel %vm860_vm1, %v877_v12, %v876_v21  ;;  %v290_v14 = vmax.f32 %v2882_v13, %v2892_v19  ;;  %v1013_v10 = vld [vmem:[#allocation2 + $0x14] sm:$0x1] }
 0x101   : > { %v930_v5 = vsel %vm860_vm1, %v929_v17, %v928_v22  ;;  %v880_v25 = vsel %vm863_vm2, %v879_v15, %v878_v24  ;;  %v282_v63 = vmax.f32 %v2879_v20, %v2889_v23 }
 0x102   : > { %v932_v26 = vsel %vm863_vm2, %v931_v18, %v930_v5  ;;  %v344_v28 = vrot.slane %v290_v14, 2  ;;  %v345_v30 = vrot.slane %v290_v14, 4  ;;  %v346_v31 = vrot.slane %v290_v14, 6 }
 0x103   : > { %v2668_v32 = vrot.slane %v290_v14, 9  ;;  %v320_v33 = vrot.slane %v282_v63, 2  ;;  %v321_v27 = vrot.slane %v282_v63, 4  ;;  %v322_v34 = vrot.slane %v282_v63, 6 }
 0x104   : > { %v2636_v35 = vrot.slane %v282_v63, 9  ;;  %v2669_v37 = vrot.slane %v344_v28, 9  ;;  %v2670_v38 = vrot.slane %v345_v30, 9  ;;  %v2671_v13 = vrot.slane %v346_v31, 9 }
 0x105   : > { %v3049_v36 = vpop.trf.xlu0  ;;  %v643_v39 = vmax.f32 %v290_v14, %v2668_v32  ;;  %v2637_v40 = vrot.slane %v320_v33, 9  ;;  %v2638_v42 = vrot.slane %v321_v27, 9  ;;  %v2639_v43 = vrot.slane %v322_v34, 9  ;;  %v1034_v14 = vld [vmem:[#allocation2 + $0x30] sm:$0xf] }
 0x106   : > { %v611_v44 = vmax.f32 %v282_v63, %v2636_v35  ;;  %v644_v29 = vmax.f32 %v344_v28, %v2669_v37  ;;  %v645_v20 = vmax.f32 %v345_v30, %v2670_v38  ;;  %v646_v45 = vmax.f32 %v346_v31, %v2671_v13  ;;  %v1010_v30 = vld [vmem:[#allocation2 + $0x10] sm:$0xf]  ;;  %v1052_v31 = vld [vmem:[#allocation2] sm:$0xf] }
 0x107   : > { %v707_v47 = vpack.c.bf16 %v643_v39, %v643_v39  ;;  %v612_v48 = vmax.f32 %v320_v33, %v2637_v40  ;;  %v613_v49 = vmax.f32 %v321_v27, %v2638_v42  ;;  %v614_v50 = vmax.f32 %v322_v34, %v2639_v43 }
 0x108   : > { %v675_v51 = vpack.c.bf16 %v611_v44, %v611_v44  ;;  %v708_v52 = vpack.c.bf16 %v644_v29, %v644_v29  ;;  %v709_v53 = vpack.c.bf16 %v645_v20, %v645_v20  ;;  %v710_v54 = vpack.c.bf16 %v646_v45, %v646_v45 }
 0x109   : > { %v835_v55 = vunpack.c.l.b16 %v707_v47  ;;  %v676_v56 = vpack.c.bf16 %v612_v48, %v612_v48  ;;  %v677_v57 = vpack.c.bf16 %v613_v49, %v613_v49  ;;  %v678_v58 = vpack.c.bf16 %v614_v50, %v614_v50 }
 0x10a   : > { %v803_v59 = vunpack.c.l.b16 %v675_v51  ;;  %v836_v60 = vunpack.c.l.b16 %v708_v52  ;;  %v837_v61 = vunpack.c.l.b16 %v709_v53  ;;  %v838_v62 = vunpack.c.l.b16 %v710_v54 }
 0x10b   : > { %v933_v0 = vrot.slane %v835_v55, 3  ;;  %v804_v3 = vunpack.c.l.b16 %v676_v56  ;;  %v805_v4 = vunpack.c.l.b16 %v677_v57  ;;  %v806_v7 = vunpack.c.l.b16 %v678_v58 }
 0x10c   : > { %v881_v8 = vrot.slane %v803_v59, 3  ;;  %v935_v15 = vrot.slane %v836_v60, 2  ;;  %v937_v16 = vrot.slane %v837_v61, 1  ;;  %v976_v17 = vpack.c.b16 %v838_v62, %v838_v62 }
 0x10d   : > { %v2903_v9 = vpop.trf.xlu0  ;;  %v934_v12 = vsel %vm866_vm5, %v933_v0, %v932_v26  ;;  %v883_v19 = vrot.slane %v804_v3, 2  ;;  %v885_v21 = vrot.slane %v805_v4, 1  ;;  %v968_v22 = vpack.c.b16 %v806_v7, %v806_v7 }
 0x10e   : > { %v882_v18 = vsel %vm866_vm5, %v881_v8, %v880_v25  ;;  %v936_v23 = vsel %vm869_vm6, %v935_v15, %v934_v12  ;;  %v1038_v24 = vsel %vm2999_vm10, %v976_v17, %v1037_v2  ;;  %v2897_v5 = vunpack.i.h.bf16 %v3037_v6 }
 0x10f   : > { %v884_v63 = vsel %vm869_vm6, %v883_v19, %v882_v18  ;;  %v938_v26 = vsel %vm872_vm7, %v937_v16, %v936_v23  ;;  %v1014_v28 = vsel %vm2999_vm10, %v968_v22, %v1013_v10  ;;  %1039 = vst [vmem:[#allocation2 + $0x34] sm:$0x1] %v1038_v24  ;;  %v1056_v25 = vsel %vm2999_vm10, %v968_v22, %v1055_v11 }
 0x110   : > { %v886_v32 = vsel %vm872_vm7, %v885_v21, %v884_v63  ;;  %v975_v33 = vpack.c.b16 %v938_v26, %v938_v26  ;;  %1015 = vst [vmem:[#allocation2 + $0x14] sm:$0x1] %v1014_v28  ;;  %v2894_v27 = vunpack.i.l.bf16 %v3037_v6  ;;  %v2902_v35 = vunpack.i.h.bf16 %v3049_v36 }
 0x111   : > { %v967_v34 = vpack.c.b16 %v886_v32, %v886_v32  ;;  %1057 = vst [vmem:[#allocation2 + $0x4] sm:$0x1] %v1056_v25  ;;  %v2907_v37 = vunpack.i.h.bf16 %v2903_v9  ;;  %v2904_v13 = vunpack.i.l.bf16 %v2903_v9  ;;  %v2899_v42 = vunpack.i.l.bf16 %v3049_v36 }
 0x112   : > { %v1035_v38 = vsel %vm3010_vm11, %v975_v33, %v1034_v14 }
 0x113   : > { %v1011_v39 = vsel %vm3010_vm11, %v967_v34, %v1010_v30  ;;  %1036 = vst [vmem:[#allocation2 + $0x30] sm:$0xf] %v1035_v38  ;;  %v1053_v40 = vsel %vm3010_vm11, %v967_v34, %v1052_v31  ;;  %v291_v43 = vmax.f32 %v2897_v5, %v2907_v37  ;;  %v283_v44 = vmax.f32 %v2894_v27, %v2904_v13 }
 0x114   : > { %1012 = vst [vmem:[#allocation2 + $0x10] sm:$0xf] %v1011_v39 }
 0x115   : > { %v3073_v6 = vpop.trf.xlu0  ;;  %1054 = vst [vmem:[#allocation2] sm:$0xf] %v1053_v40  ;;  %v347_v20 = vrot.slane %v291_v43, 2  ;;  %v348_v45 = vrot.slane %v291_v43, 4  ;;  %v349_v47 = vrot.slane %v291_v43, 6  ;;  %v2672_v48 = vrot.slane %v291_v43, 9 }
 0x116   : > { %v2912_v29 = vunpack.i.h.bf16 %v3073_v6  ;;  %v323_v49 = vrot.slane %v283_v44, 2  ;;  %v324_v50 = vrot.slane %v283_v44, 4  ;;  %v325_v51 = vrot.slane %v283_v44, 6  ;;  %v1214_v12 = vld [vmem:[#allocation2 + $0x34] sm:$0x1] }
 0x117   : > { %v2640_v52 = vrot.slane %v283_v44, 9  ;;  %v2673_v53 = vrot.slane %v347_v20, 9  ;;  %v2674_v54 = vrot.slane %v348_v45, 9  ;;  %v2675_v55 = vrot.slane %v349_v47, 9  ;;  %v1202_v26 = vld [vmem:[#allocation2 + $0x14] sm:$0x1] }
 0x118   : > { %v647_v56 = vmax.f32 %v291_v43, %v2672_v48  ;;  %v2641_v57 = vrot.slane %v323_v49, 9  ;;  %v2642_v58 = vrot.slane %v324_v50, 9  ;;  %v2643_v59 = vrot.slane %v325_v51, 9  ;;  %v1196_v32 = vld [vmem:[#allocation2 + $0x4] sm:$0x1] }
 0x119   : > { %v615_v60 = vmax.f32 %v283_v44, %v2640_v52  ;;  %v648_v61 = vmax.f32 %v347_v20, %v2673_v53  ;;  %v649_v62 = vmax.f32 %v348_v45, %v2674_v54  ;;  %v650_v0 = vmax.f32 %v349_v47, %v2675_v55  ;;  %v1239_v45 = vld [vmem:[%s3601_s1] sm:$0x3] }
 0x11a   : > { %v711_v2 = vpack.c.bf16 %v647_v56, %v647_v56  ;;  %v1151_v3 = vld [vmem:[#allocation2 + $0x30] sm:$0x8]  ;;  %v616_v4 = vmax.f32 %v323_v49, %v2641_v57  ;;  %v617_v7 = vmax.f32 %v324_v50, %v2642_v58  ;;  %v618_v8 = vmax.f32 %v325_v51, %v2643_v59 }
 0x11b   : > { %v679_v9 = vpack.c.bf16 %v615_v60, %v615_v60  ;;  %v1067_v10 = vld [vmem:[#allocation2 + $0x10] sm:$0x2]  ;;  %v1147_v11 = vld [vmem:[#allocation2 + $0x10] sm:$0x8]  ;;  %v712_v15 = vpack.c.bf16 %v648_v61, %v648_v61  ;;  %v713_v16 = vpack.c.bf16 %v649_v62, %v649_v62  ;;  %v714_v17 = vpack.c.bf16 %v650_v0, %v650_v0  ;;  %v1121_v14 = vld [vmem:[#allocation2 + $0x10] sm:$0x1] }
 0x11c   : > { %v839_v18 = vunpack.c.l.b16 %v711_v2  ;;  %v2690_v19 = vrot.slane %v1067_v10, 9  ;;  %v1145_v21 = vld [vmem:[#allocation2] sm:$0x8]  ;;  %v2700_v22 = vrot.slane %v1147_v11, 11  ;;  %v2704_v23 = vrot.slane %v1151_v3, 11 }
 0x11d   : > { %v680_v24 = vpack.c.bf16 %v616_v4, %v616_v4  ;;  %v3076_v5 = vpop.trf.xlu0  ;;  %v2698_v63 = vrot.slane %v1145_v21, 11  ;;  %v681_v28 = vpack.c.bf16 %v617_v7, %v617_v7  ;;  %v682_v25 = vpack.c.bf16 %v618_v8, %v618_v8 }
 0x11e   : > { %v807_v30 = vunpack.c.l.b16 %v679_v9  ;;  %v1122_v31 = vsel %vm2999_vm10, %v2690_v19, %v1121_v14  ;;  %v1203_v33 = vsel %vm3029_vm12, %v2700_v22, %v1202_v26  ;;  %v1215_v27 = vsel %vm3029_vm12, %v2704_v23, %v1214_v12 }
 0x11f   : > { %v808_v34 = vunpack.c.l.b16 %v680_v24  ;;  %1123 = vst [vmem:[#allocation2 + $0x10] sm:$0x1] %v1122_v31  ;;  %v1197_v37 = vsel %vm3029_vm12, %v2698_v63, %v1196_v32  ;;  %v809_v38 = vunpack.c.l.b16 %v681_v28  ;;  %v810_v13 = vunpack.c.l.b16 %v682_v25 }
 0x120   : > { %v840_v39 = vunpack.c.l.b16 %v712_v15  ;;  %1198 = vst [vmem:[#allocation2 + $0x4] sm:$0x1] %v1197_v37  ;;  %v841_v40 = vunpack.c.l.b16 %v713_v16  ;;  %v842_v43 = vunpack.c.l.b16 %v714_v17  ;;  %v887_v44 = vrot.slane %v807_v30, 7 }
 0x121   : > { %v888_v20 = vrot.slane %v808_v34, 6  ;;  %1204 = vst [vmem:[#allocation2 + $0x14] sm:$0x1] %v1203_v33  ;;  %v890_v47 = vrot.slane %v809_v38, 5  ;;  %v892_v48 = vrot.slane %v810_v13, 4  ;;  %v939_v49 = vrot.slane %v839_v18, 7 }
 0x122   : > { %v940_v50 = vrot.slane %v840_v39, 6  ;;  %1216 = vst [vmem:[#allocation2 + $0x34] sm:$0x1] %v1215_v27  ;;  %v942_v52 = vrot.slane %v841_v40, 5  ;;  %v944_v53 = vrot.slane %v842_v43, 4  ;;  %v2909_v54 = vunpack.i.l.bf16 %v3073_v6 }
 0x123   : > { %v889_v51 = vsel %vm857_vm0, %v888_v20, %v887_v44  ;;  %v292_v57 = vmax.f32 %v2902_v35, %v2912_v29  ;;  %v1275_v58 = vsel %vm1273_vm13, %v1239_v45, 0  ;;  %v1043_v38 = vld [vmem:[#allocation2 + $0x3c] sm:$0x1]  ;;  %v1062_v13 = vld [vmem:[#allocation2 + $0x4c] sm:$0x1] }
 0x124   : > { %v891_v55 = vsel %vm860_vm1, %v890_v47, %v889_v51  ;;  %v941_v56 = vsel %vm857_vm0, %v940_v50, %v939_v49  ;;  %v284_v61 = vmax.f32 %v2899_v42, %v2909_v54  ;;  %1284 = vmatpush.bf16.msra.mxu0 %v1275_v58  ;;  %2839 = vmatpush.bf16.msra.mxu1 %v1275_v58  ;;  %v1019_v45 = vld [vmem:[#allocation2 + $0x1c] sm:$0x1] }
 0x125   : > { %v893_v59 = vsel %vm863_vm2, %v892_v48, %v891_v55  ;;  %v943_v60 = vsel %vm860_vm1, %v942_v52, %v941_v56  ;;  %v350_v0 = vrot.slane %v292_v57, 2  ;;  %v351_v2 = vrot.slane %v292_v57, 4  ;;  %2841 = vmatpush.bf16.msra.mxu3 %v1275_v58  ;;  %2840 = vmatpush.bf16.msra.mxu2 %v1275_v58  ;;  %v3103_v7 = vpop.trf.xlu0  ;;  %v1065_v55 = vld [vmem:[#allocation2] sm:$0x2]  ;;  %v1016_v56 = vld [vmem:[#allocation2 + $0x18] sm:$0xf] }
 0x126   : > { %v945_v62 = vsel %vm863_vm2, %v944_v53, %v943_v60  ;;  %v352_v3 = vrot.slane %v292_v57, 6  ;;  %v326_v6 = vrot.slane %v284_v61, 2  ;;  %v327_v35 = vrot.slane %v284_v61, 4 }
 0x127   : > { %v328_v29 = vrot.slane %v284_v61, 6  ;;  %v2644_v4 = vrot.slane %v284_v61, 9  ;;  %v2676_v8 = vrot.slane %v292_v57, 9  ;;  %v2677_v9 = vrot.slane %v350_v0, 9 }
 0x128   : > { %v2678_v10 = vrot.slane %v351_v2, 9  ;;  %v2679_v36 = vrot.slane %v352_v3, 9  ;;  %v2645_v42 = vrot.slane %v326_v6, 9  ;;  %v2646_v11 = vrot.slane %v327_v35, 9 }
 0x129   : > { %v2647_v12 = vrot.slane %v328_v29, 9  ;;  %v619_v15 = vmax.f32 %v284_v61, %v2644_v4  ;;  %v651_v16 = vmax.f32 %v292_v57, %v2676_v8  ;;  %v652_v17 = vmax.f32 %v350_v0, %v2677_v9  ;;  %v1066_v61 = vld [vmem:[#allocation2 + $0x8] sm:$0x2]  ;;  %v1040_v0 = vld [vmem:[#allocation2 + $0x38] sm:$0xf] }
 0x12a   : > { %v653_v18 = vmax.f32 %v351_v2, %v2678_v10  ;;  %v654_v19 = vmax.f32 %v352_v3, %v2679_v36  ;;  %v620_v21 = vmax.f32 %v326_v6, %v2645_v42  ;;  %v621_v22 = vmax.f32 %v327_v35, %v2646_v11  ;;  %v1059_v2 = vld [vmem:[#allocation2 + $0x48] sm:$0xf]  ;;  %v1115_v4 = vld [vmem:[#allocation2] sm:$0x1] }
 0x12b   : > { %v622_v23 = vmax.f32 %v328_v29, %v2647_v12  ;;  %v683_v24 = vpack.c.bf16 %v619_v15, %v619_v15  ;;  %v715_v14 = vpack.c.bf16 %v651_v16, %v651_v16  ;;  %v716_v63 = vpack.c.bf16 %v652_v17, %v652_v17  ;;  %v2767_v36 = vld [vmem:[%s3601_s1 + $0x8] sm:$0x3]  ;;  %v1118_v17 = vld [vmem:[#allocation2 + $0x8] sm:$0x1] }
 0x12c   : > { %v717_v26 = vpack.c.bf16 %v653_v18, %v653_v18  ;;  %v718_v28 = vpack.c.bf16 %v654_v19, %v654_v19  ;;  %v684_v25 = vpack.c.bf16 %v620_v21, %v620_v21  ;;  %v685_v30 = vpack.c.bf16 %v621_v22, %v621_v22  ;;  %v3129_v18 = vld [vmem:[#allocation2 + $0xc] sm:$0x1] }
 0x12d   : > { %v686_v31 = vpack.c.bf16 %v622_v23, %v622_v23  ;;  %v811_v32 = vunpack.c.l.b16 %v683_v24  ;;  %v843_v33 = vunpack.c.l.b16 %v715_v14  ;;  %v844_v27 = vunpack.c.l.b16 %v716_v63  ;;  %v2923_v20 = vpop.trf.xlu0  ;;  %v3134_v23 = vld [vmem:[#allocation2 + $0x10] sm:$0xf] }
 0x12e   : > { %v845_v34 = vunpack.c.l.b16 %v717_v26  ;;  %v846_v37 = vunpack.c.l.b16 %v718_v28  ;;  %v812_v39 = vunpack.c.l.b16 %v684_v25  ;;  %v813_v40 = vunpack.c.l.b16 %v685_v30 }
 0x12f   : > { %v814_v43 = vunpack.c.l.b16 %v686_v31  ;;  %v894_v44 = vrot.slane %v811_v32, 3  ;;  %v946_v47 = vrot.slane %v843_v33, 3  ;;  %v948_v48 = vrot.slane %v844_v27, 2 }
 0x130   : > { %v950_v49 = vrot.slane %v845_v34, 1  ;;  %v978_v50 = vpack.c.b16 %v846_v37, %v846_v37  ;;  %v896_v52 = vrot.slane %v812_v39, 2  ;;  %v898_v53 = vrot.slane %v813_v40, 1 }
 0x131   : > { %v895_v51 = vsel %vm866_vm5, %v894_v44, %v893_v59  ;;  %v970_v54 = vpack.c.b16 %v814_v43, %v814_v43  ;;  %v947_v57 = vsel %vm866_vm5, %v946_v47, %v945_v62  ;;  %v2688_v29 = vrot.slane %v1065_v55, 9 }
 0x132   : > { %v1044_v58 = vsel %vm2999_vm10, %v978_v50, %v1043_v38  ;;  %v1063_v60 = vsel %vm2999_vm10, %v978_v50, %v1062_v13  ;;  %v897_v3 = vsel %vm869_vm6, %v896_v52, %v895_v51  ;;  %v949_v59 = vsel %vm869_vm6, %v948_v48, %v947_v57 }
 0x133   : > { %v1020_v6 = vsel %vm2999_vm10, %v970_v54, %v1019_v45  ;;  %1045 = vst [vmem:[#allocation2 + $0x3c] sm:$0x1] %v1044_v58  ;;  %v899_v35 = vsel %vm872_vm7, %v898_v53, %v897_v3  ;;  %v951_v62 = vsel %vm872_vm7, %v950_v49, %v949_v59  ;;  %v2689_v10 = vrot.slane %v1066_v61, 9 }
 0x134   : > { %1021 = vst [vmem:[#allocation2 + $0x1c] sm:$0x1] %v1020_v6  ;;  %v969_v8 = vpack.c.b16 %v899_v35, %v899_v35  ;;  %v977_v9 = vpack.c.b16 %v951_v62, %v951_v62  ;;  %v1116_v42 = vsel %vm2999_vm10, %v2688_v29, %v1115_v4  ;;  %v2917_v16 = vunpack.i.h.bf16 %v3076_v5 }
 0x135   : > { %1064 = vst [vmem:[#allocation2 + $0x4c] sm:$0x1] %v1063_v60  ;;  %v1119_v19 = vsel %vm2999_vm10, %v2689_v10, %v1118_v17  ;;  %v1873_v21 = vsel %vm1273_vm13, %v2767_v36, 0  ;;  %v2927_v22 = vunpack.i.h.bf16 %v2923_v20  ;;  %v3136_v24 = vpop.trf.xlu0  ;;  %v2914_v14 = vunpack.i.l.bf16 %v3076_v5 }
 0x136   : > { %v1017_v11 = vsel %vm3010_vm11, %v969_v8, %v1016_v56  ;;  %v1041_v12 = vsel %vm3010_vm11, %v977_v9, %v1040_v0  ;;  %v1060_v15 = vsel %vm3010_vm11, %v977_v9, %v1059_v2  ;;  %1117 = vst [vmem:[#allocation2] sm:$0x1] %v1116_v42  ;;  %1882 = vmatpush.bf16.msrb.mxu0 %v1873_v21  ;;  %v2924_v63 = vunpack.i.l.bf16 %v2923_v20 }
 0x137   : > { %1018 = vst [vmem:[#allocation2 + $0x18] sm:$0xf] %v1017_v11  ;;  %v2922_v26 = vunpack.i.h.bf16 %v3103_v7  ;;  %v293_v28 = vmax.f32 %v2917_v16, %v2927_v22  ;;  %v1744_v25 = vshll.u32 %v3129_v18, 16  ;;  %v1749_v31 = vshrl.u32 %v3134_v23, 16 }
 0x138   : > { %1042 = vst [vmem:[#allocation2 + $0x38] sm:$0xf] %v1041_v12  ;;  %v285_v30 = vmax.f32 %v2914_v14, %v2924_v63  ;;  %v2932_v32 = vunpack.i.h.bf16 %v3136_v24 }
 0x139   : > { %1061 = vst [vmem:[#allocation2 + $0x48] sm:$0xf] %v1060_v15  ;;  %v353_v33 = vrot.slane %v293_v28, 2  ;;  %v354_v27 = vrot.slane %v293_v28, 4  ;;  %v355_v34 = vrot.slane %v293_v28, 6  ;;  %v2680_v37 = vrot.slane %v293_v28, 9 }
 0x13a   : > { %1120 = vst [vmem:[#allocation2 + $0x8] sm:$0x1] %v1119_v19  ;;  %v329_v5 = vrot.slane %v285_v30, 2  ;;  %v330_v38 = vrot.slane %v285_v30, 4  ;;  %v331_v13 = vrot.slane %v285_v30, 6  ;;  %v2648_v39 = vrot.slane %v285_v30, 9 }
 0x13b   : > { %v2681_v40 = vrot.slane %v353_v33, 9  ;;  %v2682_v43 = vrot.slane %v354_v27, 9  ;;  %v2683_v44 = vrot.slane %v355_v34, 9  ;;  %v655_v20 = vmax.f32 %v293_v28, %v2680_v37  ;;  %v1205_v60 = vld [vmem:[#allocation2 + $0x1c] sm:$0x1] }
 0x13c   : > { %v2649_v47 = vrot.slane %v329_v5, 9  ;;  %v2650_v48 = vrot.slane %v330_v38, 9  ;;  %v2651_v49 = vrot.slane %v331_v13, 9  ;;  %v623_v50 = vmax.f32 %v285_v30, %v2648_v39  ;;  %v1217_v61 = vld [vmem:[#allocation2 + $0x3c] sm:$0x1] }
 0x13d   : > { %v2710_v53 = vld [vmem:[#allocation2] sm:$0xf]  ;;  %v656_v54 = vmax.f32 %v353_v33, %v2681_v40  ;;  %v657_v55 = vmax.f32 %v354_v27, %v2682_v43  ;;  %v658_v56 = vmax.f32 %v355_v34, %v2683_v44  ;;  %v1223_v9 = vld [vmem:[#allocation2 + $0x4c] sm:$0x1]  ;;  %v719_v17 = vpack.c.bf16 %v655_v20, %v655_v20  ;;  %v3151_v19 = vld [vmem:[#allocation2 + $0x14] sm:$0x1] }
 0x13e   : > { %v1148_v45 = vld [vmem:[#allocation2 + $0x18] sm:$0x8]  ;;  %v624_v0 = vmax.f32 %v329_v5, %v2649_v47  ;;  %v625_v2 = vmax.f32 %v330_v38, %v2650_v48  ;;  %v626_v3 = vmax.f32 %v331_v13, %v2651_v49  ;;  %v687_v59 = vpack.c.bf16 %v623_v50, %v623_v50 }
 0x13f   : > { %v1152_v51 = vld [vmem:[#allocation2 + $0x38] sm:$0x8]  ;;  %v2701_v52 = vrot.slane %v1148_v45, 11  ;;  %v720_v21 = vpack.c.bf16 %v656_v54, %v656_v54  ;;  %v721_v22 = vpack.c.bf16 %v657_v55, %v657_v55  ;;  %v722_v14 = vpack.c.bf16 %v658_v56, %v658_v56 }
 0x140   : > { %v1074_v57 = vld [vmem:[#allocation2 + $0x48] sm:$0x2]  ;;  %v1154_v58 = vld [vmem:[#allocation2 + $0x48] sm:$0x8]  ;;  %v2705_v35 = vrot.slane %v1152_v51, 11  ;;  %v688_v36 = vpack.c.bf16 %v624_v0, %v624_v0  ;;  %v689_v42 = vpack.c.bf16 %v625_v2, %v625_v2  ;;  %v690_v11 = vpack.c.bf16 %v626_v3, %v626_v3 }
 0x141   : > { %v2697_v6 = vrot.slane %v1074_v57, 9  ;;  %v2707_v62 = vrot.slane %v1154_v58, 11  ;;  %v1206_v29 = vsel %vm3029_vm12, %v2701_v52, %v1205_v60  ;;  %v2827_v4 = vld [vmem:[#allocation2 + $0x4] sm:$0xf0]  ;;  %v815_v63 = vunpack.c.l.b16 %v687_v59 }
 0x142   : > { %v1142_v8 = vld [vmem:[#allocation2 + $0x48] sm:$0x1]  ;;  %1207 = vst [vmem:[#allocation2 + $0x1c] sm:$0x1] %v1206_v29  ;;  %v2711_v10 = vor.u32 %v2827_v4, %v2710_v53  ;;  %v1218_v15 = vsel %vm3029_vm12, %v2705_v35, %v1217_v61  ;;  %v816_v28 = vunpack.c.l.b16 %v688_v36  ;;  %v817_v30 = vunpack.c.l.b16 %v689_v42  ;;  %v3163_v61 = vld [vmem:[#allocation2 + $0x30] sm:$0x2] }
 0x143   : > { %v1143_v12 = vsel %vm2999_vm10, %v2697_v6, %v1142_v8  ;;  %v1224_v16 = vsel %vm3029_vm12, %v2707_v62, %v1223_v9  ;;  %1219 = vst [vmem:[#allocation2 + $0x3c] sm:$0x1] %v1218_v15  ;;  %v818_v33 = vunpack.c.l.b16 %v690_v11  ;;  %v847_v27 = vunpack.c.l.b16 %v719_v17  ;;  %v1718_v34 = vld [vmem:[#allocation2 + $0x8] sm:$0xf] }
 0x144   : > { %1144 = vst [vmem:[#allocation2 + $0x48] sm:$0x1] %v1143_v12  ;;  %2724 = vmatmul.msk.bf16.vlgmr.msra.gmra.mxu0 %vm1260_vm14, %v2711_v10  ;;  %v848_v37 = vunpack.c.l.b16 %v720_v21  ;;  %v849_v5 = vunpack.c.l.b16 %v721_v22  ;;  %v1752_v38 = vshll.u32 %v3134_v23, 16  ;;  %v1758_v13 = vshll.u32 %v3151_v19, 16 }
 0x145   : > { %1225 = vst [vmem:[#allocation2 + $0x4c] sm:$0x1] %v1224_v16  ;;  %v850_v39 = vunpack.c.l.b16 %v722_v14  ;;  %v900_v40 = vrot.slane %v815_v63, 7  ;;  %v901_v43 = vrot.slane %v816_v28, 6  ;;  %v903_v44 = vrot.slane %v817_v30, 5 }
 0x146   : > { %v952_v20 = vrot.slane %v847_v27, 7  ;;  %v953_v45 = vrot.slane %v848_v37, 6  ;;  %v955_v47 = vrot.slane %v849_v5, 5  ;;  %v1735_v48 = vshrl.u32 %v1718_v34, 16 }
 0x147   : > { %v902_v49 = vsel %vm857_vm0, %v901_v43, %v900_v40  ;;  %v905_v50 = vrot.slane %v818_v33, 4  ;;  %v1738_v51 = vshll.u32 %v1718_v34, 16  ;;  %v1751_v52 = vrot.slane %v1749_v31, 4 }
 0x148   : > { %v904_v53 = vsel %vm860_vm1, %v903_v44, %v902_v49  ;;  %v954_v54 = vsel %vm857_vm0, %v953_v45, %v952_v20  ;;  %v1737_v55 = vrot.slane %v1735_v48, 4  ;;  %v1754_v56 = vrot.slane %v1752_v38, 5  ;;  %vm3179_vm0 = vmor %vm1330_vm15, %vm1331_vm3 }
 0x149   : > { %v2919_v57 = vunpack.i.l.bf16 %v3103_v7  ;;  %v956_v58 = vsel %vm860_vm1, %v955_v47, %v954_v54  ;;  %v1740_v60 = vrot.slane %v1738_v51, 5  ;;  %v3166_v0 = vsel %vm863_vm2, %v905_v50, %v904_v53 }
 0x14a   : > { %v957_v2 = vrot.slane %v850_v39, 4  ;;  %v1746_v23 = vrot.slane %v1744_v25, 5  ;;  %v1755_v31 = vor.u32 %v1754_v56, %v1751_v52  ;;  %v2929_v59 = vunpack.i.l.bf16 %v3136_v24  ;;  %v3183_v25 = vld [vmem:[#allocation2 + $0x18] sm:$0x2] }
 0x14b   : > { %v1741_v3 = vor.u32 %v1740_v60, %v1737_v55  ;;  %v294_v6 = vmax.f32 %v2922_v26, %v2932_v32  ;;  %v1760_v4 = vrot.slane %v1758_v13, 5  ;;  %v2694_v8 = vrot.slane %v3163_v61, 9  ;;  %v1025_v60 = vld [vmem:[#allocation2 + $0x24] sm:$0x1] }
 0x14c   : > { %v3176_v35 = vsel %vm863_vm2, %v957_v2, %v956_v58  ;;  %v1756_v29 = vrot.slane %v1755_v31, 4  ;;  %v286_v10 = vmax.f32 %v2919_v57, %v2929_v59  ;;  %v2691_v42 = vrot.slane %v3183_v25, 9  ;;  %v1072_v59 = vld [vmem:[#allocation2 + $0x38] sm:$0x2] }
 0x14d   : > { %v1742_v9 = vrot.slane %v1741_v3, 4  ;;  %v356_v24 = vrot.slane %v294_v6, 2  ;;  %v357_v36 = vrot.slane %v294_v6, 4  ;;  %v358_v26 = vrot.slane %v294_v6, 6 }
 0x14e   : > { %v1761_v7 = vsel %vm3179_vm0, %v1756_v29, %v1760_v4  ;;  %v2684_v32 = vrot.slane %v294_v6, 9  ;;  %v332_v15 = vrot.slane %v286_v10, 2  ;;  %v333_v16 = vrot.slane %v286_v10, 4 }
 0x14f   : > { %v1747_v11 = vsel %vm3179_vm0, %v1742_v9, %v1746_v23  ;;  %v1849_v12 = vunpack.c.l.b16 %v1761_v7  ;;  %v334_v21 = vrot.slane %v286_v10, 6  ;;  %v2652_v22 = vrot.slane %v286_v10, 9 }
 0x150   : > { %v1848_v17 = vunpack.c.l.b16 %v1747_v11  ;;  %v2685_v14 = vrot.slane %v356_v24, 9  ;;  %v2653_v63 = vrot.slane %v332_v15, 9  ;;  %v2654_v28 = vrot.slane %v333_v16, 9  ;;  %v1124_v11 = vld [vmem:[#allocation2 + $0x18] sm:$0x1] }
 0x151   : > { %v2686_v30 = vrot.slane %v357_v36, 9  ;;  %v2687_v33 = vrot.slane %v358_v26, 9  ;;  %v2655_v34 = vrot.slane %v334_v21, 9  ;;  %v627_v37 = vmax.f32 %v286_v10, %v2652_v22  ;;  %v1022_v10 = vld [vmem:[#allocation2 + $0x20] sm:$0xf] }
 0x152   : > { %v1856_v27 = vpack.c.b16 %v1849_v12, %v1848_v17  ;;  %v659_v5 = vmax.f32 %v294_v6, %v2684_v32  ;;  %v628_v38 = vmax.f32 %v332_v15, %v2653_v63  ;;  %v629_v13 = vmax.f32 %v333_v16, %v2654_v28  ;;  %v1049_v6 = vld [vmem:[#allocation2 + $0x44] sm:$0x1]  ;;  %v1133_v12 = vld [vmem:[#allocation2 + $0x30] sm:$0x1]  ;;  %v1314_v15 = vld [vmem:[#allocation2] sm:$0xf] }
 0x153   : > { %v660_v39 = vmax.f32 %v356_v24, %v2685_v14  ;;  %v661_v40 = vmax.f32 %v357_v36, %v2686_v30  ;;  %v630_v43 = vmax.f32 %v334_v21, %v2655_v34  ;;  %v662_v44 = vmax.f32 %v358_v26, %v2687_v33  ;;  %v1046_v24 = vld [vmem:[#allocation2 + $0x40] sm:$0xf]  ;;  %v1316_v33 = vld [vmem:[#allocation2 + $0x8] sm:$0xf] }
 0x154   : > { %2768 = vmatmul.msk.bf16.vlgmr.msrb.gmra.mxu0 %vm1260_vm14, %v1856_v27  ;;  %v691_v20 = vpack.c.bf16 %v627_v37, %v627_v37  ;;  %v723_v45 = vpack.c.bf16 %v659_v5, %v659_v5  ;;  %v692_v47 = vpack.c.bf16 %v628_v38, %v628_v38  ;;  %v693_v48 = vpack.c.bf16 %v629_v13, %v629_v13  ;;  %v1070_v38 = vld [vmem:[#allocation2 + $0x28] sm:$0x2] }
 0x155   : > { %v724_v49 = vpack.c.bf16 %v660_v39, %v660_v39  ;;  %v725_v50 = vpack.c.bf16 %v661_v40, %v661_v40  ;;  %v694_v51 = vpack.c.bf16 %v630_v43, %v630_v43  ;;  %v726_v52 = vpack.c.bf16 %v662_v44, %v662_v44 }
 0x156   : > { %v819_v53 = vunpack.c.l.b16 %v691_v20  ;;  %v851_v54 = vunpack.c.l.b16 %v723_v45  ;;  %v820_v55 = vunpack.c.l.b16 %v692_v47  ;;  %v821_v56 = vunpack.c.l.b16 %v693_v48  ;;  %v1130_v45 = vld [vmem:[#allocation2 + $0x28] sm:$0x1]  ;;  %v2714_v47 = vld [vmem:[#allocation2 + $0x10] sm:$0xf]  ;;  %v3224_v48 = vld [vmem:[#allocation2 + $0xc] sm:$0x1] }
 0x157   : > { %v852_v57 = vunpack.c.l.b16 %v724_v49  ;;  %v853_v58 = vunpack.c.l.b16 %v725_v50  ;;  %v822_v2 = vunpack.c.l.b16 %v694_v51  ;;  %v854_v23 = vunpack.c.l.b16 %v726_v52  ;;  %v3226_v52 = vld [vmem:[#allocation2 + $0x4] sm:$0x1] }
 0x158   : > { %v907_v31 = vrot.slane %v819_v53, 3  ;;  %v959_v3 = vrot.slane %v851_v54, 3  ;;  %v909_v29 = vrot.slane %v820_v55, 2  ;;  %v911_v4 = vrot.slane %v821_v56, 1  ;;  %v1318_v53 = vld [vmem:[#allocation2 + $0x10] sm:$0xf] }
 0x159   : > { %v961_v25 = vrot.slane %v852_v57, 2  ;;  %v963_v9 = vrot.slane %v853_v58, 1  ;;  %v972_v26 = vpack.c.b16 %v822_v2, %v822_v2  ;;  %v980_v32 = vpack.c.b16 %v854_v23, %v854_v23 }
 0x15a   : > { %v908_v36 = vsel %vm866_vm5, %v907_v31, %v3166_v0  ;;  %v960_v7 = vsel %vm866_vm5, %v959_v3, %v3176_v35  ;;  %v1125_v21 = vsel %vm2999_vm10, %v2691_v42, %v1124_v11  ;;  %v2695_v22 = vrot.slane %v1072_v59, 9  ;;  %v2728_v0 = vld [vmem:[%s3601_s1 + $0x2] sm:$0x3]  ;;  %v2746_v35 = vld [vmem:[%s3601_s1 + $0x6] sm:$0x3] }
 0x15b   : > { %v910_v16 = vsel %vm869_vm6, %v909_v29, %v908_v36  ;;  %v962_v17 = vsel %vm869_vm6, %v961_v25, %v960_v7  ;;  %v1026_v28 = vsel %vm2999_vm10, %v972_v26, %v1025_v60  ;;  %v1050_v30 = vsel %vm2999_vm10, %v980_v32, %v1049_v6  ;;  %1126 = vst [vmem:[#allocation2 + $0x18] sm:$0x1] %v1125_v21  ;;  %v1136_v42 = vld [vmem:[#allocation2 + $0x38] sm:$0x1]  ;;  %v2741_v7 = vld [vmem:[%s3601_s1 + $0x4] sm:$0x3] }
 0x15c   : > { %v912_v14 = vsel %vm872_vm7, %v911_v4, %v910_v16  ;;  %v964_v63 = vsel %vm872_vm7, %v963_v9, %v962_v17  ;;  %1027 = vst [vmem:[#allocation2 + $0x24] sm:$0x1] %v1026_v28  ;;  %v1134_v37 = vsel %vm2999_vm10, %v2694_v8, %v1133_v12  ;;  %v1137_v5 = vsel %vm2999_vm10, %v2695_v22, %v1136_v42 }
 0x15d   : > { %v971_v27 = vpack.c.b16 %v912_v14, %v912_v14  ;;  %v979_v34 = vpack.c.b16 %v964_v63, %v964_v63  ;;  %1051 = vst [vmem:[#allocation2 + $0x44] sm:$0x1] %v1050_v30  ;;  %v1472_v13 = vsel %vm1273_vm13, %v2728_v0, 0  ;;  %v1679_v39 = vsel %vm1273_vm13, %v2746_v35, 0 }
 0x15e   : > { %v1334_v40 = vshrl.u32 %v1314_v15, 16  ;;  %v1337_v43 = vshll.u32 %v1314_v15, 16  ;;  %1135 = vst [vmem:[#allocation2 + $0x30] sm:$0x1] %v1134_v37  ;;  %1481 = vmatpush.bf16.msrb.mxu1 %v1472_v13  ;;  %1688 = vmatpush.bf16.msrb.mxu3 %v1679_v39  ;;  %v1348_v8 = vshrl.u32 %v1316_v33, 16  ;;  %v1351_v20 = vshll.u32 %v1316_v33, 16 }
 0x15f   : > { %v1023_v44 = vsel %vm3010_vm11, %v971_v27, %v1022_v10  ;;  %v1047_v61 = vsel %vm3010_vm11, %v979_v34, %v1046_v24  ;;  %v2693_v51 = vrot.slane %v1070_v38, 9  ;;  %1138 = vst [vmem:[#allocation2 + $0x38] sm:$0x1] %v1137_v5  ;;  %v1343_v2 = vshll.u32 %v3226_v52, 16  ;;  %v3246_v37 = vld [vmem:[#allocation2 + $0x14] sm:$0x1] }
 0x160   : > { %1024 = vst [vmem:[#allocation2 + $0x20] sm:$0xf] %v1023_v44  ;;  %v1336_v49 = vrot.slane %v1334_v40, 4  ;;  %v1339_v50 = vrot.slane %v1337_v43, 5  ;;  %v1350_v54 = vrot.slane %v1348_v8, 4  ;;  %v1353_v55 = vrot.slane %v1351_v20, 5 }
 0x161   : > { %1048 = vst [vmem:[#allocation2 + $0x40] sm:$0xf] %v1047_v61  ;;  %v1131_v56 = vsel %vm2999_vm10, %v2693_v51, %v1130_v45  ;;  %v1357_v23 = vshll.u32 %v3224_v48, 16  ;;  %v1362_v31 = vshrl.u32 %v1318_v53, 16  ;;  %v1365_v22 = vshll.u32 %v1318_v53, 16 }
 0x162   : > { %v2828_v1 = vld [vmem:[#allocation2 + $0x14] sm:$0xf0]  ;;  %1132 = vst [vmem:[#allocation2 + $0x28] sm:$0x1] %v1131_v56  ;;  %v1340_v60 = vor.u32 %v1339_v50, %v1336_v49  ;;  %v1354_v25 = vor.u32 %v1353_v55, %v1350_v54  ;;  %v1345_v35 = vrot.slane %v1343_v2, 5  ;;  %v1597_v30 = vsel %vm1273_vm13, %v2741_v7, 0 }
 0x163   : > { %v1320_v57 = vld [vmem:[#allocation2 + $0x18] sm:$0xf]  ;;  %v2715_v58 = vor.u32 %v2828_v1, %v2714_v47  ;;  %v1208_v29 = vld [vmem:[#allocation2 + $0x24] sm:$0x1]  ;;  %v1359_v27 = vrot.slane %v1357_v23, 5  ;;  %1606 = vmatpush.bf16.msrb.mxu2 %v1597_v30  ;;  %v1364_v41 = vrot.slane %v1362_v31, 4 }
 0x164   : > { %v1376_v3 = vshrl.u32 %v1320_v57, 16  ;;  %v1379_v59 = vshll.u32 %v1320_v57, 16  ;;  %v1341_v11 = vrot.slane %v1340_v60, 4  ;;  %v1220_v16 = vld [vmem:[#allocation2 + $0x44] sm:$0x1]  ;;  %v1355_v14 = vrot.slane %v1354_v25, 4 }
 0x165   : > { %2725 = vmatmul.msk.bf16.vlgmr.msra.gmra.mxu1 %vm1260_vm14, %v2715_v58  ;;  %v2722_v4 = vld [vmem:[#allocation2 + $0x30] sm:$0xf]  ;;  %v1722_v42 = vld [vmem:[#allocation2 + $0x18] sm:$0xf]  ;;  %v1367_v5 = vrot.slane %v1365_v22, 5  ;;  %v1371_v8 = vshll.u32 %v3246_v37, 16 }
 0x166   : > { %v2830_v32 = vld [vmem:[#allocation2 + $0x34] sm:$0xf0]  ;;  %v1378_v63 = vrot.slane %v1376_v3, 4  ;;  %v1381_v28 = vrot.slane %v1379_v59, 5  ;;  %v1346_v33 = vsel %vm3179_vm0, %v1341_v11, %v1345_v35  ;;  %v1763_v34 = vshrl.u32 %v1722_v42, 16 }
 0x167   : > { %v1149_v6 = vld [vmem:[#allocation2 + $0x20] sm:$0x8]  ;;  %v1069_v9 = vld [vmem:[#allocation2 + $0x20] sm:$0x2]  ;;  %v1127_v12 = vld [vmem:[#allocation2 + $0x20] sm:$0x1]  ;;  %v2723_v17 = vor.u32 %v2830_v32, %v2722_v4  ;;  %v1360_v13 = vsel %vm3179_vm0, %v1355_v14, %v1359_v27  ;;  %v1447_v43 = vunpack.c.l.b16 %v1346_v33  ;;  %v1368_v45 = vor.u32 %v1367_v5, %v1364_v41 }
 0x168   : > { %v1153_v10 = vld [vmem:[#allocation2 + $0x40] sm:$0x8]  ;;  %v2702_v24 = vrot.slane %v1149_v6, 11  ;;  %v2692_v36 = vrot.slane %v1069_v9, 9  ;;  %v1766_v38 = vshll.u32 %v1722_v42, 16  ;;  %v1765_v40 = vrot.slane %v1763_v34, 4 }
 0x169   : > { %v2706_v26 = vrot.slane %v1153_v10, 11  ;;  %2727 = vmatmul.msk.bf16.vlgmr.msra.gmra.mxu3 %vm1260_vm14, %v2723_v17  ;;  %v3250_v39 = vld [vmem:[#allocation2 + $0x1c] sm:$0x1]  ;;  %v1382_v44 = vor.u32 %v1381_v28, %v1378_v63  ;;  %v1448_v20 = vunpack.c.l.b16 %v1360_v13  ;;  %v2829_v50 = vld [vmem:[#allocation2 + $0x24] sm:$0xf0]  ;;  %v3260_v23 = vrot.slane %v1371_v8, 5 }
 0x16a   : > { %v1209_v15 = vsel %vm3029_vm12, %v2702_v24, %v1208_v29  ;;  %v1128_v21 = vsel %vm2999_vm10, %v2692_v36, %v1127_v12  ;;  %v1768_v61 = vrot.slane %v1766_v38, 5  ;;  %v1385_v47 = vshll.u32 %v3250_v39, 16  ;;  %v3254_v49 = vld [vmem:[#allocation2 + $0x1c] sm:$0x1]  ;;  %v3258_v1 = vld [vmem:[#allocation2 + $0x28] sm:$0xf] }
 0x16b   : > { %1210 = vst [vmem:[#allocation2 + $0x24] sm:$0x1] %v1209_v15  ;;  %v1221_v0 = vsel %vm3029_vm12, %v2706_v26, %v1220_v16  ;;  %v1455_v54 = vpack.c.b16 %v1448_v20, %v1447_v43  ;;  %v1383_v56 = vrot.slane %v1382_v44, 4  ;;  %v2749_v58 = vld [vmem:[#allocation2 + $0x8] sm:$0xf]  ;;  %v1772_v31 = vshll.u32 %v3254_v49, 16 }
 0x16c   : > { %1222 = vst [vmem:[#allocation2 + $0x44] sm:$0x1] %v1221_v0  ;;  %v1769_v53 = vor.u32 %v1768_v61, %v1765_v40  ;;  %v2831_v60 = vld [vmem:[#allocation2 + $0xc] sm:$0xf0]  ;;  %v1369_v59 = vrot.slane %v1368_v45, 4  ;;  %v1387_v6 = vrot.slane %v1385_v47, 5 }
 0x16d   : > { %1129 = vst [vmem:[#allocation2 + $0x20] sm:$0x1] %v1128_v21  ;;  %v1511_v25 = vld [vmem:[#allocation2] sm:$0xe]  ;;  %v1404_v24 = vshrl.u32 %v3258_v1, 16  ;;  %v1407_v36 = vshll.u32 %v3258_v1, 16  ;;  %v2750_v26 = vor.u32 %v2831_v60, %v2749_v58 }
 0x16e   : > { %v1770_v9 = vrot.slane %v1769_v53, 4  ;;  %v1512_v7 = vld [vmem:[#allocation2 + $0x8] sm:$0xe]  ;;  %v1388_v32 = vsel %vm3179_vm0, %v1383_v56, %v1387_v6  ;;  %vm1535_vm1 = vcmask 1042432   ;;  %v1774_v16 = vrot.slane %v1772_v31, 5 }
 0x16f   : > { %v1726_v15 = vld [vmem:[#allocation2 + $0x28] sm:$0xf]  ;;  %vm1536_vm2 = vcmask 1046532   ;;  %v2733_v17 = vrot.slane %v1511_v25, 9  ;;  %v1540_v21 = vrot.slane %v3226_v52, 5  ;;  %v2734_v35 = vrot.slane %v1512_v7, 9 }
 0x170   : > { %v1544_v14 = vrot.slane %v3224_v48, 5  ;;  %v1775_v63 = vsel %vm3179_vm0, %v1770_v9, %v1774_v16  ;;  %v1791_v42 = vshrl.u32 %v1726_v15, 16  ;;  %v1374_v33 = vsel %vm3179_vm0, %v1369_v59, %v3260_v23  ;;  %vm3279_vm4 = vmor %vm1535_vm1, %vm1536_vm2  ;;  %v2785_v48 = vld [vmem:[%s3601_s1 + $0xc] sm:$0x3]  ;;  %v2806_v34 = vld [vmem:[%s3601_s1 + $0xe] sm:$0x3] }
 0x171   : > { %v1794_v41 = vshll.u32 %v1726_v15, 16  ;;  %v1450_v5 = vunpack.c.l.b16 %v1388_v32  ;;  %v1541_v38 = vsel %vm3279_vm4, %v2733_v17, %v1540_v21  ;;  %v2078_v13 = vsel %vm1273_vm13, %v2785_v48, 0  ;;  %v2780_v43 = vld [vmem:[%s3601_s1 + $0xa] sm:$0x3]  ;;  %v2819_v44 = vld [vmem:[%s3601_s1 + $0x10] sm:$0x3] }
 0x172   : > { %v3256_v51 = vld [vmem:[#allocation2 + $0x24] sm:$0x1]  ;;  %v2272_v40 = vsel %vm1273_vm13, %v2806_v34, 0  ;;  %v1850_v8 = vunpack.c.l.b16 %v1775_v63  ;;  %v1995_v20 = vsel %vm1273_vm13, %v2780_v43, 0  ;;  %v2394_v45 = vsel %vm1273_vm13, %v2819_v44, 0 }
 0x173   : > { %v1786_v4 = vshll.u32 %v3256_v51, 16  ;;  %2281 = vmatpush.bf16.msra.mxu3 %v2272_v40  ;;  %v1728_v47 = vld [vmem:[#allocation2 + $0x30] sm:$0xf]  ;;  %2004 = vmatpush.bf16.msra.mxu1 %v1995_v20  ;;  %v1796_v56 = vrot.slane %v1794_v41, 5  ;;  %v1449_v60 = vunpack.c.l.b16 %v1374_v33  ;;  %v1572_v23 = vunpack.c.l.b16 %v1541_v38  ;;  %v3305_v31 = vld [vmem:[#allocation2 + $0x34] sm:$0x1] }
 0x174   : > { %v2718_v55 = vld [vmem:[#allocation2 + $0x20] sm:$0xf]  ;;  %2403 = vmatpush.bf16.msra.mxu0 %v2394_v45  ;;  %v1808_v58 = vshll.u32 %v1728_v47, 16  ;;  %v1406_v25 = vrot.slane %v1404_v24, 4  ;;  %v1409_v9 = vrot.slane %v1407_v36, 5  ;;  %v1548_v20 = vrot.slane %v3246_v37, 5 }
 0x175   : > { %v1724_v57 = vld [vmem:[#allocation2 + $0x20] sm:$0xf]  ;;  %v2719_v2 = vor.u32 %v2829_v50, %v2718_v55  ;;  %2729 = vmatmul.msk.bf16.vlgmr.msrb.gmra.mxu1 %vm1260_vm14, %v1455_v54  ;;  %v1788_v0 = vrot.slane %v1786_v4, 5  ;;  %v1545_v54 = vsel %vm3279_vm4, %v2734_v35, %v1544_v14  ;;  %v1793_v55 = vrot.slane %v1791_v42, 4  ;;  %v3310_v4 = vld [vmem:[#allocation2 + $0x24] sm:$0x1] }
 0x176   : > { %v1777_v3 = vshrl.u32 %v1724_v57, 16  ;;  %v1780_v29 = vshll.u32 %v1724_v57, 16  ;;  %v1322_v12 = vld [vmem:[#allocation2 + $0x20] sm:$0xf]  ;;  %v1805_v57 = vshrl.u32 %v1728_v47, 16  ;;  %v1810_v6 = vrot.slane %v1808_v58, 5 }
 0x177   : > { %2726 = vmatmul.msk.bf16.vlgmr.msra.gmra.mxu2 %vm1260_vm14, %v2719_v2  ;;  %v1390_v28 = vshrl.u32 %v1322_v12, 16  ;;  %v1393_v30 = vshll.u32 %v1322_v12, 16  ;;  %v3312_v7 = vld [vmem:[#allocation2 + $0x2c] sm:$0x1]  ;;  %v1797_v32 = vor.u32 %v1796_v56, %v1793_v55  ;;  %v1814_v12 = vshll.u32 %v3305_v31, 16 }
 0x178   : > { %v1779_v10 = vrot.slane %v1777_v3, 4  ;;  %v1782_v11 = vrot.slane %v1780_v29, 5  ;;  %2087 = vmatpush.bf16.msra.mxu2 %v2078_v13  ;;  %v3307_v3 = vld [vmem:[#allocation2 + $0x2c] sm:$0x1]  ;;  %v1807_v59 = vrot.slane %v1805_v57, 4  ;;  %v1456_v29 = vpack.c.b16 %v1450_v5, %v1449_v60 }
 0x179   : > { %2763 = vmatmul.msk.bf16.vlgmr.msrb.gmra.mxu3 %vm1260_vm14, %v2750_v26  ;;  %v1392_v53 = vrot.slane %v1390_v28, 4  ;;  %v1395_v1 = vrot.slane %v1393_v30, 5  ;;  %v2832_v15 = vld [vmem:[#allocation2 + $0x1c] sm:$0xf0]  ;;  %v1413_v16 = vshll.u32 %v3307_v3, 16  ;;  %v1399_v21 = vshll.u32 %v3310_v4, 16 }
 0x17a   : > { %v1783_v22 = vor.u32 %v1782_v11, %v1779_v10  ;;  %v1573_v10 = vunpack.c.l.b16 %v1545_v54  ;;  %v1811_v11 = vor.u32 %v1810_v6, %v1807_v59  ;;  %v1073_v36 = vld [vmem:[#allocation2 + $0x40] sm:$0x2]  ;;  %v1942_v35 = vrot.slane %v3151_v19, 5  ;;  %v2753_v14 = vld [vmem:[#allocation2 + $0x18] sm:$0xf] }
 0x17b   : > { %v1396_v26 = vor.u32 %v1395_v1, %v1392_v53  ;;  %v1410_v63 = vor.u32 %v1409_v9, %v1406_v25  ;;  %v2754_v28 = vor.u32 %v2832_v15, %v2753_v14  ;;  %v1798_v42 = vrot.slane %v1797_v32, 4  ;;  %v1328_v34 = vld [vmem:[#allocation2 + $0x38] sm:$0xf]  ;;  %v1912_v38 = vld [vmem:[#allocation2 + $0x8] sm:$0xe] }
 0x17c   : > { %v1784_v27 = vrot.slane %v1783_v22, 4  ;;  %v1580_v17 = vpack.c.b16 %v1573_v10, %v1572_v23  ;;  %v1800_v22 = vshll.u32 %v3312_v7, 16  ;;  %v1812_v24 = vrot.slane %v1811_v11, 4  ;;  %v1514_v41 = vld [vmem:[#allocation2 + $0x18] sm:$0xe] }
 0x17d   : > { %v1397_v30 = vrot.slane %v1396_v26, 4  ;;  %v1816_v33 = vrot.slane %v1814_v12, 5  ;;  %v1415_v48 = vrot.slane %v1413_v16, 5  ;;  %v2696_v5 = vrot.slane %v1073_v36, 9  ;;  %v1139_v43 = vld [vmem:[#allocation2 + $0x40] sm:$0x1] }
 0x17e   : > { %v1789_v61 = vsel %vm3179_vm0, %v1784_v27, %v1788_v0  ;;  %v1938_v0 = vrot.slane %v3129_v18, 5  ;;  %v1513_v27 = vld [vmem:[#allocation2 + $0x10] sm:$0xe]  ;;  %v1401_v13 = vrot.slane %v1399_v21, 5  ;;  %v1802_v40 = vrot.slane %v1800_v22, 5 }
 0x17f   : > { %v1851_v50 = vunpack.c.l.b16 %v1789_v61  ;;  %v1817_v18 = vsel %vm3179_vm0, %v1812_v24, %v1816_v33  ;;  %v1552_v19 = vrot.slane %v3250_v39, 5  ;;  %v1411_v44 = vrot.slane %v1410_v63, 4  ;;  %v1326_v61 = vld [vmem:[#allocation2 + $0x30] sm:$0xf]  ;;  %v1730_v39 = vld [vmem:[#allocation2 + $0x38] sm:$0xf] }
 0x180   : > { %v1140_v45 = vsel %vm2999_vm10, %v2696_v5, %v1139_v43  ;;  %v1402_v47 = vsel %vm3179_vm0, %v1397_v30, %v1401_v13  ;;  %v1432_v53 = vshrl.u32 %v1328_v34, 16  ;;  %v2736_v1 = vrot.slane %v1514_v41, 9  ;;  %v1913_v37 = vld [vmem:[#allocation2 + $0x10] sm:$0xe]  ;;  %v3344_v36 = vld [vmem:[#allocation2 + $0x3c] sm:$0x1] }
 0x181   : > { %v1857_v2 = vpack.c.b16 %v1851_v50, %v1850_v8  ;;  %v2735_v8 = vrot.slane %v1513_v27, 9  ;;  %v1803_v50 = vsel %vm3179_vm0, %v1798_v42, %v1802_v40  ;;  %1141 = vst [vmem:[#allocation2 + $0x40] sm:$0x1] %v1140_v45  ;;  %v1853_v54 = vunpack.c.l.b16 %v1817_v18  ;;  %v3346_v63 = vld [vmem:[#allocation2 + $0x44] sm:$0x1] }
 0x182   : > { %v1435_v55 = vshll.u32 %v1328_v34, 16  ;;  %v1819_v56 = vshrl.u32 %v1730_v39, 16  ;;  %v1822_v57 = vshll.u32 %v1730_v39, 16  ;;  %v1418_v58 = vshrl.u32 %v1326_v61, 16  ;;  %v3348_v42 = vld [vmem:[#allocation2 + $0x3c] sm:$0x1] }
 0x183   : > { %2769 = vmatmul.msk.bf16.gmra.mxu0 %vm1260_vm14, %v1857_v2  ;;  %v1421_v46 = vshll.u32 %v1326_v61, 16  ;;  %v1553_v60 = vsel %vm3279_vm4, %v2736_v1, %v1552_v19  ;;  %v2772_v2 = vrot.slane %v1912_v38, 9  ;;  %v1416_v23 = vsel %vm3179_vm0, %v1411_v44, %v1415_v48  ;;  %v3350_v34 = vld [vmem:[#allocation2 + $0x34] sm:$0x1]  ;;  %v2833_v19 = vld [vmem:[#allocation2 + $0x2c] sm:$0xf0] }
 0x184   : > { %v1451_v59 = vunpack.c.l.b16 %v1402_v47  ;;  %v1852_v6 = vunpack.c.l.b16 %v1803_v50  ;;  %v1821_v25 = vrot.slane %v1819_v56, 4  ;;  %v1824_v9 = vrot.slane %v1822_v57, 5  ;;  %v1515_v45 = vld [vmem:[#allocation2 + $0x20] sm:$0xe]  ;;  %v2757_v47 = vld [vmem:[#allocation2 + $0x28] sm:$0xf] }
 0x185   : > { %2730 = vmatmul.msk.bf16.gmra.mxu1 %vm1260_vm14, %v1456_v29  ;;  %v1549_v29 = vsel %vm3279_vm4, %v2735_v8, %v1548_v20  ;;  %v1939_v10 = vsel %vm3279_vm4, %v2772_v2, %v1938_v0  ;;  %v2773_v26 = vrot.slane %v1913_v37, 9  ;;  %v1434_v11 = vrot.slane %v1432_v53, 4  ;;  %v1516_v56 = vld [vmem:[#allocation2 + $0x28] sm:$0xe]  ;;  %v2796_v52 = vld [vmem:[#allocation2 + $0x30] sm:$0xf] }
 0x186   : > { %v1858_v32 = vpack.c.b16 %v1853_v54, %v1852_v6  ;;  %v1437_v12 = vrot.slane %v1435_v55, 5  ;;  %v1575_v15 = vunpack.c.l.b16 %v1553_v60  ;;  %v1452_v16 = vunpack.c.l.b16 %v1416_v23 }
 0x187   : > { %2742 = vmatmul.msk.bf16.vlgmr.msrb.gmra.mxu2 %vm1260_vm14, %v1580_v17  ;;  %v1420_v17 = vrot.slane %v1418_v58, 4  ;;  %v1423_v21 = vrot.slane %v1421_v46, 5  ;;  %v1943_v22 = vsel %vm3279_vm4, %v2773_v26, %v1942_v35  ;;  %v1574_v24 = vunpack.c.l.b16 %v1549_v29 }
 0x188   : > { %v1732_v14 = vld [vmem:[#allocation2 + $0x40] sm:$0xf]  ;;  %v1970_v0 = vunpack.c.l.b16 %v1939_v10  ;;  %v1457_v30 = vpack.c.b16 %v1452_v16, %v1451_v59  ;;  %v1825_v33 = vor.u32 %v1824_v9, %v1821_v25  ;;  %v1438_v41 = vor.u32 %v1437_v12, %v1434_v11  ;;  %v1914_v11 = vld [vmem:[#allocation2 + $0x18] sm:$0xe] }
 0x189   : > { %2764 = vmatmul.msk.bf16.gmra.mxu3 %vm1260_vm14, %v2754_v28  ;;  %v1971_v28 = vunpack.c.l.b16 %v1943_v22  ;;  %v1833_v27 = vshrl.u32 %v1732_v14, 16  ;;  %v1836_v48 = vshll.u32 %v1732_v14, 16  ;;  %v1581_v35 = vpack.c.b16 %v1575_v15, %v1574_v24  ;;  %v1915_v15 = vld [vmem:[#allocation2 + $0x20] sm:$0xe]  ;;  %v2117_v24 = vld [vmem:[#allocation2 + $0x10] sm:$0xf] }
 0x18a   : > { %v1828_v38 = vshll.u32 %v3344_v36, 16  ;;  %v1842_v18 = vshll.u32 %v3346_v63, 16  ;;  %v1424_v43 = vor.u32 %v1423_v21, %v1420_v17  ;;  %v1441_v44 = vshll.u32 %v3348_v42, 16 }
 0x18b   : > { %v3352_v5 = vpack.c.b16 %v1971_v28, %v1970_v0  ;;  %v1835_v13 = vrot.slane %v1833_v27, 4  ;;  %v1838_v40 = vrot.slane %v1836_v48, 5  ;;  %v1427_v61 = vshll.u32 %v3350_v34, 16  ;;  %v2120_v28 = vld [vmem:[#allocation2 + $0x1c] sm:$0x1] }
 0x18c   : > { %v1826_v8 = vrot.slane %v1825_v33, 4  ;;  %v1439_v50 = vrot.slane %v1438_v41, 4  ;;  %v1556_v53 = vrot.slane %v3310_v4, 5  ;;  %v2758_v1 = vor.u32 %v2833_v19, %v2757_v47  ;;  %v2761_v47 = vld [vmem:[#allocation2 + $0x38] sm:$0xf] }
 0x18d   : > { %v1839_v20 = vor.u32 %v1838_v40, %v1835_v13  ;;  %v1830_v39 = vrot.slane %v1828_v38, 5  ;;  %v1844_v55 = vrot.slane %v1842_v18, 5  ;;  %v1425_v57 = vrot.slane %v1424_v43, 4  ;;  %v2312_v40 = vld [vmem:[#allocation2 + $0x18] sm:$0xe] }
 0x18e   : > { %v1443_v37 = vrot.slane %v1441_v44, 5  ;;  %v2737_v58 = vrot.slane %v1515_v45, 9  ;;  %v1560_v46 = vrot.slane %v3307_v3, 5  ;;  %v1429_v60 = vrot.slane %v1427_v61, 5  ;;  %v2834_v44 = vld [vmem:[#allocation2 + $0x3c] sm:$0xf0] }
 0x18f   : > { %v1840_v54 = vrot.slane %v1839_v20, 4  ;;  %v1831_v2 = vsel %vm3179_vm0, %v1826_v8, %v1830_v39  ;;  %v2738_v29 = vrot.slane %v1516_v56, 9  ;;  %v2774_v16 = vrot.slane %v1914_v11, 9  ;;  %v2123_v11 = vld [vmem:[#allocation2 + $0x28] sm:$0xf] }
 0x190   : > { %v1444_v4 = vsel %vm3179_vm0, %v1439_v50, %v1443_v37  ;;  %v1557_v6 = vsel %vm3279_vm4, %v2737_v58, %v1556_v53  ;;  %v1430_v3 = vsel %vm3179_vm0, %v1425_v57, %v1429_v60  ;;  %v1854_v25 = vunpack.c.l.b16 %v1831_v2  ;;  %v1916_v37 = vld [vmem:[#allocation2 + $0x28] sm:$0xe]  ;;  %v1517_v60 = vld [vmem:[#allocation2 + $0x30] sm:$0xe] }
 0x191   : > { %v1845_v23 = vsel %vm3179_vm0, %v1840_v54, %v1844_v55  ;;  %v1561_v9 = vsel %vm3279_vm4, %v2738_v29, %v1560_v46  ;;  %v1454_v10 = vunpack.c.l.b16 %v1444_v4  ;;  %v1576_v26 = vunpack.c.l.b16 %v1557_v6  ;;  %v1518_v54 = vld [vmem:[#allocation2 + $0x38] sm:$0xe]  ;;  %v1917_v6 = vld [vmem:[#allocation2 + $0x30] sm:$0xe] }
 0x192   : > { %v1855_v59 = vunpack.c.l.b16 %v1845_v23  ;;  %v1946_v17 = vrot.slane %v3254_v49, 5  ;;  %v1453_v21 = vunpack.c.l.b16 %v1430_v3  ;;  %v1577_v22 = vunpack.c.l.b16 %v1561_v9 }
 0x193   : > { %2770 = vmatmul.msk.bf16.gmra.mxu0 %vm1260_vm14, %v1858_v32  ;;  %v2119_v32 = vld [vmem:[#allocation2 + $0x18] sm:$0xf]  ;;  %v2775_v14 = vrot.slane %v1915_v15, 9  ;;  %v1950_v0 = vrot.slane %v3256_v51, 5  ;;  %v2134_v38 = vshrl.u32 %v2117_v24, 16  ;;  %v2137_v13 = vshll.u32 %v2117_v24, 16 }
 0x194   : > { %v1859_v12 = vpack.c.b16 %v1855_v59, %v1854_v25  ;;  %v2151_v33 = vshll.u32 %v2119_v32, 16  ;;  %v1947_v27 = vsel %vm3279_vm4, %v2774_v16, %v1946_v17  ;;  %v1458_v48 = vpack.c.b16 %v1454_v10, %v1453_v21  ;;  %v2311_v51 = vld [vmem:[#allocation2 + $0x10] sm:$0xe]  ;;  %v2121_v17 = vld [vmem:[#allocation2 + $0x20] sm:$0xf] }
 0x195   : > { %2731 = vmatmul.msk.bf16.gmra.mxu1 %vm1260_vm14, %v1457_v30  ;;  %v2148_v30 = vshrl.u32 %v2119_v32, 16  ;;  %v1582_v41 = vpack.c.b16 %v1577_v22, %v1576_v26  ;;  %v1951_v49 = vsel %vm3279_vm4, %v2775_v14, %v1950_v0  ;;  %v1972_v18 = vunpack.c.l.b16 %v1947_v27 }
 0x196   : > { %v1973_v19 = vunpack.c.l.b16 %v1951_v49  ;;  %v2341_v43 = vrot.slane %v2120_v28, 5  ;;  %v2153_v8 = vrot.slane %v2151_v33, 5  ;;  %v2812_v50 = vrot.slane %v2312_v40, 9 }
 0x197   : > { %2743 = vmatmul.msk.bf16.gmra.mxu2 %vm1260_vm14, %v1581_v35  ;;  %v2118_v35 = vld [vmem:[#allocation2 + $0x14] sm:$0x1]  ;;  %v2150_v61 = vrot.slane %v2148_v30, 4  ;;  %v2136_v53 = vrot.slane %v2134_v38, 4  ;;  %v2811_v39 = vrot.slane %v2311_v51, 9  ;;  %v2762_v55 = vor.u32 %v2834_v44, %v2761_v47 }
 0x198   : > { %v2337_v20 = vrot.slane %v2118_v35, 5  ;;  %v3384_v45 = vpack.c.b16 %v1973_v19, %v1972_v18  ;;  %v2342_v56 = vsel %vm3279_vm4, %v2812_v50, %v2341_v43  ;;  %v1568_v57 = vrot.slane %v3348_v42, 5  ;;  %v2124_v18 = vld [vmem:[#allocation2 + $0x2c] sm:$0x1]  ;;  %v2313_v19 = vld [vmem:[#allocation2 + $0x20] sm:$0xe] }
 0x199   : > { %2765 = vmatmul.msk.bf16.gmra.mxu3 %vm1260_vm14, %v2758_v1  ;;  %v2139_v1 = vrot.slane %v2137_v13, 5  ;;  %v2154_v58 = vor.u32 %v2153_v8, %v2150_v61  ;;  %v1954_v2 = vrot.slane %v3312_v7, 5  ;;  %v2157_v23 = vshll.u32 %v2120_v28, 16 }
 0x19a   : > { %v2338_v46 = vsel %vm3279_vm4, %v2811_v39, %v2337_v20  ;;  %v1564_v4 = vrot.slane %v3350_v34, 5  ;;  %v2740_v59 = vrot.slane %v1518_v54, 9  ;;  %v2370_v3 = vunpack.c.l.b16 %v2342_v56  ;;  %v2314_v20 = vld [vmem:[#allocation2 + $0x28] sm:$0xe] }
 0x19b   : > { %v2140_v29 = vor.u32 %v2139_v1, %v2136_v53  ;;  %v2776_v25 = vrot.slane %v1916_v37, 9  ;;  %v2143_v9 = vshll.u32 %v2118_v35, 16  ;;  %v2369_v42 = vunpack.c.l.b16 %v2338_v46 }
 0x19c   : > { %v2739_v10 = vrot.slane %v1517_v60, 9  ;;  %v1569_v26 = vsel %vm3279_vm4, %v2740_v59, %v1568_v57  ;;  %v2155_v32 = vrot.slane %v2154_v58, 4  ;;  %v1958_v15 = vrot.slane %v3305_v31, 5 }
 0x19d   : > { %v1955_v7 = vsel %vm3279_vm4, %v2776_v25, %v1954_v2  ;;  %v2159_v34 = vrot.slane %v2157_v23, 5  ;;  %v2141_v21 = vrot.slane %v2140_v29, 4  ;;  %v2377_v22 = vpack.c.b16 %v2370_v3, %v2369_v42  ;;  %v2788_v3 = vld [vmem:[#allocation2 + $0x10] sm:$0xf]  ;;  %v2835_v25 = vld [vmem:[#allocation2 + $0x14] sm:$0xf0] }
 0x19e   : > { %v1565_v16 = vsel %vm3279_vm4, %v2739_v10, %v1564_v4  ;;  %v1579_v24 = vunpack.c.l.b16 %v1569_v26  ;;  %v2145_v0 = vrot.slane %v2143_v9, 5  ;;  %v2176_v28 = vshrl.u32 %v2123_v11, 16  ;;  %v2127_v4 = vld [vmem:[#allocation2 + $0x38] sm:$0xf]  ;;  %v2125_v9 = vld [vmem:[#allocation2 + $0x30] sm:$0xf] }
 0x19f   : > { %v1974_v30 = vunpack.c.l.b16 %v1955_v7  ;;  %v2160_v27 = vsel %vm3179_vm0, %v2155_v32, %v2159_v34  ;;  %v1578_v31 = vunpack.c.l.b16 %v1565_v16  ;;  %v2165_v35 = vshll.u32 %v2121_v17, 16  ;;  %v2126_v10 = vld [vmem:[#allocation2 + $0x34] sm:$0x1]  ;;  %v2128_v26 = vld [vmem:[#allocation2 + $0x3c] sm:$0x1] }
 0x1a0   : > { %v2179_v49 = vshll.u32 %v2123_v11, 16  ;;  %v2146_v13 = vsel %vm3179_vm0, %v2141_v21, %v2145_v0  ;;  %v2248_v51 = vunpack.c.l.b16 %v2160_v27  ;;  %v2178_v8 = vrot.slane %v2176_v28, 4  ;;  %v1918_v7 = vld [vmem:[#allocation2 + $0x38] sm:$0xe] }
 0x1a1   : > { %v1583_v40 = vpack.c.b16 %v1579_v24, %v1578_v31  ;;  %v2167_v61 = vrot.slane %v2165_v35, 5  ;;  %v2247_v47 = vunpack.c.l.b16 %v2146_v13  ;;  %v2813_v53 = vrot.slane %v2313_v19, 9 }
 0x1a2   : > { %v2181_v50 = vrot.slane %v2179_v49, 5  ;;  %v2349_v1 = vrot.slane %v2124_v18, 5  ;;  %v2185_v58 = vshll.u32 %v2124_v18, 16  ;;  %v2204_v32 = vshrl.u32 %v2127_v4, 16 }
 0x1a3   : > { %2771 = vmatmul.msk.bf16.gmra.mxu0 %vm1260_vm14, %v1859_v12  ;;  %v2777_v12 = vrot.slane %v1917_v6, 9  ;;  %v2255_v39 = vpack.c.b16 %v2248_v51, %v2247_v47  ;;  %v2207_v11 = vshll.u32 %v2127_v4, 16  ;;  %v2778_v34 = vrot.slane %v1918_v7, 9 }
 0x1a4   : > { %v2187_v6 = vrot.slane %v2185_v58, 5  ;;  %v1962_v16 = vrot.slane %v3344_v36, 5  ;;  %v2789_v21 = vor.u32 %v2835_v25, %v2788_v3  ;;  %v2193_v24 = vshll.u32 %v2125_v9, 16 }
 0x1a5   : > { %2732 = vmatmul.msk.bf16.gmra.mxu1 %vm1260_vm14, %v1458_v48  ;;  %v1959_v14 = vsel %vm3279_vm4, %v2777_v12, %v1958_v15  ;;  %v2122_v48 = vld [vmem:[#allocation2 + $0x24] sm:$0x1]  ;;  %v1919_v15 = vld [vmem:[#allocation2 + $0x40] sm:$0xe]  ;;  %v2206_v31 = vrot.slane %v2204_v32, 4  ;;  %v2209_v36 = vrot.slane %v2207_v11, 5 }
 0x1a6   : > { %v1975_v33 = vunpack.c.l.b16 %v1959_v14  ;;  %v2345_v43 = vrot.slane %v2122_v48, 5  ;;  %v2171_v37 = vshll.u32 %v2122_v48, 16  ;;  %v2316_v14 = vld [vmem:[#allocation2 + $0x38] sm:$0xe]  ;;  %v2779_v0 = vrot.slane %v1919_v15, 9 }
 0x1a7   : > { %2744 = vmatmul.msk.bf16.gmra.mxu2 %vm1260_vm14, %v1582_v41  ;;  %v2162_v41 = vshrl.u32 %v2121_v17, 16  ;;  %v1966_v17 = vrot.slane %v3346_v63, 5  ;;  %v2315_v48 = vld [vmem:[#allocation2 + $0x30] sm:$0xe]  ;;  %v2816_v35 = vrot.slane %v2316_v14, 9  ;;  %vm2433_vm5 = vcmask 64512  }
 0x1a8   : > { %v3406_v38 = vpack.c.b16 %v1975_v33, %v1974_v30  ;;  %v2346_v54 = vsel %vm3279_vm4, %v2813_v53, %v2345_v43  ;;  %v2173_v59 = vrot.slane %v2171_v37, 5  ;;  %v2357_v30 = vrot.slane %v2128_v26, 5  ;;  %v2317_v32 = vld [vmem:[#allocation2 + $0x40] sm:$0xe] }
 0x1a9   : > { %2766 = vmatmul.msk.bf16.gmra.mxu3 %vm1260_vm14, %v2762_v55  ;;  %v2164_v44 = vrot.slane %v2162_v41, 4  ;;  %v2814_v55 = vrot.slane %v2314_v20, 9  ;;  %v2371_v46 = vunpack.c.l.b16 %v2346_v54  ;;  %v1963_v33 = vsel %vm3279_vm4, %v2778_v34, %v1962_v16 }
 0x1aa   : > { %v1967_v63 = vsel %vm3279_vm4, %v2779_v0, %v1966_v17  ;;  %v2353_v41 = vrot.slane %v2126_v10, 5  ;;  %v1976_v49 = vunpack.c.l.b16 %v1963_v33  ;;  %v2815_v19 = vrot.slane %v2315_v48, 9 }
 0x1ab   : > { %v2168_v56 = vor.u32 %v2167_v61, %v2164_v44  ;;  %v2350_v57 = vsel %vm3279_vm4, %v2814_v55, %v2349_v1  ;;  %v1977_v13 = vunpack.c.l.b16 %v1967_v63  ;;  %v2358_v51 = vsel %vm3279_vm4, %v2816_v35, %v2357_v30  ;;  %v2837_v63 = vld [vmem:[#allocation2 + $0x34] sm:$0xf0] }
 0x1ac   : > { %v2372_v2 = vunpack.c.l.b16 %v2350_v57  ;;  %v2210_v44 = vor.u32 %v2209_v36, %v2206_v31  ;;  %v2354_v61 = vsel %vm3279_vm4, %v2815_v19, %v2353_v41  ;;  %v2213_v20 = vshll.u32 %v2128_v26, 16  ;;  %v2131_v57 = vld [vmem:[#allocation2 + $0x48] sm:$0xf] }
 0x1ad   : > { %v2169_v60 = vrot.slane %v2168_v56, 4  ;;  %v3434_v43 = vpack.c.b16 %v1977_v13, %v1976_v49  ;;  %v2374_v47 = vunpack.c.l.b16 %v2358_v51  ;;  %v2373_v1 = vunpack.c.l.b16 %v2354_v61 }
 0x1ae   : > { %v2378_v29 = vpack.c.b16 %v2372_v2, %v2371_v46  ;;  %v2211_v53 = vrot.slane %v2210_v44, 4  ;;  %v2215_v55 = vrot.slane %v2213_v20, 5  ;;  %v2836_v2 = vld [vmem:[#allocation2 + $0x24] sm:$0xf0]  ;;  %v2235_v3 = vshll.u32 %v2131_v57, 16 }
 0x1af   : > { %v2174_v42 = vsel %vm3179_vm0, %v2169_v60, %v2173_v59  ;;  %v2379_v56 = vpack.c.b16 %v2374_v47, %v2373_v1  ;;  %v2130_v59 = vld [vmem:[#allocation2 + $0x44] sm:$0x1]  ;;  %v2817_v34 = vrot.slane %v2317_v32, 9  ;;  %v2800_v20 = vld [vmem:[#allocation2 + $0x40] sm:$0xf]  ;;  %vm2464_vm6 = vcmask 57344  }
 0x1b0   : > { %v2249_v28 = vunpack.c.l.b16 %v2174_v42  ;;  %v2216_v58 = vsel %vm3179_vm0, %v2211_v53, %v2215_v55  ;;  %v2361_v11 = vrot.slane %v2130_v59, 5  ;;  %v2237_v15 = vrot.slane %v2235_v3, 5  ;;  %v2838_v47 = vld [vmem:[#allocation2 + $0x44] sm:$0xf0] }
 0x1b1   : > { %v2252_v25 = vunpack.c.l.b16 %v2216_v58  ;;  %vm2529_vm7 = vcmask 519168  }
 0x1b3   : > { %2820 = vmatmul.msk.bf16.vlgmr.msra.gmra.mxu0 %vm1260_vm14, %v2377_v22  ;;  %v2190_v22 = vshrl.u32 %v2125_v9, 16 }
 0x1b5   : > { %2781 = vmatmul.msk.bf16.vlgmr.msra.gmra.mxu1 %vm1260_vm14, %v3352_v5  ;;  %v2182_v5 = vor.u32 %v2181_v50, %v2178_v8  ;;  %v2199_v50 = vshll.u32 %v2126_v10, 16  ;;  %v2318_v10 = vld [vmem:[#allocation2 + $0x48] sm:$0xe] }
 0x1b6   : > { %v2818_v17 = vrot.slane %v2318_v10, 9 }
 0x1b7   : > { %2745 = vmatmul.msk.bf16.gmra.mxu2 %vm1260_vm14, %v1583_v40  ;;  %v2183_v23 = vrot.slane %v2182_v5, 4  ;;  %v2192_v40 = vrot.slane %v2190_v22, 4  ;;  %v2792_v5 = vld [vmem:[#allocation2 + $0x20] sm:$0xf]  ;;  %v2201_v37 = vrot.slane %v2199_v50, 5  ;;  %v2362_v22 = vsel %vm3279_vm4, %v2817_v34, %v2361_v11 }
 0x1b8   : > { %v2793_v4 = vor.u32 %v2836_v2, %v2792_v5  ;;  %v2375_v0 = vunpack.c.l.b16 %v2362_v22  ;;  %v2801_v50 = vor.u32 %v2838_v47, %v2800_v20  ;;  %v3507_v34 = vld [vmem:[%s3602_s2] ss:$0 sm:$0xff] }
 0x1b9   : > { %2807 = vmatmul.msk.bf16.vlgmr.msra.gmra.mxu3 %vm1260_vm14, %v2255_v39  ;;  %v2188_v12 = vsel %vm3179_vm0, %v2183_v23, %v2187_v6  ;;  %v2129_v39 = vld [vmem:[#allocation2 + $0x40] sm:$0xf]  ;;  %v2132_v6 = vld [vmem:[#allocation2 + $0x4c] sm:$0x1] }
 0x1ba   : > { %v2250_v27 = vunpack.c.l.b16 %v2188_v12  ;;  %v2218_v46 = vshrl.u32 %v2129_v39, 16  ;;  %v2221_v60 = vshll.u32 %v2129_v39, 16  ;;  %v2365_v7 = vrot.slane %v2132_v6, 5 }
 0x1bb   : > { %v2241_v33 = vshll.u32 %v2132_v6, 16 }
 0x1bc   : > { %v2256_v18 = vpack.c.b16 %v2250_v27, %v2249_v28  ;;  %v2220_v9 = vrot.slane %v2218_v46, 4  ;;  %v2223_v42 = vrot.slane %v2221_v60, 5 }
 0x1bd   : > { %v2243_v49 = vrot.slane %v2241_v33, 5 }
 0x1c1   : > { %v3452_v28 = vpop.f32.mrf.mxu0 }
 0x1c2   : > { %v1306_v22 = vadd.f32 %v3507_v34, %v3452_v28 }
 0x1c3   : > { %2821 = vmatmul.msk.bf16.gmra.mxu0 %vm1260_vm14, %v2378_v29  ;;  %v2232_v29 = vshrl.u32 %v2131_v57, 16 }
 0x1c5   : > { %2782 = vmatmul.msk.bf16.gmra.mxu1 %vm1260_vm14, %v3384_v45  ;;  %v2195_v45 = vrot.slane %v2193_v24, 5  ;;  %v2234_v12 = vrot.slane %v2232_v29, 4  ;;  %v2227_v24 = vshll.u32 %v2130_v59, 16 }
 0x1c7   : > { %2802 = vmatmul.msk.bf16.vlgmr.msra.gmra.mxu2 %vm1260_vm14, %v2789_v21  ;;  %v2196_v8 = vor.u32 %v2195_v45, %v2192_v40  ;;  %v2224_v21 = vor.u32 %v2223_v42, %v2220_v9  ;;  %v2238_v14 = vor.u32 %v2237_v15, %v2234_v12  ;;  %v2229_v31 = vrot.slane %v2227_v24, 5 }
 0x1c8   : > { %v2797_v40 = vor.u32 %v2837_v63, %v2796_v52 }
 0x1c9   : > { %2808 = vmatmul.msk.bf16.gmra.mxu3 %vm1260_vm14, %v2256_v18  ;;  %v2197_v54 = vrot.slane %v2196_v8, 4  ;;  %v2225_v30 = vrot.slane %v2224_v21, 4  ;;  %v2239_v36 = vrot.slane %v2238_v14, 4  ;;  %v1288_v18 = vpop.f32.mrf.mxu0 }
 0x1cb   : > { %v2202_v23 = vsel %vm3179_vm0, %v2197_v54, %v2201_v37  ;;  %v2230_v35 = vsel %vm3179_vm0, %v2225_v30, %v2229_v31  ;;  %v2244_v13 = vsel %vm3179_vm0, %v2239_v36, %v2243_v49 }
 0x1cc   : > { %v2251_v26 = vunpack.c.l.b16 %v2202_v23  ;;  %v2253_v45 = vunpack.c.l.b16 %v2230_v35  ;;  %v2254_v19 = vunpack.c.l.b16 %v2244_v13 }
 0x1ce   : > { %v2257_v16 = vpack.c.b16 %v2252_v25, %v2251_v26  ;;  %v2258_v51 = vpack.c.b16 %v2254_v19, %v2253_v45 }
 0x1d1   : > { %v1884_v8 = vpop.f32.mrf.mxu0 }
 0x1d3   : > { %2822 = vmatmul.msk.bf16.gmra.mxu0 %vm1260_vm14, %v2379_v56 }
 0x1d5   : > { %2783 = vmatmul.msk.bf16.gmra.mxu1 %vm1260_vm14, %v3406_v38  ;;  %v2366_v38 = vsel %vm3279_vm4, %v2818_v17, %v2365_v7 }
 0x1d6   : > { %v2376_v27 = vunpack.c.l.b16 %v2366_v38 }
 0x1d7   : > { %2803 = vmatmul.msk.bf16.gmra.mxu2 %vm1260_vm14, %v2793_v4 }
 0x1d8   : > { %v2380_v48 = vpack.c.b16 %v2376_v27, %v2375_v0  ;;  %v1307_v27 = vadd.f32 %v3507_v34, %v1288_v18 }
 0x1d9   : > { %2809 = vmatmul.msk.bf16.gmra.mxu3 %vm1260_vm14, %v2257_v16  ;;  %v1886_v39 = vpop.f32.mrf.mxu0 }
 0x1e2   : > { %v3454_v41 = vpop.f32.mrf.mxu1 }
 0x1e3   : > { %2823 = vmatmul.msk.bf16.gmra.mxu0 %vm1260_vm14, %v2380_v48  ;;  %v1308_v28 = vadd.f32 %v3507_v34, %v3454_v41 }
 0x1e5   : > { %2784 = vmatmul.msk.bf16.gmra.mxu1 %vm1260_vm14, %v3434_v43 }
 0x1e7   : > { %2804 = vmatmul.msk.bf16.gmra.mxu2 %vm1260_vm14, %v2797_v40 }
 0x1e9   : > { %2810 = vmatmul.msk.bf16.gmra.mxu3 %vm1260_vm14, %v2258_v51 }
 0x1ea   : > { %v3464_v44 = vpop.f32.mrf.mxu1 }
 0x1ec   : > { %v3467_v61 = vpop.f32.mrf.mxu3 }
 0x1f2   : > { %v1483_v62 = vpop.f32.mrf.mxu1 }
 0x1f3   : > { %v1503_v38 = vadd.f32 %v1483_v62, %v1306_v22 }
 0x1f4   : > { %v3469_v53 = vpop.f32.mrf.mxu3 }
 0x1f7   : > { %2805 = vmatmul.msk.bf16.gmra.mxu2 %vm1260_vm14, %v2801_v50 }
 0x1fa   : > { %v3472_v43 = vpop.f32.mrf.mxu2  ;;  %v1485_v1 = vpop.f32.mrf.mxu1 }
 0x1fb   : > { %v1504_v36 = vadd.f32 %v1485_v1, %v1307_v27 }
 0x1fc   : > { %v1690_v54 = vpop.f32.mrf.mxu3 }
 0x200   : > { %v3476_v5 = vpop.f32.mrf.mxu0 }
 0x202   : > { %v3474_v55 = vpop.f32.mrf.mxu2  ;;  %v1488_v56 = vpop.f32.mrf.mxu1 }
 0x203   : > { %v1505_v51 = vadd.f32 %v1488_v56, %v1308_v28 }
 0x204   : > { %v1692_v57 = vpop.f32.mrf.mxu3 }
 0x208   : > { %v3478_v46 = vpop.f32.mrf.mxu0 }
 0x20a   : > { %v1608_v37 = vpop.f32.mrf.mxu2  ;;  %v1490_v58 = vpop.f32.mrf.mxu1 }
 0x20b   : > { %v1628_v24 = vadd.f32 %v1608_v37, %v1503_v38 }
 0x20c   : > { %v1695_v60 = vpop.f32.mrf.mxu3 }
 0x20d   : > { %v1710_v31 = vadd.f32 %v1690_v54, %v1628_v24  ;;  %v1309_v54 = vadd.f32 %v3507_v34, %v3464_v44 }
 0x20f   : > { %v1904_v63 = vadd.f32 %v1884_v8, %v1710_v31 }
 0x210   : > { %v3482_v59 = vpop.f32.mrf.mxu0 }
 0x212   : > { %v1610_v2 = vpop.f32.mrf.mxu2  ;;  %v3480_v23 = vpop.f32.mrf.mxu1 }
 0x213   : > { %v1629_v48 = vadd.f32 %v1610_v2, %v1504_v36 }
 0x214   : > { %v1697_v4 = vpop.f32.mrf.mxu3 }
 0x215   : > { %v1711_v40 = vadd.f32 %v1692_v57, %v1629_v48  ;;  %v1506_v57 = vadd.f32 %v1490_v58, %v1309_v54 }
 0x217   : > { %v1905_v47 = vadd.f32 %v1886_v39, %v1711_v40 }
 0x218   : > { %v3488_v25 = vpop.f32.mrf.mxu0 }
 0x21a   : > { %v1613_v6 = vpop.f32.mrf.mxu2  ;;  %v3484_v29 = vpop.f32.mrf.mxu1 }
 0x21b   : > { %v1630_v62 = vadd.f32 %v1613_v6, %v1505_v51 }
 0x21c   : > { %v3486_v3 = vpop.f32.mrf.mxu3 }
 0x21d   : > { %v1712_v37 = vadd.f32 %v1695_v60, %v1630_v62 }
 0x21f   : > { %v1906_v6 = vadd.f32 %v3476_v5, %v1712_v37 }
 0x220   : > { %v3494_v32 = vpop.f32.mrf.mxu0 }
 0x222   : > { %v1615_v9 = vpop.f32.mrf.mxu2  ;;  %v3490_v42 = vpop.f32.mrf.mxu1 }
 0x223   : > { %v1631_v56 = vadd.f32 %v1615_v9, %v1506_v57 }
 0x224   : > { %v3492_v10 = vpop.f32.mrf.mxu3 }
 0x228   : > { %v3502_v15 = vpop.f32.mrf.mxu0 }
 0x22a   : > { %v1618_v26 = vpop.f32.mrf.mxu2  ;;  %v3496_v11 = vpop.f32.mrf.mxu1 }
 0x22c   : > { %v3498_v7 = vpop.f32.mrf.mxu3 }
 0x230   : > { %v2405_v0 = vpop.f32.mrf.mxu0 }
 0x232   : > { %v3500_v12 = vpop.f32.mrf.mxu2  ;;  %v2006_v17 = vpop.f32.mrf.mxu1 }
 0x233   : > { %v2026_v49 = vadd.f32 %v2006_v17, %v1904_v63 }
 0x234   : > { %v3509_v16 = vpop.f32.mrf.mxu3 }
 0x238   : > { %v2407_v52 = vpop.f32.mrf.mxu0 }
 0x23a   : > { %v3511_v21 = vpop.f32.mrf.mxu2  ;;  %v2008_v30 = vpop.f32.mrf.mxu1 }
 0x23b   : > { %v2027_v18 = vadd.f32 %v2008_v30, %v1905_v47 }
 0x23c   : > { %v2283_v14 = vpop.f32.mrf.mxu3 }
 0x240   : > { %v2410_v41 = vpop.f32.mrf.mxu0 }
 0x242   : > { %v3515_v33 = vpop.f32.mrf.mxu2  ;;  %v2011_v19 = vpop.f32.mrf.mxu1 }
 0x243   : > { %v2028_v38 = vadd.f32 %v2011_v19, %v1906_v6 }
 0x244   : > { %v2285_v35 = vpop.f32.mrf.mxu3 }
 0x248   : > { %v2412_v27 = vpop.f32.mrf.mxu0 }
 0x24a   : > { %v2089_v13 = vpop.f32.mrf.mxu2  ;;  %v2013_v22 = vpop.f32.mrf.mxu1 }
 0x24b   : > { %v2109_v45 = vadd.f32 %v2089_v13, %v2026_v49 }
 0x24c   : > { %v2288_v8 = vpop.f32.mrf.mxu3 }
 0x24d   : > { %v2303_v20 = vadd.f32 %v2283_v14, %v2109_v45  ;;  %v1310_v14 = vadd.f32 %v3507_v34, %v3472_v43  ;;  %v1311_v43 = vadd.f32 %v3507_v34, %v3474_v55 }
 0x24f   : > { %v3520_v50 = vadd.f32 %v2405_v0, %v2303_v20  ;;  %v1713_v0 = vadd.f32 %v1697_v4, %v1631_v56  ;;  %v1507_v30 = vadd.f32 %v3480_v23, %v1310_v14 }
 0x250   : > { %v2415_v45 = vpop.f32.mrf.mxu0 }
 0x251   : > { %2496 = vxpose.xlu0.b32.start [1/8] (short) (narrow) %v3520_v50, 8  ;;  %v1632_v31 = vadd.f32 %v1618_v26, %v1507_v30  ;;  %v1907_v9 = vadd.f32 %v3478_v46, %v1713_v0  ;;  %v1508_v26 = vadd.f32 %v3484_v29, %v1311_v43  ;;  %v2434_v46 = vsel %vm2433_vm5, %v3520_v50, 0.0 }
 0x252   : > { %v2091_v1 = vpop.f32.mrf.mxu2  ;;  %v2016_v36 = vpop.f32.mrf.mxu1 }
 0x253   : > { %v2110_v2 = vadd.f32 %v2091_v1, %v2027_v18  ;;  %v2029_v48 = vadd.f32 %v2013_v22, %v1907_v9  ;;  %v1714_v4 = vadd.f32 %v3486_v3, %v1632_v31  ;;  %v1633_v40 = vadd.f32 %v3500_v12, %v1508_v26 }
 0x254   : > { %v2290_v60 = vpop.f32.mrf.mxu3  ;;  %v1312_v18 = vadd.f32 %v3507_v34, %v3467_v61  ;;  %v1313_v61 = vadd.f32 %v3507_v34, %v3469_v53 }
 0x255   : > { %v2304_v17 = vadd.f32 %v2285_v35, %v2110_v2  ;;  %v1908_v55 = vadd.f32 %v3482_v59, %v1714_v4  ;;  %v1715_v12 = vadd.f32 %v3492_v10, %v1633_v40 }
 0x256   : > { %v1509_v59 = vadd.f32 %v3490_v42, %v1312_v18 }
 0x257   : > { %v3526_v39 = vadd.f32 %v2407_v52, %v2304_v17  ;;  %v2030_v51 = vadd.f32 %v2016_v36, %v1908_v55  ;;  %v1909_v37 = vadd.f32 %v3488_v25, %v1715_v12 }
 0x258   : > { %v1634_v54 = vadd.f32 %v3511_v21, %v1509_v59  ;;  %v2417_v22 = vpop.f32.mrf.mxu0  ;;  %v1510_v21 = vadd.f32 %v3496_v11, %v1313_v61 }
 0x259   : > { %2497 = vxpose.xlu0.b32.cont [2/8] (short) (narrow) %v3526_v39, 8  ;;  %v2435_v23 = vsel %vm2433_vm5, %v3526_v39, 0.0 }
 0x25a   : > { %v2094_v24 = vpop.f32.mrf.mxu2  ;;  %v2436_v28 = vadd.f32 %v2435_v23, %v2434_v46  ;;  %v2018_v20 = vpop.f32.mrf.mxu1  ;;  %v1716_v10 = vadd.f32 %v3498_v7, %v1634_v54  ;;  %v1635_v25 = vadd.f32 %v3515_v33, %v1510_v21 }
 0x25b   : > { %v2111_v44 = vadd.f32 %v2094_v24, %v2028_v38  ;;  %v2031_v57 = vadd.f32 %v2018_v20, %v1909_v37 }
 0x25c   : > { %v2293_v13 = vpop.f32.mrf.mxu3  ;;  %v1910_v14 = vadd.f32 %v3494_v32, %v1716_v10  ;;  %v1717_v53 = vadd.f32 %v3509_v16, %v1635_v25 }
 0x25d   : > { %v2305_v58 = vadd.f32 %v2288_v8, %v2111_v44 }
 0x25e   : > { %v1911_v11 = vadd.f32 %v3502_v15, %v1717_v53 }
 0x25f   : > { %v3533_v5 = vadd.f32 %v2410_v41, %v2305_v58 }
 0x260   : > { %v2420_v34 = vpop.f32.mrf.mxu0 }
 0x261   : > { %2498 = vxpose.xlu0.b32.cont [3/8] (short) (narrow) %v3533_v5, 8  ;;  %v2437_v49 = vsel %vm2433_vm5, %v3533_v5, 0.0 }
 0x262   : > { %v2096_v63 = vpop.f32.mrf.mxu2  ;;  %v2438_v19 = vadd.f32 %v2437_v49, %v2436_v28  ;;  %v2021_v38 = vpop.f32.mrf.mxu1 }
 0x263   : > { %v2112_v35 = vadd.f32 %v2096_v63, %v2029_v48  ;;  %v2032_v44 = vadd.f32 %v2021_v38, %v1910_v14 }
 0x264   : > { %v2295_v41 = vpop.f32.mrf.mxu3 }
 0x265   : > { %v2306_v52 = vadd.f32 %v2290_v60, %v2112_v35 }
 0x267   : > { %v3548_v3 = vadd.f32 %v2412_v27, %v2306_v52 }
 0x268   : > { %v2422_v35 = vpop.f32.mrf.mxu0 }
 0x269   : > { %v2439_v29 = vsel %vm2433_vm5, %v3548_v3, 0.0  ;;  %2499 = vxpose.xlu0.b32.cont [4/8] (short) (narrow) %v3548_v3, 8 }
 0x26a   : > { %v2440_v62 = vadd.f32 %v2439_v29, %v2438_v19  ;;  %v2099_v47 = vpop.f32.mrf.mxu2  ;;  %v2023_v9 = vpop.f32.mrf.mxu1 }
 0x26b   : > { %v2113_v8 = vadd.f32 %v2099_v47, %v2030_v51  ;;  %v2033_v33 = vadd.f32 %v2023_v9, %v1911_v11 }
 0x26c   : > { %v2298_v30 = vpop.f32.mrf.mxu3 }
 0x26d   : > { %v2307_v1 = vadd.f32 %v2293_v13, %v2113_v8 }
 0x26f   : > { %v2429_v2 = vadd.f32 %v2415_v45, %v2307_v1 }
 0x271   : > { %v2441_v17 = vsel %vm2433_vm5, %v2429_v2, 0.0  ;;  %2500 = vxpose.xlu0.b32.cont [5/8] (short) (narrow) %v2429_v2, 8 }
 0x272   : > { %v2442_v56 = vadd.f32 %v2441_v17, %v2440_v62  ;;  %v2101_v6 = vpop.f32.mrf.mxu2 }
 0x273   : > { %v2114_v42 = vadd.f32 %v2101_v6, %v2031_v57 }
 0x274   : > { %v2300_v4 = vpop.f32.mrf.mxu3 }
 0x275   : > { %v2308_v24 = vadd.f32 %v2295_v41, %v2114_v42 }
 0x277   : > { %v2430_v0 = vadd.f32 %v2417_v22, %v2308_v24 }
 0x279   : > { %v2443_v60 = vsel %vm2433_vm5, %v2430_v0, 0.0  ;;  %2501 = vxpose.xlu0.b32.cont [6/8] (short) (narrow) %v2430_v0, 8 }
 0x27a   : > { %v2444_v58 = vadd.f32 %v2443_v60, %v2442_v56  ;;  %v2104_v27 = vpop.f32.mrf.mxu2 }
 0x27b   : > { %v2115_v7 = vadd.f32 %v2104_v27, %v2032_v44 }
 0x27d   : > { %v2309_v31 = vadd.f32 %v2298_v30, %v2115_v7 }
 0x27f   : > { %v2431_v36 = vadd.f32 %v2420_v34, %v2309_v31 }
 0x281   : > { %v2445_v32 = vsel %vm2433_vm5, %v2431_v36, 0.0  ;;  %2502 = vxpose.xlu0.b32.cont [7/8] (short) (narrow) %v2431_v36, 8 }
 0x282   : > { %v2446_v48 = vadd.f32 %v2445_v32, %v2444_v58  ;;  %v2106_v63 = vpop.f32.mrf.mxu2 }
 0x283   : > { %v2116_v43 = vadd.f32 %v2106_v63, %v2033_v33 }
 0x285   : > { %v2310_v23 = vadd.f32 %v2300_v4, %v2116_v43 }
 0x287   : > { %v2432_v26 = vadd.f32 %v2422_v35, %v2310_v23 }
 0x289   : > { %v2447_v16 = vsel %vm2433_vm5, %v2432_v26, 0.0  ;;  %2503 = vxpose.xlu0.b32.end [8/8] (short) (narrow) %v2432_v26, 8 }
 0x28a   : > { %v2448_v46 = vadd.f32 %v2447_v16, %v2446_v48 }
 0x28c   : > { %v2449_v49 = vrot.slane %v2448_v46, 4 }
 0x28e   : > { %v2450_v52 = vadd.f32 %v2449_v49, %v2448_v46 }
 0x290   : > { %v2451_v15 = vrot.slane %v2450_v52, 2 }
 0x292   : > { %v2452_v13 = vadd.f32 %v2451_v15, %v2450_v52 }
 0x294   : > { %v2453_v28 = vrot.slane %v2452_v13, 1 }
 0x296   : > { %v2454_v40 = vadd.f32 %v2453_v28, %v2452_v13 }
 0x298   : > { %v2455_v55 = vmul.f32 0.015625, %v2454_v40  ;;  %2465 = vst.msk [vmem:[%s3575_s20] sm:$0x1] %vm2464_vm6, %v2454_v40 }
 0x29a   : > { %v2456_v45 = vsub.f32 %v3520_v50, %v2455_v55  ;;  %v2457_v19 = vsub.f32 %v3526_v39, %v2455_v55  ;;  %v2458_v51 = vsub.f32 %v3533_v5, %v2455_v55  ;;  %v2459_v29 = vsub.f32 %v3548_v3, %v2455_v55 }
 0x29b   : > { %v2460_v20 = vsub.f32 %v2429_v2, %v2455_v55  ;;  %v2461_v62 = vsub.f32 %v2430_v0, %v2455_v55  ;;  %v2462_v47 = vsub.f32 %v2431_v36, %v2455_v55  ;;  %v2463_v18 = vsub.f32 %v2432_v26, %v2455_v55 }
 0x29c   : > { %v2466_v12 = vmul.f32 %v2456_v45, %v2456_v45  ;;  %v2467_v8 = vmul.f32 %v2457_v19, %v2457_v19  ;;  %v2468_v59 = vmul.f32 %v2458_v51, %v2458_v51  ;;  %v2469_v1 = vmul.f32 %v2459_v29, %v2459_v29 }
 0x29d   : > { %v2470_v50 = vmul.f32 %v2460_v20, %v2460_v20  ;;  %v2471_v5 = vmul.f32 %v2461_v62, %v2461_v62  ;;  %v2472_v17 = vmul.f32 %v2462_v47, %v2462_v47  ;;  %v2473_v6 = vmul.f32 %v2463_v18, %v2463_v18 }
 0x29e   : > { %v2474_v54 = vsel %vm2433_vm5, %v2466_v12, 0.0  ;;  %v2475_v37 = vsel %vm2433_vm5, %v2467_v8, 0.0  ;;  %v2477_v39 = vsel %vm2433_vm5, %v2468_v59, 0.0  ;;  %v2479_v3 = vsel %vm2433_vm5, %v2469_v1, 0.0 }
 0x29f   : > { %v2476_v41 = vadd.f32 %v2475_v37, %v2474_v54  ;;  %v2481_v22 = vsel %vm2433_vm5, %v2470_v50, 0.0  ;;  %v2483_v61 = vsel %vm2433_vm5, %v2471_v5, 0.0  ;;  %v2485_v42 = vsel %vm2433_vm5, %v2472_v17, 0.0 }
 0x2a0   : > { %v2487_v21 = vsel %vm2433_vm5, %v2473_v6, 0.0 }
 0x2a1   : > { %v2478_v57 = vadd.f32 %v2477_v39, %v2476_v41 }
 0x2a3   : > { %v2480_v2 = vadd.f32 %v2479_v3, %v2478_v57 }
 0x2a5   : > { %v2482_v56 = vadd.f32 %v2481_v22, %v2480_v2 }
 0x2a7   : > { %v2484_v10 = vadd.f32 %v2483_v61, %v2482_v56 }
 0x2a9   : > { %v2486_v38 = vadd.f32 %v2485_v42, %v2484_v10 }
 0x2ab   : > { %v2488_v24 = vadd.f32 %v2487_v21, %v2486_v38 }
 0x2ad   : > { %v2489_v25 = vrot.slane %v2488_v24, 4 }
 0x2af   : > { %v2490_v14 = vadd.f32 %v2489_v25, %v2488_v24 }
 0x2b1   : > { %v2491_v0 = vrot.slane %v2490_v14, 2 }
 0x2b3   : > { %v2492_v44 = vadd.f32 %v2491_v0, %v2490_v14 }
 0x2b5   : > { %v2493_v60 = vrot.slane %v2492_v44, 1 }
 0x2b7   : > { %v2494_v30 = vadd.f32 %v2493_v60, %v2492_v44 }
 0x2b9   : > { %2495 = vst.msk [vmem:[%s3575_s20 + $0x1] sm:$0x1] %vm2464_vm6, %v2494_v30 }
 0x2f5   : > { %v2512_v58 = vpop.trf.xlu0 }
 0x2f6   : > { %v2528_v27 = vpack.c.bf16 %v2512_v58, %v2512_v58 }
 0x2f8   : > { %2530 = vst.msk [vmem:[%s202_s24] sm:$0xf] %vm2529_vm7, %v2528_v27 }
 0x2f9 PF: > { %s15_s15 = sadd.s32 1, %s2940_s15  }
 0x2fa   : > { %p12_p4 = scmp.ge.s32.totalorder %s15_s15, 4  }
 0x2fc   :  { %14 = sbr.rel (!%p12_p4) target bundleno = 1 (0x1), region = 85 }

</bundles_post_ra>
